<compile_context>
chip_gen: v7x
topology: tpu7x:2x2x1
jax: 0.10.0
libtpu: 0.0.40
codegen_flags: <defaults>
</compile_context>

<pallas_src>
import jax
import jax.numpy as jnp
import numpy as np
from jax.experimental import pallas as pl

# ---- model hyper-parameters (small, consistent with the module signature) ----
N_VOCAB = 64
N_CTX = 8            # max text context
N_STATE = 32
N_HEAD = 4
N_LAYER = 2
N_AUDIO_CTX = 16
EPS = 1e-5
_INV_SQRT2 = 0.7071067811865476
_NEG = -1e30         # "minus infinity" that can never produce NaN in softmax

D = N_STATE
DH = D // N_HEAD
N_MLP = 4 * D

# lane width of all packed slabs and of the padded logits output (>= 128)
_LW = ((max(N_VOCAB, N_MLP, 3 * D) + 127) // 128) * 128          # = 128 here

# ---- weight-slab row offsets (per layer), all multiples of 8/16 -------------
_W_QKV = 0                  # (D, 3D)  attn_ln-folded, scale-folded QKV
_W_OS = D                   # (D, D)   self-attn out proj
_W_QC = 2 * D               # (D, D)   cross_ln-folded, scale-folded Q
_W_KVC = 3 * D              # (D, 2D)  cross KV (from xa, no LN fold)
_W_OC = 4 * D               # (D, D)   cross-attn out proj
_W_W1 = 5 * D               # (D, 4D)  mlp_ln-folded W1
_W_W2 = 6 * D               # (4D, D)  W2
_W_PER_LAYER = 6 * D + N_MLP                                      # 320 rows

# ---- vec-slab (f32) row offsets ---------------------------------------------
_VB_QKV, _VB_OS, _VB_QC, _VB_KVC, _VB_OC, _VB_B1, _VB_B2 = range(7)
_V_PER_LAYER = 7
_VS_LOGITB = N_LAYER * _V_PER_LAYER                                # 14
_VS_EMB = ((_VS_LOGITB + 1 + 7) // 8) * 8                          # 16
_VS_EMBT = _VS_EMB + N_VOCAB                                       # 80
_VEC_ROWS = _VS_EMBT + D                                           # 112


def _pad_lanes(a, width=_LW):
    a = jnp.asarray(a, jnp.float32)
    if a.ndim == 1:
        a = a[None, :]
    return jnp.pad(a, ((0, 0), (0, width - a.shape[1])))


def _div_const(v, d):
    """v // d for a traced int32 array and a Python-int d (shift if pow2)."""
    if d & (d - 1) == 0:
        return jnp.right_shift(v, int(d).bit_length() - 1)
    return v // d


def _mod_const(v, d):
    if d & (d - 1) == 0:
        return jnp.bitwise_and(v, d - 1)
    return v % d


# =======================  the fused Pallas kernel  =======================

def _make_decoder_kernel(B, T, Ta):
    R, Ra = B * T, B * Ta

    def kernel(tok_ref, data_ref, vec_ref, w_ref, out_ref):
        f32, bf16 = jnp.float32, jnp.bfloat16

        # ---- slab views (static slices of whole-array VMEM refs) ----
        pos = data_ref[0:R, :]                                     # (R, D)  f32
        xa = data_ref[R:R + Ra, :]                                 # (Ra, D) f32
        emb = vec_ref[_VS_EMB:_VS_EMB + N_VOCAB, 0:D]              # (V, D)  f32
        embT = vec_ref[_VS_EMBT:_VS_EMBT + D, :]                   # (D, _LW) final-LN folded
        logit_b = vec_ref[_VS_LOGITB:_VS_LOGITB + 1, :]            # (1, _LW)

        # ---- token one-hot embedding + positional (out-of-range id -> zero row)
        tok = tok_ref[...]                                         # (R, 1) int32
        vocab_ids = jax.lax.broadcasted_iota(jnp.int32, (R, N_VOCAB), 1)
        onehot = (vocab_ids == tok).astype(f32)
        x = jnp.dot(onehot, emb, preferred_element_type=f32) + pos

        # ---- additive masks generated in-kernel (no extra DMAs) ----
        ri = jax.lax.broadcasted_iota(jnp.int32, (R, R), 0)
        ci = jax.lax.broadcasted_iota(jnp.int32, (R, R), 1)
        keep = ((_div_const(ri, T) == _div_const(ci, T)) &
                (_mod_const(ci, T) <= _mod_const(ri, T)))
        self_mask = jnp.where(keep, 0.0, _NEG).astype(f32)
        ri2 = jax.lax.broadcasted_iota(jnp.int32, (R, Ra), 0)
        ci2 = jax.lax.broadcasted_iota(jnp.int32, (R, Ra), 1)
        cross_mask = jnp.where(_div_const(ri2, T) == _div_const(ci2, Ta),
                               0.0, _NEG).astype(f32)

        xa_b = xa.astype(bf16)

        def norm(h):                 # LayerNorm; affine folded into next matmul
            mu = jnp.mean(h, axis=-1, keepdims=True)
            var = jnp.mean((h - mu) * (h - mu), axis=-1, keepdims=True)
            return (h - mu) * jax.lax.rsqrt(var + EPS)

        def softmax(s):
            m = jnp.max(s, axis=-1, keepdims=True)
            e = jnp.exp(s - m)
            return e * pl.reciprocal(jnp.sum(e, axis=-1, keepdims=True),
                                     approx=True)                  # EUP slot

        def attend(q, k, v, wo, mask):
            # K transposed once per attention; Wo folded into the head loop so
            # no per-head concat / (R, D) intermediate is ever materialized.
            kT = k.T.astype(bf16)                                  # (D, Rk)
            qb, vb = q.astype(bf16), v.astype(bf16)
            acc = jnp.zeros((q.shape[0], D), f32)
            for hd in range(N_HEAD):
                rs = slice(hd * DH, (hd + 1) * DH)                 # DH=8 aligned
                sc = jnp.dot(qb[:, rs], kT[rs, :],
                             preferred_element_type=f32) + mask
                p = softmax(sc).astype(bf16)
                pv = jnp.dot(p, vb[:, rs], preferred_element_type=f32)
                acc = acc + jnp.dot(pv.astype(bf16), wo[rs, :],
                                    preferred_element_type=f32)
            return acc

        for l in range(N_LAYER):
            woff = l * _W_PER_LAYER
            voff = l * _V_PER_LAYER
            wqkv = w_ref[woff + _W_QKV:woff + _W_QKV + D, 0:3 * D]
            wo_s = w_ref[woff + _W_OS:woff + _W_OS + D, 0:D]
            wq_c = w_ref[woff + _W_QC:woff + _W_QC + D, 0:D]
            wkv_c = w_ref[woff + _W_KVC:woff + _W_KVC + D, 0:2 * D]
            wo_c = w_ref[woff + _W_OC:woff + _W_OC + D, 0:D]
            w1 = w_ref[woff + _W_W1:woff + _W_W1 + D, :]
            w2 = w_ref[woff + _W_W2:woff + _W_W2 + N_MLP, 0:D]

            bqkv = vec_ref[voff + _VB_QKV:voff + _VB_QKV + 1, 0:3 * D]
            bo_s = vec_ref[voff + _VB_OS:voff + _VB_OS + 1, 0:D]
            bq_c = vec_ref[voff + _VB_QC:voff + _VB_QC + 1, 0:D]
            bkv_c = vec_ref[voff + _VB_KVC:voff + _VB_KVC + 1, 0:2 * D]
            bo_c = vec_ref[voff + _VB_OC:voff + _VB_OC + 1, 0:D]
            b1 = vec_ref[voff + _VB_B1:voff + _VB_B1 + 1, :]
            b2 = vec_ref[voff + _VB_B2:voff + _VB_B2 + 1, 0:D]

            # ---- self-attention (fused QKV; LN affine + DH**-0.25 pre-folded)
            h = norm(x).astype(bf16)
            qkv = jnp.dot(h, wqkv, preferred_element_type=f32) + bqkv
            x = x + attend(qkv[:, 0:D], qkv[:, D:2 * D], qkv[:, 2 * D:3 * D],
                           wo_s, self_mask) + bo_s

            # ---- cross-attention over audio features (fused KV on xa) ----
            h = norm(x).astype(bf16)
            q = jnp.dot(h, wq_c, preferred_element_type=f32) + bq_c
            kv = jnp.dot(xa_b, wkv_c, preferred_element_type=f32) + bkv_c
            x = x + attend(q, kv[:, 0:D], kv[:, D:2 * D], wo_c, cross_mask) + bo_c

            # ---- MLP: norm -> Linear -> GELU(tanh, EUP) -> Linear, fused resid
            h = norm(x).astype(bf16)
            h1 = jnp.dot(h, w1, preferred_element_type=f32) + b1
            h1 = jax.nn.gelu(h1, approximate=True)
            x = x + jnp.dot(h1.astype(bf16), w2, preferred_element_type=f32) + b2

        # ---- final LayerNorm (affine folded into embT) + lane-dense logits ----
        out_ref[...] = (jnp.dot(norm(x), embT, preferred_element_type=f32)
                        + logit_b)

    return kernel


# =======================  parameter packing (one-time)  =======================

def pack_params(params):
    """Fold LN affines + the DH**-0.25 scale into adjacent matmuls, fuse QKV/KV,
    pre-transpose + vocab-pad the tied embedding, and pack everything into one
    bf16 weight slab plus one f32 bias/embedding slab."""
    f32 = jnp.float32
    s = DH ** -0.25
    emb = params["tok_emb"].astype(f32)                            # (V, D)
    g_f, b_f = params["ln_g"][0], params["ln_b"][0]

    vec_rows, w_rows = [], []
    for blk in params["blocks"]:
        a, c = blk["attn"], blk["cross"]
        g_a, b_a = blk["attn_ln_g"][0], blk["attn_ln_b"][0]
        g_c, b_c = blk["cross_ln_g"][0], blk["cross_ln_b"][0]
        g_m, b_m = blk["mlp_ln_g"][0], blk["mlp_ln_b"][0]

        # self-attn: (x_hat*g+b)@W = x_hat@(diag(g)W) + b@W ; scale into Wq/Wk
        wqkv = jnp.concatenate([a["wq"] * s, a["wk"] * s, a["wv"]], axis=1)
        bqkv = (jnp.concatenate([a["bq"][0] * s, jnp.zeros((D,), f32), a["bv"][0]])
                + b_a @ wqkv)
        wqkv_f = g_a[:, None] * wqkv

        wq_c = c["wq"] * s
        bq_c = c["bq"][0] * s + b_c @ wq_c
        wq_c_f = g_c[:, None] * wq_c
        wkv_c = jnp.concatenate([c["wk"] * s, c["wv"]], axis=1)    # xa: no LN fold
        bkv_c = jnp.concatenate([jnp.zeros((D,), f32), c["bv"][0]])

        b1_f = blk["b1"][0] + b_m @ blk["w1"]
        w1_f = g_m[:, None] * blk["w1"]

        w_rows += [_pad_lanes(wqkv_f), _pad_lanes(a["wo"]), _pad_lanes(wq_c_f),
                   _pad_lanes(wkv_c), _pad_lanes(c["wo"]), _pad_lanes(w1_f),
                   _pad_lanes(blk["w2"])]
        vec_rows += [_pad_lanes(r) for r in
                     (bqkv, a["bo"][0], bq_c, bkv_c, c["bo"][0], b1_f,
                      blk["b2"][0])]

    # global rows: logit bias (final-LN beta fold), pad, emb, folded/padded embT
    vec_rows.append(_pad_lanes(emb @ b_f))                         # (1, _LW)
    vec_rows.append(jnp.zeros((_VS_EMB - _VS_LOGITB - 1, _LW), f32))
    vec_rows.append(_pad_lanes(emb))                               # (V, _LW)
    vec_rows.append(_pad_lanes(emb.T * g_f[:, None]))              # (D, _LW)

    vecs = jnp.concatenate(vec_rows, axis=0)                       # (_VEC_ROWS, _LW) f32
    wmat = jnp.concatenate(w_rows, axis=0).astype(jnp.bfloat16)    # (L*320, _LW)  bf16
    assert vecs.shape[0] == _VEC_ROWS
    return {"pos": params["pos_emb"].astype(f32), "vecs": vecs, "wmat": wmat}


# =======================  forward wrapper (single pallas_call)  ===============

@jax.jit
def text_decoder_forward(tokens, xa, packed):
    """tokens: (B, T) int32, xa: (B, Ta, n_state) f32 -> logits (B, T, n_vocab)."""
    B, T = tokens.shape
    Ta = xa.shape[1]
    R, Ra = B * T, B * Ta

    tok_r = tokens.reshape(R, 1).astype(jnp.int32)
    pos_full = jnp.tile(packed["pos"][:T], (B, 1))                 # (R, D), offset=0
    data = jnp.concatenate(
        [pos_full, xa.astype(jnp.float32).reshape(Ra, D)], axis=0)  # (R+Ra, D)

    logits = pl.pallas_call(
        _make_decoder_kernel(B, T, Ta),
        out_shape=jax.ShapeDtypeStruct((R, _LW), jnp.float32),     # lane-dense 128
    )(tok_r, data, packed["vecs"], packed["wmat"])
    return logits[:, :N_VOCAB].reshape(B, T, N_VOCAB)


# =======================  plain-JAX reference (for self-check)  ===============

_PREC = jax.lax.Precision.HIGHEST


def _reference_forward(tokens, xa, params):
    """Direct translation of the PyTorch TextDecoder forward (kv_cache=None)."""
    B, T = tokens.shape
    x = params["tok_emb"][tokens] + params["pos_emb"][:T]
    causal = jnp.triu(jnp.full((T, T), -jnp.inf, jnp.float32), k=1)

    def ln(h, g, b):
        mu = jnp.mean(h, axis=-1, keepdims=True)
        var = jnp.mean((h - mu) ** 2, axis=-1, keepdims=True)
        return (h - mu) * jax.lax.rsqrt(var + EPS) * g + b

    def mha(xq, xkv, p, msk):
        Bq, Tq, _ = xq.shape
        Tk = xkv.shape[1]
        s = DH ** (-0.25)
        q = (jnp.matmul(xq, p["wq"], precision=_PREC) + p["bq"])
        q = q.reshape(Bq, Tq, N_HEAD, DH).transpose(0, 2, 1, 3) * s
        k = jnp.matmul(xkv, p["wk"], precision=_PREC)
        k = k.reshape(Bq, Tk, N_HEAD, DH).transpose(0, 2, 1, 3) * s
        v = (jnp.matmul(xkv, p["wv"], precision=_PREC) + p["bv"])
        v = v.reshape(Bq, Tk, N_HEAD, DH).transpose(0, 2, 1, 3)
        qk = jnp.einsum("bhqd,bhkd->bhqk", q, k, precision=_PREC)
        if msk is not None:
            qk = qk + msk
        w = jax.nn.softmax(qk, axis=-1)
        o = jnp.einsum("bhqk,bhkd->bhqd", w, v, precision=_PREC)
        o = o.transpose(0, 2, 1, 3).reshape(Bq, Tq, D)
        return jnp.matmul(o, p["wo"], precision=_PREC) + p["bo"]

    for blk in params["blocks"]:
        h = ln(x, blk["attn_ln_g"], blk["attn_ln_b"])
        x = x + mha(h, h, blk["attn"], causal)
        h = ln(x, blk["cross_ln_g"], blk["cross_ln_b"])
        x = x + mha(h, xa, blk["cross"], None)
        h = ln(x, blk["mlp_ln_g"], blk["mlp_ln_b"])
        h = jnp.matmul(h, blk["w1"], precision=_PREC) + blk["b1"]
        h = 0.5 * h * (1.0 + jax.lax.erf(h * _INV_SQRT2))
        x = x + jnp.matmul(h, blk["w2"], precision=_PREC) + blk["b2"]

    x = ln(x, params["ln_g"], params["ln_b"])
    return jnp.matmul(x, params["tok_emb"].T, precision=_PREC).astype(jnp.float32)


# =======================  deterministic parameter init  =======================

def init_params(key):
    def nrm(k, shape, s=0.02):
        return jax.random.normal(k, shape, jnp.float32) * s

    keys = jax.random.split(key, 3 + N_LAYER)
    params = {
        "tok_emb": nrm(keys[0], (N_VOCAB, D)),
        "pos_emb": nrm(keys[1], (N_CTX, D)),
        # non-trivial LayerNorm affines so the LN->matmul folding is exercised
        "ln_g": 1.0 + nrm(keys[2], (1, D), 0.1),
        "ln_b": nrm(jax.random.fold_in(keys[2], 1), (1, D)),
        "blocks": [],
    }
    for l in range(N_LAYER):
        bk = jax.random.split(keys[3 + l], 19)

        def attn_params(ks):
            return {
                "wq": nrm(ks[0], (D, D)), "bq": nrm(ks[1], (1, D)),
                "wk": nrm(ks[2], (D, D)),                       # key: no bias
                "wv": nrm(ks[3], (D, D)), "bv": nrm(ks[4], (1, D)),
                "wo": nrm(ks[5], (D, D)), "bo": nrm(ks[6], (1, D)),
            }

        blk = {
            "attn": attn_params(bk[0:7]),
            "cross": attn_params(bk[7:14]),
            "attn_ln_g": 1.0 + nrm(bk[16], (1, D), 0.1),
            "attn_ln_b": nrm(jax.random.fold_in(bk[16], 1), (1, D)),
            "cross_ln_g": 1.0 + nrm(bk[17], (1, D), 0.1),
            "cross_ln_b": nrm(jax.random.fold_in(bk[17], 1), (1, D)),
            "mlp_ln_g": 1.0 + nrm(bk[18], (1, D), 0.1),
            "mlp_ln_b": nrm(jax.random.fold_in(bk[18], 1), (1, D)),
            "w1": nrm(bk[14], (D, N_MLP)),
            "b1": nrm(jax.random.fold_in(bk[14], 1), (1, N_MLP)),
            "w2": nrm(bk[15], (N_MLP, D)),
            "b2": nrm(jax.random.fold_in(bk[15], 1), (1, D)),
        }
        params["blocks"].append(blk)
    return params


# =======================  main  =======================

if __name__ == "__main__":
    key = jax.random.PRNGKey(0)
    kp, kt, ka = jax.random.split(key, 3)

    params = init_params(kp)
    packed = pack_params(params)

    B, T = 2, N_CTX
    tokens = jax.random.randint(kt, (B, T), 0, N_VOCAB, dtype=jnp.int32)
    # encoded audio features attended on by cross-attention: (B, n_audio_ctx, n_state)
    xa = jax.random.normal(ka, (B, N_AUDIO_CTX, N_STATE), jnp.float32)

    logits = text_decoder_forward(tokens, xa, packed)
    logits = jax.block_until_ready(logits)
    assert logits.shape == (B, T, N_VOCAB)
    assert logits.dtype == jnp.float32

    # numerical self-check against a plain-JAX mirror of the PyTorch module.
    # (tolerance accounts for bf16 MXU operands, approx reciprocal in softmax
    # and tanh-GELU adopted per the performance review; f32 reference.)
    ref = _reference_forward(tokens, xa, params)
    np.testing.assert_allclose(np.asarray(logits), np.asarray(ref),
                               rtol=5e-2, atol=1e-2)
    print("KERNEL_OK")
</pallas_src>

<mosaic_0001>
module attributes {stable_mosaic.version = 11 : i64} {
  func.func @kernel(%arg0: memref<16x1xi32, #tpu.memory_space<vmem>>, %arg1: memref<48x32xf32, #tpu.memory_space<vmem>>, %arg2: memref<112x128xf32, #tpu.memory_space<vmem>>, %arg3: memref<640x128xbf16, #tpu.memory_space<vmem>>, %arg4: memref<16x128xf32, #tpu.memory_space<vmem>>) attributes {dimension_semantics = [], scalar_prefetch = 0 : i64, scratch_operands = 0 : i64, tpu.core_type = #tpu.core_type<tc>} {
    %c0 = arith.constant 0 : index
    %c0_0 = arith.constant 0 : index
    %0 = vector.load %arg1[%c0, %c0_0] : memref<48x32xf32, #tpu.memory_space<vmem>>, vector<16x32xf32>
    %c16 = arith.constant 16 : index
    %c0_1 = arith.constant 0 : index
    %1 = vector.load %arg1[%c16, %c0_1] : memref<48x32xf32, #tpu.memory_space<vmem>>, vector<32x32xf32>
    %c16_2 = arith.constant 16 : index
    %c0_3 = arith.constant 0 : index
    %2 = vector.load %arg2[%c16_2, %c0_3] : memref<112x128xf32, #tpu.memory_space<vmem>>, vector<64x32xf32>
    %c80 = arith.constant 80 : index
    %c0_4 = arith.constant 0 : index
    %3 = vector.load %arg2[%c80, %c0_4] : memref<112x128xf32, #tpu.memory_space<vmem>>, vector<32x128xf32>
    %c14 = arith.constant 14 : index
    %c0_5 = arith.constant 0 : index
    %4 = vector.load %arg2[%c14, %c0_5] : memref<112x128xf32, #tpu.memory_space<vmem>>, vector<1x128xf32>
    %c0_6 = arith.constant 0 : index
    %c0_7 = arith.constant 0 : index
    %5 = vector.load %arg0[%c0_6, %c0_7] : memref<16x1xi32, #tpu.memory_space<vmem>>, vector<16x1xi32>
    %6 = tpu.iota {dimensions = array<i32: 1>} : vector<16x64xi32>
    %7 = vector.broadcast %5 : vector<16x1xi32> to vector<16x64xi32>
    %8 = arith.cmpi eq, %6, %7 : vector<16x64xi32>
    %9 = arith.extui %8 : vector<16x64xi1> to vector<16x64xi32>
    %10 = arith.sitofp %9 : vector<16x64xi32> to vector<16x64xf32>
    %cst = arith.constant dense<0.000000e+00> : vector<16x32xf32>
    %11 = tpu.matmul %10, %2, %cst {dimension_numbers = #tpu.dot_dimension_numbers<[1], [0], [0], [1], [0, 0, 1, 1], [], []>} : vector<16x64xf32>, vector<64x32xf32>, vector<16x32xf32> -> vector<16x32xf32>
    %12 = arith.addf %11, %0 : vector<16x32xf32>
    %13 = tpu.iota {dimensions = array<i32: 0>} : vector<16x16xi32>
    %14 = tpu.iota {dimensions = array<i32: 1>} : vector<16x16xi32>
    %c3_i32 = arith.constant 3 : i32
    %15 = vector.broadcast %c3_i32 : i32 to vector<16x16xi32>
    %16 = arith.shrsi %13, %15 : vector<16x16xi32>
    %c3_i32_8 = arith.constant 3 : i32
    %17 = vector.broadcast %c3_i32_8 : i32 to vector<16x16xi32>
    %18 = arith.shrsi %14, %17 : vector<16x16xi32>
    %19 = arith.cmpi eq, %16, %18 : vector<16x16xi32>
    %c7_i32 = arith.constant 7 : i32
    %20 = vector.broadcast %c7_i32 : i32 to vector<16x16xi32>
    %21 = arith.andi %14, %20 : vector<16x16xi32>
    %c7_i32_9 = arith.constant 7 : i32
    %22 = vector.broadcast %c7_i32_9 : i32 to vector<16x16xi32>
    %23 = arith.andi %13, %22 : vector<16x16xi32>
    %24 = arith.cmpi sle, %21, %23 : vector<16x16xi32>
    %25 = arith.andi %19, %24 : vector<16x16xi1>
    %cst_10 = arith.constant 0.000000e+00 : f32
    %cst_11 = arith.constant -1.000000e+30 : f32
    %26 = vector.broadcast %cst_10 : f32 to vector<16x16xf32>
    %27 = vector.broadcast %cst_11 : f32 to vector<16x16xf32>
    %28 = arith.select %25, %26, %27 : vector<16x16xi1>, vector<16x16xf32>
    %29 = tpu.iota {dimensions = array<i32: 0>} : vector<16x32xi32>
    %30 = tpu.iota {dimensions = array<i32: 1>} : vector<16x32xi32>
    %c3_i32_12 = arith.constant 3 : i32
    %31 = vector.broadcast %c3_i32_12 : i32 to vector<16x32xi32>
    %32 = arith.shrsi %29, %31 : vector<16x32xi32>
    %c4_i32 = arith.constant 4 : i32
    %33 = vector.broadcast %c4_i32 : i32 to vector<16x32xi32>
    %34 = arith.shrsi %30, %33 : vector<16x32xi32>
    %35 = arith.cmpi eq, %32, %34 : vector<16x32xi32>
    %cst_13 = arith.constant 0.000000e+00 : f32
    %cst_14 = arith.constant -1.000000e+30 : f32
    %36 = vector.broadcast %cst_13 : f32 to vector<16x32xf32>
    %37 = vector.broadcast %cst_14 : f32 to vector<16x32xf32>
    %38 = arith.select %35, %36, %37 : vector<16x32xi1>, vector<16x32xf32>
    %39 = arith.truncf %1 : vector<32x32xf32> to vector<32x32xbf16>
    %c0_15 = arith.constant 0 : index
    %c0_16 = arith.constant 0 : index
    %40 = vector.load %arg3[%c0_15, %c0_16] : memref<640x128xbf16, #tpu.memory_space<vmem>>, vector<32x96xbf16>
    %c32 = arith.constant 32 : index
    %c0_17 = arith.constant 0 : index
    %41 = vector.load %arg3[%c32, %c0_17] : memref<640x128xbf16, #tpu.memory_space<vmem>>, vector<32x32xbf16>
    %c64 = arith.constant 64 : index
    %c0_18 = arith.constant 0 : index
    %42 = vector.load %arg3[%c64, %c0_18] : memref<640x128xbf16, #tpu.memory_space<vmem>>, vector<32x32xbf16>
    %c96 = arith.constant 96 : index
    %c0_19 = arith.constant 0 : index
    %43 = vector.load %arg3[%c96, %c0_19] : memref<640x128xbf16, #tpu.memory_space<vmem>>, vector<32x64xbf16>
    %c128 = arith.constant 128 : index
    %c0_20 = arith.constant 0 : index
    %44 = vector.load %arg3[%c128, %c0_20] : memref<640x128xbf16, #tpu.memory_space<vmem>>, vector<32x32xbf16>
    %c160 = arith.constant 160 : index
    %c0_21 = arith.constant 0 : index
    %45 = vector.load %arg3[%c160, %c0_21] : memref<640x128xbf16, #tpu.memory_space<vmem>>, vector<32x128xbf16>
    %c192 = arith.constant 192 : index
    %c0_22 = arith.constant 0 : index
    %46 = vector.load %arg3[%c192, %c0_22] : memref<640x128xbf16, #tpu.memory_space<vmem>>, vector<128x32xbf16>
    %c0_23 = arith.constant 0 : index
    %c0_24 = arith.constant 0 : index
    %47 = vector.load %arg2[%c0_23, %c0_24] : memref<112x128xf32, #tpu.memory_space<vmem>>, vector<1x96xf32>
    %c1 = arith.constant 1 : index
    %c0_25 = arith.constant 0 : index
    %48 = vector.load %arg2[%c1, %c0_25] : memref<112x128xf32, #tpu.memory_space<vmem>>, vector<1x32xf32>
    %c2 = arith.constant 2 : index
    %c0_26 = arith.constant 0 : index
    %49 = vector.load %arg2[%c2, %c0_26] : memref<112x128xf32, #tpu.memory_space<vmem>>, vector<1x32xf32>
    %c3 = arith.constant 3 : index
    %c0_27 = arith.constant 0 : index
    %50 = vector.load %arg2[%c3, %c0_27] : memref<112x128xf32, #tpu.memory_space<vmem>>, vector<1x64xf32>
    %c4 = arith.constant 4 : index
    %c0_28 = arith.constant 0 : index
    %51 = vector.load %arg2[%c4, %c0_28] : memref<112x128xf32, #tpu.memory_space<vmem>>, vector<1x32xf32>
    %c5 = arith.constant 5 : index
    %c0_29 = arith.constant 0 : index
    %52 = vector.load %arg2[%c5, %c0_29] : memref<112x128xf32, #tpu.memory_space<vmem>>, vector<1x128xf32>
    %c6 = arith.constant 6 : index
    %c0_30 = arith.constant 0 : index
    %53 = vector.load %arg2[%c6, %c0_30] : memref<112x128xf32, #tpu.memory_space<vmem>>, vector<1x32xf32>
    %cst_31 = arith.constant dense<0.000000e+00> : vector<16xf32>
    %54 = vector.multi_reduction <add>, %12, %cst_31 [1] : vector<16x32xf32> to vector<16xf32>
    %55 = vector.shape_cast %54 : vector<16xf32> to vector<16x1xf32>
    %cst_32 = arith.constant 3.200000e+01 : f32
    %56 = vector.broadcast %cst_32 : f32 to vector<16x1xf32>
    %57 = arith.divf %55, %56 : vector<16x1xf32>
    %58 = vector.broadcast %57 : vector<16x1xf32> to vector<16x32xf32>
    %59 = arith.subf %12, %58 : vector<16x32xf32>
    %60 = vector.broadcast %57 : vector<16x1xf32> to vector<16x32xf32>
    %61 = arith.subf %12, %60 : vector<16x32xf32>
    %62 = arith.mulf %59, %61 : vector<16x32xf32>
    %cst_33 = arith.constant dense<0.000000e+00> : vector<16xf32>
    %63 = vector.multi_reduction <add>, %62, %cst_33 [1] : vector<16x32xf32> to vector<16xf32>
    %64 = vector.shape_cast %63 : vector<16xf32> to vector<16x1xf32>
    %cst_34 = arith.constant 3.200000e+01 : f32
    %65 = vector.broadcast %cst_34 : f32 to vector<16x1xf32>
    %66 = arith.divf %64, %65 : vector<16x1xf32>
    %67 = vector.broadcast %57 : vector<16x1xf32> to vector<16x32xf32>
    %68 = arith.subf %12, %67 : vector<16x32xf32>
    %cst_35 = arith.constant 9.99999974E-6 : f32
    %69 = vector.broadcast %cst_35 : f32 to vector<16x1xf32>
    %70 = arith.addf %66, %69 : vector<16x1xf32>
    %71 = math.rsqrt %70 : vector<16x1xf32>
    %72 = vector.broadcast %71 : vector<16x1xf32> to vector<16x32xf32>
    %73 = arith.mulf %68, %72 : vector<16x32xf32>
    %74 = arith.truncf %73 : vector<16x32xf32> to vector<16x32xbf16>
    %cst_36 = arith.constant dense<0.000000e+00> : vector<16x96xf32>
    %75 = tpu.matmul %74, %40, %cst_36 {dimension_numbers = #tpu.dot_dimension_numbers<[1], [0], [0], [1], [0, 0, 1, 1], [], []>} : vector<16x32xbf16>, vector<32x96xbf16>, vector<16x96xf32> -> vector<16x96xf32>
    %76 = vector.broadcast %47 : vector<1x96xf32> to vector<16x96xf32>
    %77 = arith.addf %75, %76 : vector<16x96xf32>
    %78 = vector.extract_strided_slice %77 {offsets = [0, 0], sizes = [16, 32], strides = [1, 1]} : vector<16x96xf32> to vector<16x32xf32>
    %79 = vector.extract_strided_slice %77 {offsets = [0, 32], sizes = [16, 32], strides = [1, 1]} : vector<16x96xf32> to vector<16x32xf32>
    %80 = vector.extract_strided_slice %77 {offsets = [0, 64], sizes = [16, 32], strides = [1, 1]} : vector<16x96xf32> to vector<16x32xf32>
    %81 = tpu.transpose %79, [1, 0] : vector<16x32xf32> -> vector<32x16xf32>
    %82 = arith.truncf %81 : vector<32x16xf32> to vector<32x16xbf16>
    %83 = arith.truncf %78 : vector<16x32xf32> to vector<16x32xbf16>
    %84 = arith.truncf %80 : vector<16x32xf32> to vector<16x32xbf16>
    %cst_37 = arith.constant 0.000000e+00 : f32
    %85 = vector.broadcast %cst_37 : f32 to vector<16x32xf32>
    %86 = vector.extract_strided_slice %83 {offsets = [0, 0], sizes = [16, 8], strides = [1, 1]} : vector<16x32xbf16> to vector<16x8xbf16>
    %87 = vector.extract_strided_slice %82 {offsets = [0, 0], sizes = [8, 16], strides = [1, 1]} : vector<32x16xbf16> to vector<8x16xbf16>
    %cst_38 = arith.constant dense<0.000000e+00> : vector<16x16xf32>
    %88 = tpu.matmul %86, %87, %cst_38 {dimension_numbers = #tpu.dot_dimension_numbers<[1], [0], [0], [1], [0, 0, 1, 1], [], []>} : vector<16x8xbf16>, vector<8x16xbf16>, vector<16x16xf32> -> vector<16x16xf32>
    %89 = arith.addf %88, %28 : vector<16x16xf32>
    %cst_39 = arith.constant dense<0xFF800000> : vector<16xf32>
    %90 = vector.multi_reduction <maximumf>, %89, %cst_39 [1] : vector<16x16xf32> to vector<16xf32>
    %91 = vector.shape_cast %90 : vector<16xf32> to vector<16x1xf32>
    %92 = vector.broadcast %91 : vector<16x1xf32> to vector<16x16xf32>
    %93 = arith.subf %89, %92 : vector<16x16xf32>
    %94 = math.exp %93 : vector<16x16xf32>
    %cst_40 = arith.constant dense<0.000000e+00> : vector<16xf32>
    %95 = vector.multi_reduction <add>, %94, %cst_40 [1] : vector<16x16xf32> to vector<16xf32>
    %96 = vector.shape_cast %95 : vector<16xf32> to vector<16x1xf32>
    %97 = tpu.reciprocal %96 {approx = true} : vector<16x1xf32> -> vector<16x1xf32>
    %98 = vector.broadcast %97 : vector<16x1xf32> to vector<16x16xf32>
    %99 = arith.mulf %94, %98 : vector<16x16xf32>
    %100 = arith.truncf %99 : vector<16x16xf32> to vector<16x16xbf16>
    %101 = vector.extract_strided_slice %84 {offsets = [0, 0], sizes = [16, 8], strides = [1, 1]} : vector<16x32xbf16> to vector<16x8xbf16>
    %cst_41 = arith.constant dense<0.000000e+00> : vector<16x8xf32>
    %102 = tpu.matmul %100, %101, %cst_41 {dimension_numbers = #tpu.dot_dimension_numbers<[1], [0], [0], [1], [0, 0, 1, 1], [], []>} : vector<16x16xbf16>, vector<16x8xbf16>, vector<16x8xf32> -> vector<16x8xf32>
    %103 = arith.truncf %102 : vector<16x8xf32> to vector<16x8xbf16>
    %104 = vector.extract_strided_slice %41 {offsets = [0, 0], sizes = [8, 32], strides = [1, 1]} : vector<32x32xbf16> to vector<8x32xbf16>
    %cst_42 = arith.constant dense<0.000000e+00> : vector<16x32xf32>
    %105 = tpu.matmul %103, %104, %cst_42 {dimension_numbers = #tpu.dot_dimension_numbers<[1], [0], [0], [1], [0, 0, 1, 1], [], []>} : vector<16x8xbf16>, vector<8x32xbf16>, vector<16x32xf32> -> vector<16x32xf32>
    %106 = arith.addf %85, %105 : vector<16x32xf32>
    %107 = vector.extract_strided_slice %83 {offsets = [0, 8], sizes = [16, 8], strides = [1, 1]} : vector<16x32xbf16> to vector<16x8xbf16>
    %108 = vector.extract_strided_slice %82 {offsets = [8, 0], sizes = [8, 16], strides = [1, 1]} : vector<32x16xbf16> to vector<8x16xbf16>
    %cst_43 = arith.constant dense<0.000000e+00> : vector<16x16xf32>
    %109 = tpu.matmul %107, %108, %cst_43 {dimension_numbers = #tpu.dot_dimension_numbers<[1], [0], [0], [1], [0, 0, 1, 1], [], []>} : vector<16x8xbf16>, vector<8x16xbf16>, vector<16x16xf32> -> vector<16x16xf32>
    %110 = arith.addf %109, %28 : vector<16x16xf32>
    %cst_44 = arith.constant dense<0xFF800000> : vector<16xf32>
    %111 = vector.multi_reduction <maximumf>, %110, %cst_44 [1] : vector<16x16xf32> to vector<16xf32>
    %112 = vector.shape_cast %111 : vector<16xf32> to vector<16x1xf32>
    %113 = vector.broadcast %112 : vector<16x1xf32> to vector<16x16xf32>
    %114 = arith.subf %110, %113 : vector<16x16xf32>
    %115 = math.exp %114 : vector<16x16xf32>
    %cst_45 = arith.constant dense<0.000000e+00> : vector<16xf32>
    %116 = vector.multi_reduction <add>, %115, %cst_45 [1] : vector<16x16xf32> to vector<16xf32>
    %117 = vector.shape_cast %116 : vector<16xf32> to vector<16x1xf32>
    %118 = tpu.reciprocal %117 {approx = true} : vector<16x1xf32> -> vector<16x1xf32>
    %119 = vector.broadcast %118 : vector<16x1xf32> to vector<16x16xf32>
    %120 = arith.mulf %115, %119 : vector<16x16xf32>
    %121 = arith.truncf %120 : vector<16x16xf32> to vector<16x16xbf16>
    %122 = vector.extract_strided_slice %84 {offsets = [0, 8], sizes = [16, 8], strides = [1, 1]} : vector<16x32xbf16> to vector<16x8xbf16>
    %cst_46 = arith.constant dense<0.000000e+00> : vector<16x8xf32>
    %123 = tpu.matmul %121, %122, %cst_46 {dimension_numbers = #tpu.dot_dimension_numbers<[1], [0], [0], [1], [0, 0, 1, 1], [], []>} : vector<16x16xbf16>, vector<16x8xbf16>, vector<16x8xf32> -> vector<16x8xf32>
    %124 = arith.truncf %123 : vector<16x8xf32> to vector<16x8xbf16>
    %125 = vector.extract_strided_slice %41 {offsets = [8, 0], sizes = [8, 32], strides = [1, 1]} : vector<32x32xbf16> to vector<8x32xbf16>
    %cst_47 = arith.constant dense<0.000000e+00> : vector<16x32xf32>
    %126 = tpu.matmul %124, %125, %cst_47 {dimension_numbers = #tpu.dot_dimension_numbers<[1], [0], [0], [1], [0, 0, 1, 1], [], []>} : vector<16x8xbf16>, vector<8x32xbf16>, vector<16x32xf32> -> vector<16x32xf32>
    %127 = arith.addf %106, %126 : vector<16x32xf32>
    %128 = vector.extract_strided_slice %83 {offsets = [0, 16], sizes = [16, 8], strides = [1, 1]} : vector<16x32xbf16> to vector<16x8xbf16>
    %129 = vector.extract_strided_slice %82 {offsets = [16, 0], sizes = [8, 16], strides = [1, 1]} : vector<32x16xbf16> to vector<8x16xbf16>
    %cst_48 = arith.constant dense<0.000000e+00> : vector<16x16xf32>
    %130 = tpu.matmul %128, %129, %cst_48 {dimension_numbers = #tpu.dot_dimension_numbers<[1], [0], [0], [1], [0, 0, 1, 1], [], []>} : vector<16x8xbf16>, vector<8x16xbf16>, vector<16x16xf32> -> vector<16x16xf32>
    %131 = arith.addf %130, %28 : vector<16x16xf32>
    %cst_49 = arith.constant dense<0xFF800000> : vector<16xf32>
    %132 = vector.multi_reduction <maximumf>, %131, %cst_49 [1] : vector<16x16xf32> to vector<16xf32>
    %133 = vector.shape_cast %132 : vector<16xf32> to vector<16x1xf32>
    %134 = vector.broadcast %133 : vector<16x1xf32> to vector<16x16xf32>
    %135 = arith.subf %131, %134 : vector<16x16xf32>
    %136 = math.exp %135 : vector<16x16xf32>
    %cst_50 = arith.constant dense<0.000000e+00> : vector<16xf32>
    %137 = vector.multi_reduction <add>, %136, %cst_50 [1] : vector<16x16xf32> to vector<16xf32>
    %138 = vector.shape_cast %137 : vector<16xf32> to vector<16x1xf32>
    %139 = tpu.reciprocal %138 {approx = true} : vector<16x1xf32> -> vector<16x1xf32>
    %140 = vector.broadcast %139 : vector<16x1xf32> to vector<16x16xf32>
    %141 = arith.mulf %136, %140 : vector<16x16xf32>
    %142 = arith.truncf %141 : vector<16x16xf32> to vector<16x16xbf16>
    %143 = vector.extract_strided_slice %84 {offsets = [0, 16], sizes = [16, 8], strides = [1, 1]} : vector<16x32xbf16> to vector<16x8xbf16>
    %cst_51 = arith.constant dense<0.000000e+00> : vector<16x8xf32>
    %144 = tpu.matmul %142, %143, %cst_51 {dimension_numbers = #tpu.dot_dimension_numbers<[1], [0], [0], [1], [0, 0, 1, 1], [], []>} : vector<16x16xbf16>, vector<16x8xbf16>, vector<16x8xf32> -> vector<16x8xf32>
    %145 = arith.truncf %144 : vector<16x8xf32> to vector<16x8xbf16>
    %146 = vector.extract_strided_slice %41 {offsets = [16, 0], sizes = [8, 32], strides = [1, 1]} : vector<32x32xbf16> to vector<8x32xbf16>
    %cst_52 = arith.constant dense<0.000000e+00> : vector<16x32xf32>
    %147 = tpu.matmul %145, %146, %cst_52 {dimension_numbers = #tpu.dot_dimension_numbers<[1], [0], [0], [1], [0, 0, 1, 1], [], []>} : vector<16x8xbf16>, vector<8x32xbf16>, vector<16x32xf32> -> vector<16x32xf32>
    %148 = arith.addf %127, %147 : vector<16x32xf32>
    %149 = vector.extract_strided_slice %83 {offsets = [0, 24], sizes = [16, 8], strides = [1, 1]} : vector<16x32xbf16> to vector<16x8xbf16>
    %150 = vector.extract_strided_slice %82 {offsets = [24, 0], sizes = [8, 16], strides = [1, 1]} : vector<32x16xbf16> to vector<8x16xbf16>
    %cst_53 = arith.constant dense<0.000000e+00> : vector<16x16xf32>
    %151 = tpu.matmul %149, %150, %cst_53 {dimension_numbers = #tpu.dot_dimension_numbers<[1], [0], [0], [1], [0, 0, 1, 1], [], []>} : vector<16x8xbf16>, vector<8x16xbf16>, vector<16x16xf32> -> vector<16x16xf32>
    %152 = arith.addf %151, %28 : vector<16x16xf32>
    %cst_54 = arith.constant dense<0xFF800000> : vector<16xf32>
    %153 = vector.multi_reduction <maximumf>, %152, %cst_54 [1] : vector<16x16xf32> to vector<16xf32>
    %154 = vector.shape_cast %153 : vector<16xf32> to vector<16x1xf32>
    %155 = vector.broadcast %154 : vector<16x1xf32> to vector<16x16xf32>
    %156 = arith.subf %152, %155 : vector<16x16xf32>
    %157 = math.exp %156 : vector<16x16xf32>
    %cst_55 = arith.constant dense<0.000000e+00> : vector<16xf32>
    %158 = vector.multi_reduction <add>, %157, %cst_55 [1] : vector<16x16xf32> to vector<16xf32>
    %159 = vector.shape_cast %158 : vector<16xf32> to vector<16x1xf32>
    %160 = tpu.reciprocal %159 {approx = true} : vector<16x1xf32> -> vector<16x1xf32>
    %161 = vector.broadcast %160 : vector<16x1xf32> to vector<16x16xf32>
    %162 = arith.mulf %157, %161 : vector<16x16xf32>
    %163 = arith.truncf %162 : vector<16x16xf32> to vector<16x16xbf16>
    %164 = vector.extract_strided_slice %84 {offsets = [0, 24], sizes = [16, 8], strides = [1, 1]} : vector<16x32xbf16> to vector<16x8xbf16>
    %cst_56 = arith.constant dense<0.000000e+00> : vector<16x8xf32>
    %165 = tpu.matmul %163, %164, %cst_56 {dimension_numbers = #tpu.dot_dimension_numbers<[1], [0], [0], [1], [0, 0, 1, 1], [], []>} : vector<16x16xbf16>, vector<16x8xbf16>, vector<16x8xf32> -> vector<16x8xf32>
    %166 = arith.truncf %165 : vector<16x8xf32> to vector<16x8xbf16>
    %167 = vector.extract_strided_slice %41 {offsets = [24, 0], sizes = [8, 32], strides = [1, 1]} : vector<32x32xbf16> to vector<8x32xbf16>
    %cst_57 = arith.constant dense<0.000000e+00> : vector<16x32xf32>
    %168 = tpu.matmul %166, %167, %cst_57 {dimension_numbers = #tpu.dot_dimension_numbers<[1], [0], [0], [1], [0, 0, 1, 1], [], []>} : vector<16x8xbf16>, vector<8x32xbf16>, vector<16x32xf32> -> vector<16x32xf32>
    %169 = arith.addf %148, %168 : vector<16x32xf32>
    %170 = arith.addf %12, %169 : vector<16x32xf32>
    %171 = vector.broadcast %48 : vector<1x32xf32> to vector<16x32xf32>
    %172 = arith.addf %170, %171 : vector<16x32xf32>
    %cst_58 = arith.constant dense<0.000000e+00> : vector<16xf32>
    %173 = vector.multi_reduction <add>, %172, %cst_58 [1] : vector<16x32xf32> to vector<16xf32>
    %174 = vector.shape_cast %173 : vector<16xf32> to vector<16x1xf32>
    %cst_59 = arith.constant 3.200000e+01 : f32
    %175 = vector.broadcast %cst_59 : f32 to vector<16x1xf32>
    %176 = arith.divf %174, %175 : vector<16x1xf32>
    %177 = vector.broadcast %176 : vector<16x1xf32> to vector<16x32xf32>
    %178 = arith.subf %172, %177 : vector<16x32xf32>
    %179 = vector.broadcast %176 : vector<16x1xf32> to vector<16x32xf32>
    %180 = arith.subf %172, %179 : vector<16x32xf32>
    %181 = arith.mulf %178, %180 : vector<16x32xf32>
    %cst_60 = arith.constant dense<0.000000e+00> : vector<16xf32>
    %182 = vector.multi_reduction <add>, %181, %cst_60 [1] : vector<16x32xf32> to vector<16xf32>
    %183 = vector.shape_cast %182 : vector<16xf32> to vector<16x1xf32>
    %cst_61 = arith.constant 3.200000e+01 : f32
    %184 = vector.broadcast %cst_61 : f32 to vector<16x1xf32>
    %185 = arith.divf %183, %184 : vector<16x1xf32>
    %186 = vector.broadcast %176 : vector<16x1xf32> to vector<16x32xf32>
    %187 = arith.subf %172, %186 : vector<16x32xf32>
    %cst_62 = arith.constant 9.99999974E-6 : f32
    %188 = vector.broadcast %cst_62 : f32 to vector<16x1xf32>
    %189 = arith.addf %185, %188 : vector<16x1xf32>
    %190 = math.rsqrt %189 : vector<16x1xf32>
    %191 = vector.broadcast %190 : vector<16x1xf32> to vector<16x32xf32>
    %192 = arith.mulf %187, %191 : vector<16x32xf32>
    %193 = arith.truncf %192 : vector<16x32xf32> to vector<16x32xbf16>
    %cst_63 = arith.constant dense<0.000000e+00> : vector<16x32xf32>
    %194 = tpu.matmul %193, %42, %cst_63 {dimension_numbers = #tpu.dot_dimension_numbers<[1], [0], [0], [1], [0, 0, 1, 1], [], []>} : vector<16x32xbf16>, vector<32x32xbf16>, vector<16x32xf32> -> vector<16x32xf32>
    %195 = vector.broadcast %49 : vector<1x32xf32> to vector<16x32xf32>
    %196 = arith.addf %194, %195 : vector<16x32xf32>
    %cst_64 = arith.constant dense<0.000000e+00> : vector<32x64xf32>
    %197 = tpu.matmul %39, %43, %cst_64 {dimension_numbers = #tpu.dot_dimension_numbers<[1], [0], [0], [1], [0, 0, 1, 1], [], []>} : vector<32x32xbf16>, vector<32x64xbf16>, vector<32x64xf32> -> vector<32x64xf32>
    %198 = vector.broadcast %50 : vector<1x64xf32> to vector<32x64xf32>
    %199 = arith.addf %197, %198 : vector<32x64xf32>
    %200 = vector.extract_strided_slice %199 {offsets = [0, 0], sizes = [32, 32], strides = [1, 1]} : vector<32x64xf32> to vector<32x32xf32>
    %201 = vector.extract_strided_slice %199 {offsets = [0, 32], sizes = [32, 32], strides = [1, 1]} : vector<32x64xf32> to vector<32x32xf32>
    %202 = tpu.transpose %200, [1, 0] : vector<32x32xf32> -> vector<32x32xf32>
    %203 = arith.truncf %202 : vector<32x32xf32> to vector<32x32xbf16>
    %204 = arith.truncf %196 : vector<16x32xf32> to vector<16x32xbf16>
    %205 = arith.truncf %201 : vector<32x32xf32> to vector<32x32xbf16>
    %cst_65 = arith.constant 0.000000e+00 : f32
    %206 = vector.broadcast %cst_65 : f32 to vector<16x32xf32>
    %207 = vector.extract_strided_slice %204 {offsets = [0, 0], sizes = [16, 8], strides = [1, 1]} : vector<16x32xbf16> to vector<16x8xbf16>
    %208 = vector.extract_strided_slice %203 {offsets = [0, 0], sizes = [8, 32], strides = [1, 1]} : vector<32x32xbf16> to vector<8x32xbf16>
    %cst_66 = arith.constant dense<0.000000e+00> : vector<16x32xf32>
    %209 = tpu.matmul %207, %208, %cst_66 {dimension_numbers = #tpu.dot_dimension_numbers<[1], [0], [0], [1], [0, 0, 1, 1], [], []>} : vector<16x8xbf16>, vector<8x32xbf16>, vector<16x32xf32> -> vector<16x32xf32>
    %210 = arith.addf %209, %38 : vector<16x32xf32>
    %cst_67 = arith.constant dense<0xFF800000> : vector<16xf32>
    %211 = vector.multi_reduction <maximumf>, %210, %cst_67 [1] : vector<16x32xf32> to vector<16xf32>
    %212 = vector.shape_cast %211 : vector<16xf32> to vector<16x1xf32>
    %213 = vector.broadcast %212 : vector<16x1xf32> to vector<16x32xf32>
    %214 = arith.subf %210, %213 : vector<16x32xf32>
    %215 = math.exp %214 : vector<16x32xf32>
    %cst_68 = arith.constant dense<0.000000e+00> : vector<16xf32>
    %216 = vector.multi_reduction <add>, %215, %cst_68 [1] : vector<16x32xf32> to vector<16xf32>
    %217 = vector.shape_cast %216 : vector<16xf32> to vector<16x1xf32>
    %218 = tpu.reciprocal %217 {approx = true} : vector<16x1xf32> -> vector<16x1xf32>
    %219 = vector.broadcast %218 : vector<16x1xf32> to vector<16x32xf32>
    %220 = arith.mulf %215, %219 : vector<16x32xf32>
    %221 = arith.truncf %220 : vector<16x32xf32> to vector<16x32xbf16>
    %222 = vector.extract_strided_slice %205 {offsets = [0, 0], sizes = [32, 8], strides = [1, 1]} : vector<32x32xbf16> to vector<32x8xbf16>
    %cst_69 = arith.constant dense<0.000000e+00> : vector<16x8xf32>
    %223 = tpu.matmul %221, %222, %cst_69 {dimension_numbers = #tpu.dot_dimension_numbers<[1], [0], [0], [1], [0, 0, 1, 1], [], []>} : vector<16x32xbf16>, vector<32x8xbf16>, vector<16x8xf32> -> vector<16x8xf32>
    %224 = arith.truncf %223 : vector<16x8xf32> to vector<16x8xbf16>
    %225 = vector.extract_strided_slice %44 {offsets = [0, 0], sizes = [8, 32], strides = [1, 1]} : vector<32x32xbf16> to vector<8x32xbf16>
    %cst_70 = arith.constant dense<0.000000e+00> : vector<16x32xf32>
    %226 = tpu.matmul %224, %225, %cst_70 {dimension_numbers = #tpu.dot_dimension_numbers<[1], [0], [0], [1], [0, 0, 1, 1], [], []>} : vector<16x8xbf16>, vector<8x32xbf16>, vector<16x32xf32> -> vector<16x32xf32>
    %227 = arith.addf %206, %226 : vector<16x32xf32>
    %228 = vector.extract_strided_slice %204 {offsets = [0, 8], sizes = [16, 8], strides = [1, 1]} : vector<16x32xbf16> to vector<16x8xbf16>
    %229 = vector.extract_strided_slice %203 {offsets = [8, 0], sizes = [8, 32], strides = [1, 1]} : vector<32x32xbf16> to vector<8x32xbf16>
    %cst_71 = arith.constant dense<0.000000e+00> : vector<16x32xf32>
    %230 = tpu.matmul %228, %229, %cst_71 {dimension_numbers = #tpu.dot_dimension_numbers<[1], [0], [0], [1], [0, 0, 1, 1], [], []>} : vector<16x8xbf16>, vector<8x32xbf16>, vector<16x32xf32> -> vector<16x32xf32>
    %231 = arith.addf %230, %38 : vector<16x32xf32>
    %cst_72 = arith.constant dense<0xFF800000> : vector<16xf32>
    %232 = vector.multi_reduction <maximumf>, %231, %cst_72 [1] : vector<16x32xf32> to vector<16xf32>
    %233 = vector.shape_cast %232 : vector<16xf32> to vector<16x1xf32>
    %234 = vector.broadcast %233 : vector<16x1xf32> to vector<16x32xf32>
    %235 = arith.subf %231, %234 : vector<16x32xf32>
    %236 = math.exp %235 : vector<16x32xf32>
    %cst_73 = arith.constant dense<0.000000e+00> : vector<16xf32>
    %237 = vector.multi_reduction <add>, %236, %cst_73 [1] : vector<16x32xf32> to vector<16xf32>
    %238 = vector.shape_cast %237 : vector<16xf32> to vector<16x1xf32>
    %239 = tpu.reciprocal %238 {approx = true} : vector<16x1xf32> -> vector<16x1xf32>
    %240 = vector.broadcast %239 : vector<16x1xf32> to vector<16x32xf32>
    %241 = arith.mulf %236, %240 : vector<16x32xf32>
    %242 = arith.truncf %241 : vector<16x32xf32> to vector<16x32xbf16>
    %243 = vector.extract_strided_slice %205 {offsets = [0, 8], sizes = [32, 8], strides = [1, 1]} : vector<32x32xbf16> to vector<32x8xbf16>
    %cst_74 = arith.constant dense<0.000000e+00> : vector<16x8xf32>
    %244 = tpu.matmul %242, %243, %cst_74 {dimension_numbers = #tpu.dot_dimension_numbers<[1], [0], [0], [1], [0, 0, 1, 1], [], []>} : vector<16x32xbf16>, vector<32x8xbf16>, vector<16x8xf32> -> vector<16x8xf32>
    %245 = arith.truncf %244 : vector<16x8xf32> to vector<16x8xbf16>
    %246 = vector.extract_strided_slice %44 {offsets = [8, 0], sizes = [8, 32], strides = [1, 1]} : vector<32x32xbf16> to vector<8x32xbf16>
    %cst_75 = arith.constant dense<0.000000e+00> : vector<16x32xf32>
    %247 = tpu.matmul %245, %246, %cst_75 {dimension_numbers = #tpu.dot_dimension_numbers<[1], [0], [0], [1], [0, 0, 1, 1], [], []>} : vector<16x8xbf16>, vector<8x32xbf16>, vector<16x32xf32> -> vector<16x32xf32>
    %248 = arith.addf %227, %247 : vector<16x32xf32>
    %249 = vector.extract_strided_slice %204 {offsets = [0, 16], sizes = [16, 8], strides = [1, 1]} : vector<16x32xbf16> to vector<16x8xbf16>
    %250 = vector.extract_strided_slice %203 {offsets = [16, 0], sizes = [8, 32], strides = [1, 1]} : vector<32x32xbf16> to vector<8x32xbf16>
    %cst_76 = arith.constant dense<0.000000e+00> : vector<16x32xf32>
    %251 = tpu.matmul %249, %250, %cst_76 {dimension_numbers = #tpu.dot_dimension_numbers<[1], [0], [0], [1], [0, 0, 1, 1], [], []>} : vector<16x8xbf16>, vector<8x32xbf16>, vector<16x32xf32> -> vector<16x32xf32>
    %252 = arith.addf %251, %38 : vector<16x32xf32>
    %cst_77 = arith.constant dense<0xFF800000> : vector<16xf32>
    %253 = vector.multi_reduction <maximumf>, %252, %cst_77 [1] : vector<16x32xf32> to vector<16xf32>
    %254 = vector.shape_cast %253 : vector<16xf32> to vector<16x1xf32>
    %255 = vector.broadcast %254 : vector<16x1xf32> to vector<16x32xf32>
    %256 = arith.subf %252, %255 : vector<16x32xf32>
    %257 = math.exp %256 : vector<16x32xf32>
    %cst_78 = arith.constant dense<0.000000e+00> : vector<16xf32>
    %258 = vector.multi_reduction <add>, %257, %cst_78 [1] : vector<16x32xf32> to vector<16xf32>
    %259 = vector.shape_cast %258 : vector<16xf32> to vector<16x1xf32>
    %260 = tpu.reciprocal %259 {approx = true} : vector<16x1xf32> -> vector<16x1xf32>
    %261 = vector.broadcast %260 : vector<16x1xf32> to vector<16x32xf32>
    %262 = arith.mulf %257, %261 : vector<16x32xf32>
    %263 = arith.truncf %262 : vector<16x32xf32> to vector<16x32xbf16>
    %264 = vector.extract_strided_slice %205 {offsets = [0, 16], sizes = [32, 8], strides = [1, 1]} : vector<32x32xbf16> to vector<32x8xbf16>
    %cst_79 = arith.constant dense<0.000000e+00> : vector<16x8xf32>
    %265 = tpu.matmul %263, %264, %cst_79 {dimension_numbers = #tpu.dot_dimension_numbers<[1], [0], [0], [1], [0, 0, 1, 1], [], []>} : vector<16x32xbf16>, vector<32x8xbf16>, vector<16x8xf32> -> vector<16x8xf32>
    %266 = arith.truncf %265 : vector<16x8xf32> to vector<16x8xbf16>
    %267 = vector.extract_strided_slice %44 {offsets = [16, 0], sizes = [8, 32], strides = [1, 1]} : vector<32x32xbf16> to vector<8x32xbf16>
    %cst_80 = arith.constant dense<0.000000e+00> : vector<16x32xf32>
    %268 = tpu.matmul %266, %267, %cst_80 {dimension_numbers = #tpu.dot_dimension_numbers<[1], [0], [0], [1], [0, 0, 1, 1], [], []>} : vector<16x8xbf16>, vector<8x32xbf16>, vector<16x32xf32> -> vector<16x32xf32>
    %269 = arith.addf %248, %268 : vector<16x32xf32>
    %270 = vector.extract_strided_slice %204 {offsets = [0, 24], sizes = [16, 8], strides = [1, 1]} : vector<16x32xbf16> to vector<16x8xbf16>
    %271 = vector.extract_strided_slice %203 {offsets = [24, 0], sizes = [8, 32], strides = [1, 1]} : vector<32x32xbf16> to vector<8x32xbf16>
    %cst_81 = arith.constant dense<0.000000e+00> : vector<16x32xf32>
    %272 = tpu.matmul %270, %271, %cst_81 {dimension_numbers = #tpu.dot_dimension_numbers<[1], [0], [0], [1], [0, 0, 1, 1], [], []>} : vector<16x8xbf16>, vector<8x32xbf16>, vector<16x32xf32> -> vector<16x32xf32>
    %273 = arith.addf %272, %38 : vector<16x32xf32>
    %cst_82 = arith.constant dense<0xFF800000> : vector<16xf32>
    %274 = vector.multi_reduction <maximumf>, %273, %cst_82 [1] : vector<16x32xf32> to vector<16xf32>
    %275 = vector.shape_cast %274 : vector<16xf32> to vector<16x1xf32>
    %276 = vector.broadcast %275 : vector<16x1xf32> to vector<16x32xf32>
    %277 = arith.subf %273, %276 : vector<16x32xf32>
    %278 = math.exp %277 : vector<16x32xf32>
    %cst_83 = arith.constant dense<0.000000e+00> : vector<16xf32>
    %279 = vector.multi_reduction <add>, %278, %cst_83 [1] : vector<16x32xf32> to vector<16xf32>
    %280 = vector.shape_cast %279 : vector<16xf32> to vector<16x1xf32>
    %281 = tpu.reciprocal %280 {approx = true} : vector<16x1xf32> -> vector<16x1xf32>
    %282 = vector.broadcast %281 : vector<16x1xf32> to vector<16x32xf32>
    %283 = arith.mulf %278, %282 : vector<16x32xf32>
    %284 = arith.truncf %283 : vector<16x32xf32> to vector<16x32xbf16>
    %285 = vector.extract_strided_slice %205 {offsets = [0, 24], sizes = [32, 8], strides = [1, 1]} : vector<32x32xbf16> to vector<32x8xbf16>
    %cst_84 = arith.constant dense<0.000000e+00> : vector<16x8xf32>
    %286 = tpu.matmul %284, %285, %cst_84 {dimension_numbers = #tpu.dot_dimension_numbers<[1], [0], [0], [1], [0, 0, 1, 1], [], []>} : vector<16x32xbf16>, vector<32x8xbf16>, vector<16x8xf32> -> vector<16x8xf32>
    %287 = arith.truncf %286 : vector<16x8xf32> to vector<16x8xbf16>
    %288 = vector.extract_strided_slice %44 {offsets = [24, 0], sizes = [8, 32], strides = [1, 1]} : vector<32x32xbf16> to vector<8x32xbf16>
    %cst_85 = arith.constant dense<0.000000e+00> : vector<16x32xf32>
    %289 = tpu.matmul %287, %288, %cst_85 {dimension_numbers = #tpu.dot_dimension_numbers<[1], [0], [0], [1], [0, 0, 1, 1], [], []>} : vector<16x8xbf16>, vector<8x32xbf16>, vector<16x32xf32> -> vector<16x32xf32>
    %290 = arith.addf %269, %289 : vector<16x32xf32>
    %291 = arith.addf %172, %290 : vector<16x32xf32>
    %292 = vector.broadcast %51 : vector<1x32xf32> to vector<16x32xf32>
    %293 = arith.addf %291, %292 : vector<16x32xf32>
    %cst_86 = arith.constant dense<0.000000e+00> : vector<16xf32>
    %294 = vector.multi_reduction <add>, %293, %cst_86 [1] : vector<16x32xf32> to vector<16xf32>
    %295 = vector.shape_cast %294 : vector<16xf32> to vector<16x1xf32>
    %cst_87 = arith.constant 3.200000e+01 : f32
    %296 = vector.broadcast %cst_87 : f32 to vector<16x1xf32>
    %297 = arith.divf %295, %296 : vector<16x1xf32>
    %298 = vector.broadcast %297 : vector<16x1xf32> to vector<16x32xf32>
    %299 = arith.subf %293, %298 : vector<16x32xf32>
    %300 = vector.broadcast %297 : vector<16x1xf32> to vector<16x32xf32>
    %301 = arith.subf %293, %300 : vector<16x32xf32>
    %302 = arith.mulf %299, %301 : vector<16x32xf32>
    %cst_88 = arith.constant dense<0.000000e+00> : vector<16xf32>
    %303 = vector.multi_reduction <add>, %302, %cst_88 [1] : vector<16x32xf32> to vector<16xf32>
    %304 = vector.shape_cast %303 : vector<16xf32> to vector<16x1xf32>
    %cst_89 = arith.constant 3.200000e+01 : f32
    %305 = vector.broadcast %cst_89 : f32 to vector<16x1xf32>
    %306 = arith.divf %304, %305 : vector<16x1xf32>
    %307 = vector.broadcast %297 : vector<16x1xf32> to vector<16x32xf32>
    %308 = arith.subf %293, %307 : vector<16x32xf32>
    %cst_90 = arith.constant 9.99999974E-6 : f32
    %309 = vector.broadcast %cst_90 : f32 to vector<16x1xf32>
    %310 = arith.addf %306, %309 : vector<16x1xf32>
    %311 = math.rsqrt %310 : vector<16x1xf32>
    %312 = vector.broadcast %311 : vector<16x1xf32> to vector<16x32xf32>
    %313 = arith.mulf %308, %312 : vector<16x32xf32>
    %314 = arith.truncf %313 : vector<16x32xf32> to vector<16x32xbf16>
    %cst_91 = arith.constant dense<0.000000e+00> : vector<16x128xf32>
    %315 = tpu.matmul %314, %45, %cst_91 {dimension_numbers = #tpu.dot_dimension_numbers<[1], [0], [0], [1], [0, 0, 1, 1], [], []>} : vector<16x32xbf16>, vector<32x128xbf16>, vector<16x128xf32> -> vector<16x128xf32>
    %316 = vector.broadcast %52 : vector<1x128xf32> to vector<16x128xf32>
    %317 = arith.addf %315, %316 : vector<16x128xf32>
    %318 = arith.mulf %317, %317 : vector<16x128xf32>
    %319 = arith.mulf %317, %318 : vector<16x128xf32>
    %cst_92 = arith.constant 4.471500e-02 : f32
    %320 = vector.broadcast %cst_92 : f32 to vector<16x128xf32>
    %321 = arith.mulf %320, %319 : vector<16x128xf32>
    %322 = arith.addf %317, %321 : vector<16x128xf32>
    %cst_93 = arith.constant 0.797884583 : f32
    %323 = vector.broadcast %cst_93 : f32 to vector<16x128xf32>
    %324 = arith.mulf %323, %322 : vector<16x128xf32>
    %325 = math.tanh %324 : vector<16x128xf32>
    %cst_94 = arith.constant 1.000000e+00 : f32
    %326 = vector.broadcast %cst_94 : f32 to vector<16x128xf32>
    %327 = arith.addf %326, %325 : vector<16x128xf32>
    %cst_95 = arith.constant 5.000000e-01 : f32
    %328 = vector.broadcast %cst_95 : f32 to vector<16x128xf32>
    %329 = arith.mulf %328, %327 : vector<16x128xf32>
    %330 = arith.mulf %317, %329 : vector<16x128xf32>
    %331 = arith.truncf %330 : vector<16x128xf32> to vector<16x128xbf16>
    %cst_96 = arith.constant dense<0.000000e+00> : vector<16x32xf32>
    %332 = tpu.matmul %331, %46, %cst_96 {dimension_numbers = #tpu.dot_dimension_numbers<[1], [0], [0], [1], [0, 0, 1, 1], [], []>} : vector<16x128xbf16>, vector<128x32xbf16>, vector<16x32xf32> -> vector<16x32xf32>
    %333 = arith.addf %293, %332 : vector<16x32xf32>
    %334 = vector.broadcast %53 : vector<1x32xf32> to vector<16x32xf32>
    %335 = arith.addf %333, %334 : vector<16x32xf32>
    %c320 = arith.constant 320 : index
    %c0_97 = arith.constant 0 : index
    %336 = vector.load %arg3[%c320, %c0_97] : memref<640x128xbf16, #tpu.memory_space<vmem>>, vector<32x96xbf16>
    %c352 = arith.constant 352 : index
    %c0_98 = arith.constant 0 : index
    %337 = vector.load %arg3[%c352, %c0_98] : memref<640x128xbf16, #tpu.memory_space<vmem>>, vector<32x32xbf16>
    %c384 = arith.constant 384 : index
    %c0_99 = arith.constant 0 : index
    %338 = vector.load %arg3[%c384, %c0_99] : memref<640x128xbf16, #tpu.memory_space<vmem>>, vector<32x32xbf16>
    %c416 = arith.constant 416 : index
    %c0_100 = arith.constant 0 : index
    %339 = vector.load %arg3[%c416, %c0_100] : memref<640x128xbf16, #tpu.memory_space<vmem>>, vector<32x64xbf16>
    %c448 = arith.constant 448 : index
    %c0_101 = arith.constant 0 : index
    %340 = vector.load %arg3[%c448, %c0_101] : memref<640x128xbf16, #tpu.memory_space<vmem>>, vector<32x32xbf16>
    %c480 = arith.constant 480 : index
    %c0_102 = arith.constant 0 : index
    %341 = vector.load %arg3[%c480, %c0_102] : memref<640x128xbf16, #tpu.memory_space<vmem>>, vector<32x128xbf16>
    %c512 = arith.constant 512 : index
    %c0_103 = arith.constant 0 : index
    %342 = vector.load %arg3[%c512, %c0_103] : memref<640x128xbf16, #tpu.memory_space<vmem>>, vector<128x32xbf16>
    %c7 = arith.constant 7 : index
    %c0_104 = arith.constant 0 : index
    %343 = vector.load %arg2[%c7, %c0_104] : memref<112x128xf32, #tpu.memory_space<vmem>>, vector<1x96xf32>
    %c8 = arith.constant 8 : index
    %c0_105 = arith.constant 0 : index
    %344 = vector.load %arg2[%c8, %c0_105] : memref<112x128xf32, #tpu.memory_space<vmem>>, vector<1x32xf32>
    %c9 = arith.constant 9 : index
    %c0_106 = arith.constant 0 : index
    %345 = vector.load %arg2[%c9, %c0_106] : memref<112x128xf32, #tpu.memory_space<vmem>>, vector<1x32xf32>
    %c10 = arith.constant 10 : index
    %c0_107 = arith.constant 0 : index
    %346 = vector.load %arg2[%c10, %c0_107] : memref<112x128xf32, #tpu.memory_space<vmem>>, vector<1x64xf32>
    %c11 = arith.constant 11 : index
    %c0_108 = arith.constant 0 : index
    %347 = vector.load %arg2[%c11, %c0_108] : memref<112x128xf32, #tpu.memory_space<vmem>>, vector<1x32xf32>
    %c12 = arith.constant 12 : index
    %c0_109 = arith.constant 0 : index
    %348 = vector.load %arg2[%c12, %c0_109] : memref<112x128xf32, #tpu.memory_space<vmem>>, vector<1x128xf32>
    %c13 = arith.constant 13 : index
    %c0_110 = arith.constant 0 : index
    %349 = vector.load %arg2[%c13, %c0_110] : memref<112x128xf32, #tpu.memory_space<vmem>>, vector<1x32xf32>
    %cst_111 = arith.constant dense<0.000000e+00> : vector<16xf32>
    %350 = vector.multi_reduction <add>, %335, %cst_111 [1] : vector<16x32xf32> to vector<16xf32>
    %351 = vector.shape_cast %350 : vector<16xf32> to vector<16x1xf32>
    %cst_112 = arith.constant 3.200000e+01 : f32
    %352 = vector.broadcast %cst_112 : f32 to vector<16x1xf32>
    %353 = arith.divf %351, %352 : vector<16x1xf32>
    %354 = vector.broadcast %353 : vector<16x1xf32> to vector<16x32xf32>
    %355 = arith.subf %335, %354 : vector<16x32xf32>
    %356 = vector.broadcast %353 : vector<16x1xf32> to vector<16x32xf32>
    %357 = arith.subf %335, %356 : vector<16x32xf32>
    %358 = arith.mulf %355, %357 : vector<16x32xf32>
    %cst_113 = arith.constant dense<0.000000e+00> : vector<16xf32>
    %359 = vector.multi_reduction <add>, %358, %cst_113 [1] : vector<16x32xf32> to vector<16xf32>
    %360 = vector.shape_cast %359 : vector<16xf32> to vector<16x1xf32>
    %cst_114 = arith.constant 3.200000e+01 : f32
    %361 = vector.broadcast %cst_114 : f32 to vector<16x1xf32>
    %362 = arith.divf %360, %361 : vector<16x1xf32>
    %363 = vector.broadcast %353 : vector<16x1xf32> to vector<16x32xf32>
    %364 = arith.subf %335, %363 : vector<16x32xf32>
    %cst_115 = arith.constant 9.99999974E-6 : f32
    %365 = vector.broadcast %cst_115 : f32 to vector<16x1xf32>
    %366 = arith.addf %362, %365 : vector<16x1xf32>
    %367 = math.rsqrt %366 : vector<16x1xf32>
    %368 = vector.broadcast %367 : vector<16x1xf32> to vector<16x32xf32>
    %369 = arith.mulf %364, %368 : vector<16x32xf32>
    %370 = arith.truncf %369 : vector<16x32xf32> to vector<16x32xbf16>
    %cst_116 = arith.constant dense<0.000000e+00> : vector<16x96xf32>
    %371 = tpu.matmul %370, %336, %cst_116 {dimension_numbers = #tpu.dot_dimension_numbers<[1], [0], [0], [1], [0, 0, 1, 1], [], []>} : vector<16x32xbf16>, vector<32x96xbf16>, vector<16x96xf32> -> vector<16x96xf32>
    %372 = vector.broadcast %343 : vector<1x96xf32> to vector<16x96xf32>
    %373 = arith.addf %371, %372 : vector<16x96xf32>
    %374 = vector.extract_strided_slice %373 {offsets = [0, 0], sizes = [16, 32], strides = [1, 1]} : vector<16x96xf32> to vector<16x32xf32>
    %375 = vector.extract_strided_slice %373 {offsets = [0, 32], sizes = [16, 32], strides = [1, 1]} : vector<16x96xf32> to vector<16x32xf32>
    %376 = vector.extract_strided_slice %373 {offsets = [0, 64], sizes = [16, 32], strides = [1, 1]} : vector<16x96xf32> to vector<16x32xf32>
    %377 = tpu.transpose %375, [1, 0] : vector<16x32xf32> -> vector<32x16xf32>
    %378 = arith.truncf %377 : vector<32x16xf32> to vector<32x16xbf16>
    %379 = arith.truncf %374 : vector<16x32xf32> to vector<16x32xbf16>
    %380 = arith.truncf %376 : vector<16x32xf32> to vector<16x32xbf16>
    %cst_117 = arith.constant 0.000000e+00 : f32
    %381 = vector.broadcast %cst_117 : f32 to vector<16x32xf32>
    %382 = vector.extract_strided_slice %379 {offsets = [0, 0], sizes = [16, 8], strides = [1, 1]} : vector<16x32xbf16> to vector<16x8xbf16>
    %383 = vector.extract_strided_slice %378 {offsets = [0, 0], sizes = [8, 16], strides = [1, 1]} : vector<32x16xbf16> to vector<8x16xbf16>
    %cst_118 = arith.constant dense<0.000000e+00> : vector<16x16xf32>
    %384 = tpu.matmul %382, %383, %cst_118 {dimension_numbers = #tpu.dot_dimension_numbers<[1], [0], [0], [1], [0, 0, 1, 1], [], []>} : vector<16x8xbf16>, vector<8x16xbf16>, vector<16x16xf32> -> vector<16x16xf32>
    %385 = arith.addf %384, %28 : vector<16x16xf32>
    %cst_119 = arith.constant dense<0xFF800000> : vector<16xf32>
    %386 = vector.multi_reduction <maximumf>, %385, %cst_119 [1] : vector<16x16xf32> to vector<16xf32>
    %387 = vector.shape_cast %386 : vector<16xf32> to vector<16x1xf32>
    %388 = vector.broadcast %387 : vector<16x1xf32> to vector<16x16xf32>
    %389 = arith.subf %385, %388 : vector<16x16xf32>
    %390 = math.exp %389 : vector<16x16xf32>
    %cst_120 = arith.constant dense<0.000000e+00> : vector<16xf32>
    %391 = vector.multi_reduction <add>, %390, %cst_120 [1] : vector<16x16xf32> to vector<16xf32>
    %392 = vector.shape_cast %391 : vector<16xf32> to vector<16x1xf32>
    %393 = tpu.reciprocal %392 {approx = true} : vector<16x1xf32> -> vector<16x1xf32>
    %394 = vector.broadcast %393 : vector<16x1xf32> to vector<16x16xf32>
    %395 = arith.mulf %390, %394 : vector<16x16xf32>
    %396 = arith.truncf %395 : vector<16x16xf32> to vector<16x16xbf16>
    %397 = vector.extract_strided_slice %380 {offsets = [0, 0], sizes = [16, 8], strides = [1, 1]} : vector<16x32xbf16> to vector<16x8xbf16>
    %cst_121 = arith.constant dense<0.000000e+00> : vector<16x8xf32>
    %398 = tpu.matmul %396, %397, %cst_121 {dimension_numbers = #tpu.dot_dimension_numbers<[1], [0], [0], [1], [0, 0, 1, 1], [], []>} : vector<16x16xbf16>, vector<16x8xbf16>, vector<16x8xf32> -> vector<16x8xf32>
    %399 = arith.truncf %398 : vector<16x8xf32> to vector<16x8xbf16>
    %400 = vector.extract_strided_slice %337 {offsets = [0, 0], sizes = [8, 32], strides = [1, 1]} : vector<32x32xbf16> to vector<8x32xbf16>
    %cst_122 = arith.constant dense<0.000000e+00> : vector<16x32xf32>
    %401 = tpu.matmul %399, %400, %cst_122 {dimension_numbers = #tpu.dot_dimension_numbers<[1], [0], [0], [1], [0, 0, 1, 1], [], []>} : vector<16x8xbf16>, vector<8x32xbf16>, vector<16x32xf32> -> vector<16x32xf32>
    %402 = arith.addf %381, %401 : vector<16x32xf32>
    %403 = vector.extract_strided_slice %379 {offsets = [0, 8], sizes = [16, 8], strides = [1, 1]} : vector<16x32xbf16> to vector<16x8xbf16>
    %404 = vector.extract_strided_slice %378 {offsets = [8, 0], sizes = [8, 16], strides = [1, 1]} : vector<32x16xbf16> to vector<8x16xbf16>
    %cst_123 = arith.constant dense<0.000000e+00> : vector<16x16xf32>
    %405 = tpu.matmul %403, %404, %cst_123 {dimension_numbers = #tpu.dot_dimension_numbers<[1], [0], [0], [1], [0, 0, 1, 1], [], []>} : vector<16x8xbf16>, vector<8x16xbf16>, vector<16x16xf32> -> vector<16x16xf32>
    %406 = arith.addf %405, %28 : vector<16x16xf32>
    %cst_124 = arith.constant dense<0xFF800000> : vector<16xf32>
    %407 = vector.multi_reduction <maximumf>, %406, %cst_124 [1] : vector<16x16xf32> to vector<16xf32>
    %408 = vector.shape_cast %407 : vector<16xf32> to vector<16x1xf32>
    %409 = vector.broadcast %408 : vector<16x1xf32> to vector<16x16xf32>
    %410 = arith.subf %406, %409 : vector<16x16xf32>
    %411 = math.exp %410 : vector<16x16xf32>
    %cst_125 = arith.constant dense<0.000000e+00> : vector<16xf32>
    %412 = vector.multi_reduction <add>, %411, %cst_125 [1] : vector<16x16xf32> to vector<16xf32>
    %413 = vector.shape_cast %412 : vector<16xf32> to vector<16x1xf32>
    %414 = tpu.reciprocal %413 {approx = true} : vector<16x1xf32> -> vector<16x1xf32>
    %415 = vector.broadcast %414 : vector<16x1xf32> to vector<16x16xf32>
    %416 = arith.mulf %411, %415 : vector<16x16xf32>
    %417 = arith.truncf %416 : vector<16x16xf32> to vector<16x16xbf16>
    %418 = vector.extract_strided_slice %380 {offsets = [0, 8], sizes = [16, 8], strides = [1, 1]} : vector<16x32xbf16> to vector<16x8xbf16>
    %cst_126 = arith.constant dense<0.000000e+00> : vector<16x8xf32>
    %419 = tpu.matmul %417, %418, %cst_126 {dimension_numbers = #tpu.dot_dimension_numbers<[1], [0], [0], [1], [0, 0, 1, 1], [], []>} : vector<16x16xbf16>, vector<16x8xbf16>, vector<16x8xf32> -> vector<16x8xf32>
    %420 = arith.truncf %419 : vector<16x8xf32> to vector<16x8xbf16>
    %421 = vector.extract_strided_slice %337 {offsets = [8, 0], sizes = [8, 32], strides = [1, 1]} : vector<32x32xbf16> to vector<8x32xbf16>
    %cst_127 = arith.constant dense<0.000000e+00> : vector<16x32xf32>
    %422 = tpu.matmul %420, %421, %cst_127 {dimension_numbers = #tpu.dot_dimension_numbers<[1], [0], [0], [1], [0, 0, 1, 1], [], []>} : vector<16x8xbf16>, vector<8x32xbf16>, vector<16x32xf32> -> vector<16x32xf32>
    %423 = arith.addf %402, %422 : vector<16x32xf32>
    %424 = vector.extract_strided_slice %379 {offsets = [0, 16], sizes = [16, 8], strides = [1, 1]} : vector<16x32xbf16> to vector<16x8xbf16>
    %425 = vector.extract_strided_slice %378 {offsets = [16, 0], sizes = [8, 16], strides = [1, 1]} : vector<32x16xbf16> to vector<8x16xbf16>
    %cst_128 = arith.constant dense<0.000000e+00> : vector<16x16xf32>
    %426 = tpu.matmul %424, %425, %cst_128 {dimension_numbers = #tpu.dot_dimension_numbers<[1], [0], [0], [1], [0, 0, 1, 1], [], []>} : vector<16x8xbf16>, vector<8x16xbf16>, vector<16x16xf32> -> vector<16x16xf32>
    %427 = arith.addf %426, %28 : vector<16x16xf32>
    %cst_129 = arith.constant dense<0xFF800000> : vector<16xf32>
    %428 = vector.multi_reduction <maximumf>, %427, %cst_129 [1] : vector<16x16xf32> to vector<16xf32>
    %429 = vector.shape_cast %428 : vector<16xf32> to vector<16x1xf32>
    %430 = vector.broadcast %429 : vector<16x1xf32> to vector<16x16xf32>
    %431 = arith.subf %427, %430 : vector<16x16xf32>
    %432 = math.exp %431 : vector<16x16xf32>
    %cst_130 = arith.constant dense<0.000000e+00> : vector<16xf32>
    %433 = vector.multi_reduction <add>, %432, %cst_130 [1] : vector<16x16xf32> to vector<16xf32>
    %434 = vector.shape_cast %433 : vector<16xf32> to vector<16x1xf32>
    %435 = tpu.reciprocal %434 {approx = true} : vector<16x1xf32> -> vector<16x1xf32>
    %436 = vector.broadcast %435 : vector<16x1xf32> to vector<16x16xf32>
    %437 = arith.mulf %432, %436 : vector<16x16xf32>
    %438 = arith.truncf %437 : vector<16x16xf32> to vector<16x16xbf16>
    %439 = vector.extract_strided_slice %380 {offsets = [0, 16], sizes = [16, 8], strides = [1, 1]} : vector<16x32xbf16> to vector<16x8xbf16>
    %cst_131 = arith.constant dense<0.000000e+00> : vector<16x8xf32>
    %440 = tpu.matmul %438, %439, %cst_131 {dimension_numbers = #tpu.dot_dimension_numbers<[1], [0], [0], [1], [0, 0, 1, 1], [], []>} : vector<16x16xbf16>, vector<16x8xbf16>, vector<16x8xf32> -> vector<16x8xf32>
    %441 = arith.truncf %440 : vector<16x8xf32> to vector<16x8xbf16>
    %442 = vector.extract_strided_slice %337 {offsets = [16, 0], sizes = [8, 32], strides = [1, 1]} : vector<32x32xbf16> to vector<8x32xbf16>
    %cst_132 = arith.constant dense<0.000000e+00> : vector<16x32xf32>
    %443 = tpu.matmul %441, %442, %cst_132 {dimension_numbers = #tpu.dot_dimension_numbers<[1], [0], [0], [1], [0, 0, 1, 1], [], []>} : vector<16x8xbf16>, vector<8x32xbf16>, vector<16x32xf32> -> vector<16x32xf32>
    %444 = arith.addf %423, %443 : vector<16x32xf32>
    %445 = vector.extract_strided_slice %379 {offsets = [0, 24], sizes = [16, 8], strides = [1, 1]} : vector<16x32xbf16> to vector<16x8xbf16>
    %446 = vector.extract_strided_slice %378 {offsets = [24, 0], sizes = [8, 16], strides = [1, 1]} : vector<32x16xbf16> to vector<8x16xbf16>
    %cst_133 = arith.constant dense<0.000000e+00> : vector<16x16xf32>
    %447 = tpu.matmul %445, %446, %cst_133 {dimension_numbers = #tpu.dot_dimension_numbers<[1], [0], [0], [1], [0, 0, 1, 1], [], []>} : vector<16x8xbf16>, vector<8x16xbf16>, vector<16x16xf32> -> vector<16x16xf32>
    %448 = arith.addf %447, %28 : vector<16x16xf32>
    %cst_134 = arith.constant dense<0xFF800000> : vector<16xf32>
    %449 = vector.multi_reduction <maximumf>, %448, %cst_134 [1] : vector<16x16xf32> to vector<16xf32>
    %450 = vector.shape_cast %449 : vector<16xf32> to vector<16x1xf32>
    %451 = vector.broadcast %450 : vector<16x1xf32> to vector<16x16xf32>
    %452 = arith.subf %448, %451 : vector<16x16xf32>
    %453 = math.exp %452 : vector<16x16xf32>
    %cst_135 = arith.constant dense<0.000000e+00> : vector<16xf32>
    %454 = vector.multi_reduction <add>, %453, %cst_135 [1] : vector<16x16xf32> to vector<16xf32>
    %455 = vector.shape_cast %454 : vector<16xf32> to vector<16x1xf32>
    %456 = tpu.reciprocal %455 {approx = true} : vector<16x1xf32> -> vector<16x1xf32>
    %457 = vector.broadcast %456 : vector<16x1xf32> to vector<16x16xf32>
    %458 = arith.mulf %453, %457 : vector<16x16xf32>
    %459 = arith.truncf %458 : vector<16x16xf32> to vector<16x16xbf16>
    %460 = vector.extract_strided_slice %380 {offsets = [0, 24], sizes = [16, 8], strides = [1, 1]} : vector<16x32xbf16> to vector<16x8xbf16>
    %cst_136 = arith.constant dense<0.000000e+00> : vector<16x8xf32>
    %461 = tpu.matmul %459, %460, %cst_136 {dimension_numbers = #tpu.dot_dimension_numbers<[1], [0], [0], [1], [0, 0, 1, 1], [], []>} : vector<16x16xbf16>, vector<16x8xbf16>, vector<16x8xf32> -> vector<16x8xf32>
    %462 = arith.truncf %461 : vector<16x8xf32> to vector<16x8xbf16>
    %463 = vector.extract_strided_slice %337 {offsets = [24, 0], sizes = [8, 32], strides = [1, 1]} : vector<32x32xbf16> to vector<8x32xbf16>
    %cst_137 = arith.constant dense<0.000000e+00> : vector<16x32xf32>
    %464 = tpu.matmul %462, %463, %cst_137 {dimension_numbers = #tpu.dot_dimension_numbers<[1], [0], [0], [1], [0, 0, 1, 1], [], []>} : vector<16x8xbf16>, vector<8x32xbf16>, vector<16x32xf32> -> vector<16x32xf32>
    %465 = arith.addf %444, %464 : vector<16x32xf32>
    %466 = arith.addf %335, %465 : vector<16x32xf32>
    %467 = vector.broadcast %344 : vector<1x32xf32> to vector<16x32xf32>
    %468 = arith.addf %466, %467 : vector<16x32xf32>
    %cst_138 = arith.constant dense<0.000000e+00> : vector<16xf32>
    %469 = vector.multi_reduction <add>, %468, %cst_138 [1] : vector<16x32xf32> to vector<16xf32>
    %470 = vector.shape_cast %469 : vector<16xf32> to vector<16x1xf32>
    %cst_139 = arith.constant 3.200000e+01 : f32
    %471 = vector.broadcast %cst_139 : f32 to vector<16x1xf32>
    %472 = arith.divf %470, %471 : vector<16x1xf32>
    %473 = vector.broadcast %472 : vector<16x1xf32> to vector<16x32xf32>
    %474 = arith.subf %468, %473 : vector<16x32xf32>
    %475 = vector.broadcast %472 : vector<16x1xf32> to vector<16x32xf32>
    %476 = arith.subf %468, %475 : vector<16x32xf32>
    %477 = arith.mulf %474, %476 : vector<16x32xf32>
    %cst_140 = arith.constant dense<0.000000e+00> : vector<16xf32>
    %478 = vector.multi_reduction <add>, %477, %cst_140 [1] : vector<16x32xf32> to vector<16xf32>
    %479 = vector.shape_cast %478 : vector<16xf32> to vector<16x1xf32>
    %cst_141 = arith.constant 3.200000e+01 : f32
    %480 = vector.broadcast %cst_141 : f32 to vector<16x1xf32>
    %481 = arith.divf %479, %480 : vector<16x1xf32>
    %482 = vector.broadcast %472 : vector<16x1xf32> to vector<16x32xf32>
    %483 = arith.subf %468, %482 : vector<16x32xf32>
    %cst_142 = arith.constant 9.99999974E-6 : f32
    %484 = vector.broadcast %cst_142 : f32 to vector<16x1xf32>
    %485 = arith.addf %481, %484 : vector<16x1xf32>
    %486 = math.rsqrt %485 : vector<16x1xf32>
    %487 = vector.broadcast %486 : vector<16x1xf32> to vector<16x32xf32>
    %488 = arith.mulf %483, %487 : vector<16x32xf32>
    %489 = arith.truncf %488 : vector<16x32xf32> to vector<16x32xbf16>
    %cst_143 = arith.constant dense<0.000000e+00> : vector<16x32xf32>
    %490 = tpu.matmul %489, %338, %cst_143 {dimension_numbers = #tpu.dot_dimension_numbers<[1], [0], [0], [1], [0, 0, 1, 1], [], []>} : vector<16x32xbf16>, vector<32x32xbf16>, vector<16x32xf32> -> vector<16x32xf32>
    %491 = vector.broadcast %345 : vector<1x32xf32> to vector<16x32xf32>
    %492 = arith.addf %490, %491 : vector<16x32xf32>
    %cst_144 = arith.constant dense<0.000000e+00> : vector<32x64xf32>
    %493 = tpu.matmul %39, %339, %cst_144 {dimension_numbers = #tpu.dot_dimension_numbers<[1], [0], [0], [1], [0, 0, 1, 1], [], []>} : vector<32x32xbf16>, vector<32x64xbf16>, vector<32x64xf32> -> vector<32x64xf32>
    %494 = vector.broadcast %346 : vector<1x64xf32> to vector<32x64xf32>
    %495 = arith.addf %493, %494 : vector<32x64xf32>
    %496 = vector.extract_strided_slice %495 {offsets = [0, 0], sizes = [32, 32], strides = [1, 1]} : vector<32x64xf32> to vector<32x32xf32>
    %497 = vector.extract_strided_slice %495 {offsets = [0, 32], sizes = [32, 32], strides = [1, 1]} : vector<32x64xf32> to vector<32x32xf32>
    %498 = tpu.transpose %496, [1, 0] : vector<32x32xf32> -> vector<32x32xf32>
    %499 = arith.truncf %498 : vector<32x32xf32> to vector<32x32xbf16>
    %500 = arith.truncf %492 : vector<16x32xf32> to vector<16x32xbf16>
    %501 = arith.truncf %497 : vector<32x32xf32> to vector<32x32xbf16>
    %cst_145 = arith.constant 0.000000e+00 : f32
    %502 = vector.broadcast %cst_145 : f32 to vector<16x32xf32>
    %503 = vector.extract_strided_slice %500 {offsets = [0, 0], sizes = [16, 8], strides = [1, 1]} : vector<16x32xbf16> to vector<16x8xbf16>
    %504 = vector.extract_strided_slice %499 {offsets = [0, 0], sizes = [8, 32], strides = [1, 1]} : vector<32x32xbf16> to vector<8x32xbf16>
    %cst_146 = arith.constant dense<0.000000e+00> : vector<16x32xf32>
    %505 = tpu.matmul %503, %504, %cst_146 {dimension_numbers = #tpu.dot_dimension_numbers<[1], [0], [0], [1], [0, 0, 1, 1], [], []>} : vector<16x8xbf16>, vector<8x32xbf16>, vector<16x32xf32> -> vector<16x32xf32>
    %506 = arith.addf %505, %38 : vector<16x32xf32>
    %cst_147 = arith.constant dense<0xFF800000> : vector<16xf32>
    %507 = vector.multi_reduction <maximumf>, %506, %cst_147 [1] : vector<16x32xf32> to vector<16xf32>
    %508 = vector.shape_cast %507 : vector<16xf32> to vector<16x1xf32>
    %509 = vector.broadcast %508 : vector<16x1xf32> to vector<16x32xf32>
    %510 = arith.subf %506, %509 : vector<16x32xf32>
    %511 = math.exp %510 : vector<16x32xf32>
    %cst_148 = arith.constant dense<0.000000e+00> : vector<16xf32>
    %512 = vector.multi_reduction <add>, %511, %cst_148 [1] : vector<16x32xf32> to vector<16xf32>
    %513 = vector.shape_cast %512 : vector<16xf32> to vector<16x1xf32>
    %514 = tpu.reciprocal %513 {approx = true} : vector<16x1xf32> -> vector<16x1xf32>
    %515 = vector.broadcast %514 : vector<16x1xf32> to vector<16x32xf32>
    %516 = arith.mulf %511, %515 : vector<16x32xf32>
    %517 = arith.truncf %516 : vector<16x32xf32> to vector<16x32xbf16>
    %518 = vector.extract_strided_slice %501 {offsets = [0, 0], sizes = [32, 8], strides = [1, 1]} : vector<32x32xbf16> to vector<32x8xbf16>
    %cst_149 = arith.constant dense<0.000000e+00> : vector<16x8xf32>
    %519 = tpu.matmul %517, %518, %cst_149 {dimension_numbers = #tpu.dot_dimension_numbers<[1], [0], [0], [1], [0, 0, 1, 1], [], []>} : vector<16x32xbf16>, vector<32x8xbf16>, vector<16x8xf32> -> vector<16x8xf32>
    %520 = arith.truncf %519 : vector<16x8xf32> to vector<16x8xbf16>
    %521 = vector.extract_strided_slice %340 {offsets = [0, 0], sizes = [8, 32], strides = [1, 1]} : vector<32x32xbf16> to vector<8x32xbf16>
    %cst_150 = arith.constant dense<0.000000e+00> : vector<16x32xf32>
    %522 = tpu.matmul %520, %521, %cst_150 {dimension_numbers = #tpu.dot_dimension_numbers<[1], [0], [0], [1], [0, 0, 1, 1], [], []>} : vector<16x8xbf16>, vector<8x32xbf16>, vector<16x32xf32> -> vector<16x32xf32>
    %523 = arith.addf %502, %522 : vector<16x32xf32>
    %524 = vector.extract_strided_slice %500 {offsets = [0, 8], sizes = [16, 8], strides = [1, 1]} : vector<16x32xbf16> to vector<16x8xbf16>
    %525 = vector.extract_strided_slice %499 {offsets = [8, 0], sizes = [8, 32], strides = [1, 1]} : vector<32x32xbf16> to vector<8x32xbf16>
    %cst_151 = arith.constant dense<0.000000e+00> : vector<16x32xf32>
    %526 = tpu.matmul %524, %525, %cst_151 {dimension_numbers = #tpu.dot_dimension_numbers<[1], [0], [0], [1], [0, 0, 1, 1], [], []>} : vector<16x8xbf16>, vector<8x32xbf16>, vector<16x32xf32> -> vector<16x32xf32>
    %527 = arith.addf %526, %38 : vector<16x32xf32>
    %cst_152 = arith.constant dense<0xFF800000> : vector<16xf32>
    %528 = vector.multi_reduction <maximumf>, %527, %cst_152 [1] : vector<16x32xf32> to vector<16xf32>
    %529 = vector.shape_cast %528 : vector<16xf32> to vector<16x1xf32>
    %530 = vector.broadcast %529 : vector<16x1xf32> to vector<16x32xf32>
    %531 = arith.subf %527, %530 : vector<16x32xf32>
    %532 = math.exp %531 : vector<16x32xf32>
    %cst_153 = arith.constant dense<0.000000e+00> : vector<16xf32>
    %533 = vector.multi_reduction <add>, %532, %cst_153 [1] : vector<16x32xf32> to vector<16xf32>
    %534 = vector.shape_cast %533 : vector<16xf32> to vector<16x1xf32>
    %535 = tpu.reciprocal %534 {approx = true} : vector<16x1xf32> -> vector<16x1xf32>
    %536 = vector.broadcast %535 : vector<16x1xf32> to vector<16x32xf32>
    %537 = arith.mulf %532, %536 : vector<16x32xf32>
    %538 = arith.truncf %537 : vector<16x32xf32> to vector<16x32xbf16>
    %539 = vector.extract_strided_slice %501 {offsets = [0, 8], sizes = [32, 8], strides = [1, 1]} : vector<32x32xbf16> to vector<32x8xbf16>
    %cst_154 = arith.constant dense<0.000000e+00> : vector<16x8xf32>
    %540 = tpu.matmul %538, %539, %cst_154 {dimension_numbers = #tpu.dot_dimension_numbers<[1], [0], [0], [1], [0, 0, 1, 1], [], []>} : vector<16x32xbf16>, vector<32x8xbf16>, vector<16x8xf32> -> vector<16x8xf32>
    %541 = arith.truncf %540 : vector<16x8xf32> to vector<16x8xbf16>
    %542 = vector.extract_strided_slice %340 {offsets = [8, 0], sizes = [8, 32], strides = [1, 1]} : vector<32x32xbf16> to vector<8x32xbf16>
    %cst_155 = arith.constant dense<0.000000e+00> : vector<16x32xf32>
    %543 = tpu.matmul %541, %542, %cst_155 {dimension_numbers = #tpu.dot_dimension_numbers<[1], [0], [0], [1], [0, 0, 1, 1], [], []>} : vector<16x8xbf16>, vector<8x32xbf16>, vector<16x32xf32> -> vector<16x32xf32>
    %544 = arith.addf %523, %543 : vector<16x32xf32>
    %545 = vector.extract_strided_slice %500 {offsets = [0, 16], sizes = [16, 8], strides = [1, 1]} : vector<16x32xbf16> to vector<16x8xbf16>
    %546 = vector.extract_strided_slice %499 {offsets = [16, 0], sizes = [8, 32], strides = [1, 1]} : vector<32x32xbf16> to vector<8x32xbf16>
    %cst_156 = arith.constant dense<0.000000e+00> : vector<16x32xf32>
    %547 = tpu.matmul %545, %546, %cst_156 {dimension_numbers = #tpu.dot_dimension_numbers<[1], [0], [0], [1], [0, 0, 1, 1], [], []>} : vector<16x8xbf16>, vector<8x32xbf16>, vector<16x32xf32> -> vector<16x32xf32>
    %548 = arith.addf %547, %38 : vector<16x32xf32>
    %cst_157 = arith.constant dense<0xFF800000> : vector<16xf32>
    %549 = vector.multi_reduction <maximumf>, %548, %cst_157 [1] : vector<16x32xf32> to vector<16xf32>
    %550 = vector.shape_cast %549 : vector<16xf32> to vector<16x1xf32>
    %551 = vector.broadcast %550 : vector<16x1xf32> to vector<16x32xf32>
    %552 = arith.subf %548, %551 : vector<16x32xf32>
    %553 = math.exp %552 : vector<16x32xf32>
    %cst_158 = arith.constant dense<0.000000e+00> : vector<16xf32>
    %554 = vector.multi_reduction <add>, %553, %cst_158 [1] : vector<16x32xf32> to vector<16xf32>
    %555 = vector.shape_cast %554 : vector<16xf32> to vector<16x1xf32>
    %556 = tpu.reciprocal %555 {approx = true} : vector<16x1xf32> -> vector<16x1xf32>
    %557 = vector.broadcast %556 : vector<16x1xf32> to vector<16x32xf32>
    %558 = arith.mulf %553, %557 : vector<16x32xf32>
    %559 = arith.truncf %558 : vector<16x32xf32> to vector<16x32xbf16>
    %560 = vector.extract_strided_slice %501 {offsets = [0, 16], sizes = [32, 8], strides = [1, 1]} : vector<32x32xbf16> to vector<32x8xbf16>
    %cst_159 = arith.constant dense<0.000000e+00> : vector<16x8xf32>
    %561 = tpu.matmul %559, %560, %cst_159 {dimension_numbers = #tpu.dot_dimension_numbers<[1], [0], [0], [1], [0, 0, 1, 1], [], []>} : vector<16x32xbf16>, vector<32x8xbf16>, vector<16x8xf32> -> vector<16x8xf32>
    %562 = arith.truncf %561 : vector<16x8xf32> to vector<16x8xbf16>
    %563 = vector.extract_strided_slice %340 {offsets = [16, 0], sizes = [8, 32], strides = [1, 1]} : vector<32x32xbf16> to vector<8x32xbf16>
    %cst_160 = arith.constant dense<0.000000e+00> : vector<16x32xf32>
    %564 = tpu.matmul %562, %563, %cst_160 {dimension_numbers = #tpu.dot_dimension_numbers<[1], [0], [0], [1], [0, 0, 1, 1], [], []>} : vector<16x8xbf16>, vector<8x32xbf16>, vector<16x32xf32> -> vector<16x32xf32>
    %565 = arith.addf %544, %564 : vector<16x32xf32>
    %566 = vector.extract_strided_slice %500 {offsets = [0, 24], sizes = [16, 8], strides = [1, 1]} : vector<16x32xbf16> to vector<16x8xbf16>
    %567 = vector.extract_strided_slice %499 {offsets = [24, 0], sizes = [8, 32], strides = [1, 1]} : vector<32x32xbf16> to vector<8x32xbf16>
    %cst_161 = arith.constant dense<0.000000e+00> : vector<16x32xf32>
    %568 = tpu.matmul %566, %567, %cst_161 {dimension_numbers = #tpu.dot_dimension_numbers<[1], [0], [0], [1], [0, 0, 1, 1], [], []>} : vector<16x8xbf16>, vector<8x32xbf16>, vector<16x32xf32> -> vector<16x32xf32>
    %569 = arith.addf %568, %38 : vector<16x32xf32>
    %cst_162 = arith.constant dense<0xFF800000> : vector<16xf32>
    %570 = vector.multi_reduction <maximumf>, %569, %cst_162 [1] : vector<16x32xf32> to vector<16xf32>
    %571 = vector.shape_cast %570 : vector<16xf32> to vector<16x1xf32>
    %572 = vector.broadcast %571 : vector<16x1xf32> to vector<16x32xf32>
    %573 = arith.subf %569, %572 : vector<16x32xf32>
    %574 = math.exp %573 : vector<16x32xf32>
    %cst_163 = arith.constant dense<0.000000e+00> : vector<16xf32>
    %575 = vector.multi_reduction <add>, %574, %cst_163 [1] : vector<16x32xf32> to vector<16xf32>
    %576 = vector.shape_cast %575 : vector<16xf32> to vector<16x1xf32>
    %577 = tpu.reciprocal %576 {approx = true} : vector<16x1xf32> -> vector<16x1xf32>
    %578 = vector.broadcast %577 : vector<16x1xf32> to vector<16x32xf32>
    %579 = arith.mulf %574, %578 : vector<16x32xf32>
    %580 = arith.truncf %579 : vector<16x32xf32> to vector<16x32xbf16>
    %581 = vector.extract_strided_slice %501 {offsets = [0, 24], sizes = [32, 8], strides = [1, 1]} : vector<32x32xbf16> to vector<32x8xbf16>
    %cst_164 = arith.constant dense<0.000000e+00> : vector<16x8xf32>
    %582 = tpu.matmul %580, %581, %cst_164 {dimension_numbers = #tpu.dot_dimension_numbers<[1], [0], [0], [1], [0, 0, 1, 1], [], []>} : vector<16x32xbf16>, vector<32x8xbf16>, vector<16x8xf32> -> vector<16x8xf32>
    %583 = arith.truncf %582 : vector<16x8xf32> to vector<16x8xbf16>
    %584 = vector.extract_strided_slice %340 {offsets = [24, 0], sizes = [8, 32], strides = [1, 1]} : vector<32x32xbf16> to vector<8x32xbf16>
    %cst_165 = arith.constant dense<0.000000e+00> : vector<16x32xf32>
    %585 = tpu.matmul %583, %584, %cst_165 {dimension_numbers = #tpu.dot_dimension_numbers<[1], [0], [0], [1], [0, 0, 1, 1], [], []>} : vector<16x8xbf16>, vector<8x32xbf16>, vector<16x32xf32> -> vector<16x32xf32>
    %586 = arith.addf %565, %585 : vector<16x32xf32>
    %587 = arith.addf %468, %586 : vector<16x32xf32>
    %588 = vector.broadcast %347 : vector<1x32xf32> to vector<16x32xf32>
    %589 = arith.addf %587, %588 : vector<16x32xf32>
    %cst_166 = arith.constant dense<0.000000e+00> : vector<16xf32>
    %590 = vector.multi_reduction <add>, %589, %cst_166 [1] : vector<16x32xf32> to vector<16xf32>
    %591 = vector.shape_cast %590 : vector<16xf32> to vector<16x1xf32>
    %cst_167 = arith.constant 3.200000e+01 : f32
    %592 = vector.broadcast %cst_167 : f32 to vector<16x1xf32>
    %593 = arith.divf %591, %592 : vector<16x1xf32>
    %594 = vector.broadcast %593 : vector<16x1xf32> to vector<16x32xf32>
    %595 = arith.subf %589, %594 : vector<16x32xf32>
    %596 = vector.broadcast %593 : vector<16x1xf32> to vector<16x32xf32>
    %597 = arith.subf %589, %596 : vector<16x32xf32>
    %598 = arith.mulf %595, %597 : vector<16x32xf32>
    %cst_168 = arith.constant dense<0.000000e+00> : vector<16xf32>
    %599 = vector.multi_reduction <add>, %598, %cst_168 [1] : vector<16x32xf32> to vector<16xf32>
    %600 = vector.shape_cast %599 : vector<16xf32> to vector<16x1xf32>
    %cst_169 = arith.constant 3.200000e+01 : f32
    %601 = vector.broadcast %cst_169 : f32 to vector<16x1xf32>
    %602 = arith.divf %600, %601 : vector<16x1xf32>
    %603 = vector.broadcast %593 : vector<16x1xf32> to vector<16x32xf32>
    %604 = arith.subf %589, %603 : vector<16x32xf32>
    %cst_170 = arith.constant 9.99999974E-6 : f32
    %605 = vector.broadcast %cst_170 : f32 to vector<16x1xf32>
    %606 = arith.addf %602, %605 : vector<16x1xf32>
    %607 = math.rsqrt %606 : vector<16x1xf32>
    %608 = vector.broadcast %607 : vector<16x1xf32> to vector<16x32xf32>
    %609 = arith.mulf %604, %608 : vector<16x32xf32>
    %610 = arith.truncf %609 : vector<16x32xf32> to vector<16x32xbf16>
    %cst_171 = arith.constant dense<0.000000e+00> : vector<16x128xf32>
    %611 = tpu.matmul %610, %341, %cst_171 {dimension_numbers = #tpu.dot_dimension_numbers<[1], [0], [0], [1], [0, 0, 1, 1], [], []>} : vector<16x32xbf16>, vector<32x128xbf16>, vector<16x128xf32> -> vector<16x128xf32>
    %612 = vector.broadcast %348 : vector<1x128xf32> to vector<16x128xf32>
    %613 = arith.addf %611, %612 : vector<16x128xf32>
    %614 = arith.mulf %613, %613 : vector<16x128xf32>
    %615 = arith.mulf %613, %614 : vector<16x128xf32>
    %cst_172 = arith.constant 4.471500e-02 : f32
    %616 = vector.broadcast %cst_172 : f32 to vector<16x128xf32>
    %617 = arith.mulf %616, %615 : vector<16x128xf32>
    %618 = arith.addf %613, %617 : vector<16x128xf32>
    %cst_173 = arith.constant 0.797884583 : f32
    %619 = vector.broadcast %cst_173 : f32 to vector<16x128xf32>
    %620 = arith.mulf %619, %618 : vector<16x128xf32>
    %621 = math.tanh %620 : vector<16x128xf32>
    %cst_174 = arith.constant 1.000000e+00 : f32
    %622 = vector.broadcast %cst_174 : f32 to vector<16x128xf32>
    %623 = arith.addf %622, %621 : vector<16x128xf32>
    %cst_175 = arith.constant 5.000000e-01 : f32
    %624 = vector.broadcast %cst_175 : f32 to vector<16x128xf32>
    %625 = arith.mulf %624, %623 : vector<16x128xf32>
    %626 = arith.mulf %613, %625 : vector<16x128xf32>
    %627 = arith.truncf %626 : vector<16x128xf32> to vector<16x128xbf16>
    %cst_176 = arith.constant dense<0.000000e+00> : vector<16x32xf32>
    %628 = tpu.matmul %627, %342, %cst_176 {dimension_numbers = #tpu.dot_dimension_numbers<[1], [0], [0], [1], [0, 0, 1, 1], [], []>} : vector<16x128xbf16>, vector<128x32xbf16>, vector<16x32xf32> -> vector<16x32xf32>
    %629 = arith.addf %589, %628 : vector<16x32xf32>
    %630 = vector.broadcast %349 : vector<1x32xf32> to vector<16x32xf32>
    %631 = arith.addf %629, %630 : vector<16x32xf32>
    %cst_177 = arith.constant dense<0.000000e+00> : vector<16xf32>
    %632 = vector.multi_reduction <add>, %631, %cst_177 [1] : vector<16x32xf32> to vector<16xf32>
    %633 = vector.shape_cast %632 : vector<16xf32> to vector<16x1xf32>
    %cst_178 = arith.constant 3.200000e+01 : f32
    %634 = vector.broadcast %cst_178 : f32 to vector<16x1xf32>
    %635 = arith.divf %633, %634 : vector<16x1xf32>
    %636 = vector.broadcast %635 : vector<16x1xf32> to vector<16x32xf32>
    %637 = arith.subf %631, %636 : vector<16x32xf32>
    %638 = vector.broadcast %635 : vector<16x1xf32> to vector<16x32xf32>
    %639 = arith.subf %631, %638 : vector<16x32xf32>
    %640 = arith.mulf %637, %639 : vector<16x32xf32>
    %cst_179 = arith.constant dense<0.000000e+00> : vector<16xf32>
    %641 = vector.multi_reduction <add>, %640, %cst_179 [1] : vector<16x32xf32> to vector<16xf32>
    %642 = vector.shape_cast %641 : vector<16xf32> to vector<16x1xf32>
    %cst_180 = arith.constant 3.200000e+01 : f32
    %643 = vector.broadcast %cst_180 : f32 to vector<16x1xf32>
    %644 = arith.divf %642, %643 : vector<16x1xf32>
    %645 = vector.broadcast %635 : vector<16x1xf32> to vector<16x32xf32>
    %646 = arith.subf %631, %645 : vector<16x32xf32>
    %cst_181 = arith.constant 9.99999974E-6 : f32
    %647 = vector.broadcast %cst_181 : f32 to vector<16x1xf32>
    %648 = arith.addf %644, %647 : vector<16x1xf32>
    %649 = math.rsqrt %648 : vector<16x1xf32>
    %650 = vector.broadcast %649 : vector<16x1xf32> to vector<16x32xf32>
    %651 = arith.mulf %646, %650 : vector<16x32xf32>
    %cst_182 = arith.constant dense<0.000000e+00> : vector<16x128xf32>
    %652 = tpu.matmul %651, %3, %cst_182 {dimension_numbers = #tpu.dot_dimension_numbers<[1], [0], [0], [1], [0, 0, 1, 1], [], []>} : vector<16x32xf32>, vector<32x128xf32>, vector<16x128xf32> -> vector<16x128xf32>
    %653 = vector.broadcast %4 : vector<1x128xf32> to vector<16x128xf32>
    %654 = arith.addf %652, %653 : vector<16x128xf32>
    %c0_183 = arith.constant 0 : index
    %c0_184 = arith.constant 0 : index
    %655 = vector.load %arg4[%c0_183, %c0_184] : memref<16x128xf32, #tpu.memory_space<vmem>>, vector<16x128xf32>
    tpu.vector_store %arg4[%c0_183, %c0_184], %654 {strides = array<i32>} : memref<16x128xf32, #tpu.memory_space<vmem>>, vector<16x128xf32>,
    return
  }
}

</mosaic_0001>

<bundles_post_ra>
// kernel: text_decoder_forward.1
= control target key start
LH: loop header
LB: loop body
LE: loop exit
PB: predicated region body
PF: predicated region fallthrough
CT: control target
= control target key end

     0   :  { %9 = vsyncpa [#allocation3], 0  ;;  %s5175_s15 = smov [#allocation2]   ;;  %s6016_s0 = inlined_call_operand.vmem [shape: s32[16,1], index: 0, kind: input, shape index: {}]   ;;  %s6017_s1 = inlined_call_operand.vmem [shape: f32[48,32], index: 1, kind: input, shape index: {}]   ;;  %s6018_s2 = inlined_call_operand.vmem [shape: f32[112,128], index: 2, kind: input, shape index: {}]   ;;  %s6019_s3 = inlined_call_operand.hbm [shape: bf16[640,128], index: 3, kind: input, shape index: {}]   ;;  %s6020_s4 = inlined_call_operand.vmem [shape: f32[16,128], index: 4, kind: output, shape index: {}]  }
   0x1   :  { %s21_s16 = sshll.u32 %s5175_s15, 4  ;;  %s5151_s19 = scalar_lea.hbm %s6019_s3, 5120  ;;  %s22_s16 = int_to_ptr.vmem [resolvable:$true] %s21_s16 }
   0x2   :  { %p5152_p0 = scmp.ne.s32.totalorder %s6019_s3, %s5151_s19  ;;  %p5155_p1 = scmp.lt.u32.totalorder %s5151_s19, %s6019_s3 }
   0x4   :  { %p5157_p2 = pnand %p5155_p1, %p5152_p0 }
   0x6   :  { %5160 = shalt.err (!%p5157_p2)
}
   0x7   :  { %s5161_s24 = scalar_lea.vmem %s22_s16, 5120  ;;  %p5166_p4 = scmp.lt.s32.totalorder %s22_s16, %s22_s16 }
   0x8   :  { %p5162_p3 = scmp.ne.s32.totalorder %s22_s16, %s5161_s24  ;;  %p5167_p5 = scmp.lt.s32.totalorder %s5161_s24, %s5161_s24 }
   0xa   :  { %p5168_p6 = por %p5167_p5, %p5166_p4 }
   0xc   :  { %p5169_p7 = pnand %p5168_p6, %p5162_p3 }
   0xe   :  { %5172 = shalt.err (!%p5169_p7)
}
   0xf   :  { %s5176_s25 = smov 64   ;;  %s5177_s26 = smov 4  }
  0x10   :  { %27 = dma.hbm_to_vmem [thread:$0]  %s6019_s3, 5120, %s22_s16, [#allocation3], %s5176_s25, %s5176_s25, %s5177_s26  }
  0x11   :  { %5173 = dma.done.wait [#allocation3], 5120  }
  0x12   :  { %5174 = vsyncadd [#allocation3], 4294962176  ;;  %v5178_v0 = vmov 0   ;;  %v51_v1 = vld [vmem:[%s6016_s0] sm:$0xff]  ;;  %v38_v2 = vld [vmem:[%s6018_s2 + $0x10] sm:$0xff]  ;;  %v5179_v10 = vmov 0.0   ;;  %v53_v16 = vlaneseq }
  0x13   :  { %4954 = vset.pattern.permute.xlu0 %v5178_v0  ;;  %v39_v3 = vld [vmem:[%s6018_s2 + $0x18] sm:$0xff]  ;;  %v40_v4 = vld [vmem:[%s6018_s2 + $0x20] sm:$0xff]  ;;  %v41_v5 = vld [vmem:[%s6018_s2 + $0x28] sm:$0xff]  ;;  %4508 = vmatprep.subr.bf16.mxu0 %v5179_v10  ;;  %vm67_vm0 = vcmask 523264   ;;  %vm220_vm3 = vcmask 261120   ;;  %vm5180_vm4 = vmmov 0  }
  0x14   :  { %56 = vperm.xlu0 %4954, %v51_v1   ;;  %v52_v6 = vld [vmem:[%s6016_s0 + $0x8] sm:$0xff]  ;;  %v4913_v7 = vpack.c.bf16 %v39_v3, %v38_v2  ;;  %v4917_v8 = vpack.c.bf16 %v41_v5, %v40_v4  ;;  %v42_v9 = vld [vmem:[%s6018_s2 + $0x30] sm:$0xff]  ;;  %v43_v11 = vld [vmem:[%s6018_s2 + $0x38] sm:$0xff]  ;;  %v5264_v17 = vand.u32 127, %v53_v16  ;;  %4510 = vmatprep.mubr.msk.bf16.mxu0 %vm5180_vm4, %v5179_v10  ;;  %s5181_s28 = smov 96   ;;  %s5182_s29 = smov 120  }
  0x15   :  { %v44_v12 = vld [vmem:[%s6018_s2 + $0x40] sm:$0xff]  ;;  %v4921_v13 = vpack.c.bf16 %v43_v11, %v42_v9  ;;  %v45_v14 = vld [vmem:[%s6018_s2 + $0x48] sm:$0xff]  ;;  %s5183_s30 = smov 56   ;;  %vm356_vm5 = vcmask 1043456   ;;  %vm352_vm6 = vcmask 64512   ;;  %vm401_vm13 = vcmask 130048  }
  0x16   :  { %4914 = vmatprep.subr.bf16.mxu1 %v4913_v7  ;;  %v4925_v15 = vpack.c.bf16 %v45_v14, %v44_v12  ;;  %v32_v22 = vld [vmem:[%s6017_s1] sm:$0xff]  ;;  %v33_v24 = vld [vmem:[%s6017_s1 + $0x8] sm:$0xff]  ;;  %v154_v9 = vshra.s32 %v5264_v17, 3  ;;  %v157_v11 = vand.u32 7, %v5264_v17  ;;  %s5185_s5 = smov 112   ;;  %s5186_s6 = smov 104  }
  0x17   :  { %4916 = vmatpush3.bf16.msra.mxu1 %v4913_v7  ;;  %v4955_v40 = vld [vmem:[#allocation2] sm:$0xff]   ;;  %v4956_v41 = vld [vmem:[#allocation2 + $0x8] sm:$0xff]   ;;  %s5187_s7 = smov 48   ;;  %s5188_s8 = smov 40  }
  0x18   :  { %59 = vperm.xlu0 %4954, %v52_v6   ;;  %4918 = vmatprep.subr.bf16.mxu1 %v4917_v8  ;;  %v4204_v53 = vld [vmem:[%s6018_s2] ss:$0 sm:$0xff]  ;;  %v5320_v6 = vshrl.u32 %v53_v16, 7  ;;  %s5189_s20 = smov 88   ;;  %s5190_s21 = smov 80  }
  0x19   :  { %s5191_s22 = smov 72  }
  0x1a   :  { %v5323_v7 = vadd.s32 8, %v5320_v6  ;;  %v158_v12 = vand.u32 7, %v5320_v6 }
  0x1b   :  { %4920 = vmatpush3.bf16.msra.mxu1 %v4917_v8  ;;  %v152_v8 = vshra.s32 %v5320_v6, 3 }
  0x1c   :  { %4922 = vmatprep.subr.bf16.mxu1 %v4921_v13  ;;  %v159_v14 = vand.u32 7, %v5323_v7  ;;  %vm160_vm8 = vcmp.le.s32.totalorder %v157_v11, %v158_v12 }
  0x1d   :  { %vm155_vm7 = vcmp.eq.s32.totalorder %v152_v8, %v154_v9 }
  0x1e   :  { %vm161_vm10 = vcmp.le.s32.totalorder %v157_v11, %v159_v14  ;;  %vm162_vm11 = vmand %vm155_vm7, %vm160_vm8 }
  0x1f   :  { %4924 = vmatpush3.bf16.msra.mxu1 %v4921_v13  ;;  %v153_v13 = vshra.s32 %v5323_v7, 3 }
  0x20   :  { %4926 = vmatprep.subr.bf16.mxu1 %v4925_v15 }
  0x21   :  { %vm156_vm9 = vcmp.eq.s32.totalorder %v153_v13, %v154_v9 }
  0x22   :  { %vm163_vm12 = vmand %vm156_vm9, %vm161_vm10 }
  0x23   :  { %4928 = vmatpush3.bf16.msra.mxu1 %v4925_v15  ;;  %v5184_v15 = vmov -1e+30  }
  0x24   :  { %4494 = vmatprep.subr.bf16.mxu1 %v5179_v10  ;;  %v5336_v16 = vsel %vm162_vm11, 0.0, %v5184_v15 }
  0x93   :  { %v57_v18 = vpop.permute.xlu0 %56 }
  0x94   :  { %vm61_vm1 = vcmp.eq.s32.totalorder %v5264_v17, %v57_v18 }
  0x95   :  { %v4200_v19 = vsel %vm61_vm1, 1.0, %v5179_v10 }
  0x96   :  { %4491 = vmatprep.mubr.msk.f32.mxu1 %vm67_vm0, %v4200_v19  ;;  %v5339_v19 = vsel %vm163_vm12, 0.0, %v5184_v15 }
  0x97   :  { %v60_v20 = vpop.permute.xlu0 %59 }
  0x98   :  { %vm62_vm2 = vcmp.eq.s32.totalorder %v5264_v17, %v60_v20 }
  0x99   :  { %v4201_v21 = vsel %vm62_vm2, 1.0, %v5179_v10 }
  0x9a   :  { %4492 = vmatmul.mubr.msk.f32.vlgmr.msra.gmra.mrb[0].mxu1 %vm67_vm0, %v4201_v21 }
  0x9b   :  { %4495 = vmatpush3.bf16.msra.mxu1 %v4955_v40  ;;  %4498 = vmatprep.mubr.msk.bf16.mxu1 %vm5180_vm4, %v5179_v10 }
  0x9c   :  { %4496 = vmatprep.subr.bf16.mxu1 %v5179_v10 }
  0x9f   :  { %4497 = vmatpush3.bf16.msra.mxu1 %v4956_v41 }
  0xa0   :  { %4502 = vmatprep.subr.bf16.mxu1 %v5179_v10 }
 0x16d   :  { %v4493_v23 = vpop.f32.mrb[0].mxu1 }
 0x16e   :  { %v140_v25 = vpop.f32.mrb[1].mxu1  ;;  %v5278_v27 = vadd.f32 %v4493_v23, %v33_v24 }
 0x16f   :  { %v5276_v26 = vadd.f32 %v140_v25, %v32_v22 }
 0x170   :  { %v224_v29 = vsel %vm220_vm3, %v5278_v27, 0.0 }
 0x171   :  { %v221_v28 = vsel %vm220_vm3, %v5276_v26, 0.0 }
 0x172   :  { %222 = vadd.xlane.f32.xlu1 %v221_v28 }
 0x176   :  { %225 = vadd.xlane.f32.xlu1 %v224_v29 }
 0x1ff   :  { %v223_v30 = vpop.xlane.xlu1 %222 }
 0x200   :  { %v228_v31 = vmul.f32 0.03125, %v223_v30 }
 0x202   :  { %v230_v32 = vsub.f32 %v5276_v26, %v228_v31 }
 0x203   :  { %v226_v33 = vpop.xlane.xlu1 %225 }
 0x204   :  { %v229_v34 = vmul.f32 0.03125, %v226_v33  ;;  %v232_v35 = vmul.f32 %v230_v32, %v230_v32 }
 0x206   :  { %v231_v36 = vsub.f32 %v5278_v27, %v229_v34  ;;  %v234_v37 = vsel %vm220_vm3, %v232_v35, 0.0 }
 0x207   :  { %235 = vadd.xlane.f32.xlu0 %v234_v37 }
 0x208   :  { %v233_v38 = vmul.f32 %v231_v36, %v231_v36 }
 0x20a   :  { %v237_v39 = vsel %vm220_vm3, %v233_v38, 0.0 }
 0x20b   :  { %238 = vadd.xlane.f32.xlu1 %v237_v39 }
 0x294   :  { %v236_v42 = vpop.xlane.xlu0 %235 }
 0x295   :  { %v240_v43 = vmul.f32 0.03125, %v236_v42 }
 0x297   :  { %v242_v44 = vadd.f32 1e-05, %v240_v43 }
 0x298   :  { %v239_v45 = vpop.xlane.xlu1 %238 }
 0x299   :  { %v241_v46 = vmul.f32 0.03125, %v239_v45  ;;  %4987 = vrsqrt.f32 %v242_v44 }
 0x29b   :  { %v243_v47 = vadd.f32 1e-05, %v241_v46 }
 0x29d   :  { %4989 = vrsqrt.f32 %v243_v47 }
 0x2a3   :  { %v4988_v48 = vpop.eup %4987 }
 0x2a4   :  { %v246_v50 = vmul.f32 %v4988_v48, %v230_v32 }
 0x2a7   :  { %v4990_v49 = vpop.eup %4989 }
 0x2a8   :  { %v247_v51 = vmul.f32 %v4990_v49, %v231_v36 }
 0x2aa   :  { %v248_v52 = vpack.c.bf16 %v247_v51, %v246_v50 }
 0x2ac   :  { %4499 = vmatmul.mubr.msk.bf16.vlgmr.msra.gmra.mrb[4].mxu1 %vm220_vm3, %v248_v52 }
 0x2ad   :  { %4504 = vmatprep.mubr.msk.bf16.mxu1 %vm5180_vm4, %v5179_v10 }
 0x37f   :  { %v302_v54 = vpop.f32.mrb[4].mxu1 }
 0x380   :  { %v303_v55 = vadd.f32 %v4204_v53, %v302_v54  ;;  %v4500_v56 = vpop.f32.mrb[5].mxu1 }
 0x381   :  { %v305_v57 = vpop.f32.mrb[6].mxu1 }
 0x382   :  { %v306_v58 = vadd.f32 %v4204_v53, %v305_v57  ;;  %311 = vrot.lane.b32.xlu1 %v303_v55, %s5181_s28  ;;  %v4501_v59 = vpop.f32.mrb[7].mxu1 }
 0x384   :  { %v5301_v60 = vpack.c.bf16 %v306_v58, %v303_v55 }
 0x386   :  { %313 = vrot.lane.b32.xlu1 %v306_v58, %s5181_s28 }
 0x38a   :  { %474 = vrot.lane.b32.xlu1 %v5301_v60, %s5182_s29 }
 0x3f4   :  { %v312_v61 = vpop.permute.xlu1 %311 }
 0x3f5   :  { %317 = vxpose.xlu1.b32.start [1/2] (short) (narrow) %v312_v61, 32 }
 0x3f8   :  { %v314_v62 = vpop.permute.xlu1 %313 }
 0x3f9   :  { %318 = vxpose.xlu1.b32.end [2/2] (short) (narrow) %v314_v62, 32 }
 0x3fc   :  { %v475_v63 = vpop.permute.xlu1 %474 }
 0x41f   :  { %548 = vrot.lane.b32.xlu1 %v5301_v60, %s5183_s30 }
 0x475   :  { %v333_v0 = vpop.trf.xlu1 }
 0x479   :  { %v334_v1 = vpop.trf.xlu1 }
 0x47a   :  { %v349_v2 = vpack.c.bf16 %v334_v1, %v333_v0 }
 0x47c   :  { %v477_v3 = vrot.slane %v349_v2, 4  ;;  %v358_v4 = vsel %vm356_vm5, %v349_v2, 0 }
 0x47d   :  { %4503 = vmatpush3.bf16.msra.mxu1 %v358_v4  ;;  %v335_v59 = vpop.trf.xlu1 }
 0x47e   :  { %4514 = vmatprep.subr.bf16.mxu1 %v5179_v10  ;;  %v482_v5 = vsel %vm356_vm5, %v477_v3, 0 }
 0x480   :  { %4505 = vmatmul.mubr.msk.bf16.vlgmr.msra.gmra.mrb[8].mxu1 %vm352_vm6, %v5301_v60 }
 0x481   :  { %4515 = vmatpush3.bf16.msra.mxu1 %v482_v5  ;;  %4516 = vmatprep.mubr.msk.bf16.mxu1 %vm5180_vm4, %v5179_v10  ;;  %v336_v0 = vpop.trf.xlu1 }
 0x482   :  { %4526 = vmatprep.subr.bf16.mxu1 %v5179_v10 }
 0x488   :  { %4517 = vmatmul.mubr.msk.bf16.vlgmr.msra.gmra.mrb[12].mxu1 %vm352_vm6, %v475_v63 }
 0x489   :  { %4528 = vmatprep.mubr.msk.bf16.mxu1 %vm5180_vm4, %v5179_v10 }
 0x491   :  { %v549_v9 = vpop.permute.xlu1 %548 }
 0x553   :  { %v394_v18 = vpop.f32.mrb[8].mxu1 }
 0x554   :  { %v395_v20 = vadd.f32 %v394_v18, %v5336_v16  ;;  %v4506_v21 = vpop.f32.mrb[9].mxu1 }
 0x555   :  { %v397_v22 = vpop.f32.mrb[10].mxu1  ;;  %v177_v21 = vld [vmem:[#allocation2 + $0x10] sm:$0xf] }
 0x556   :  { %v398_v23 = vadd.f32 %v397_v22, %v5339_v19  ;;  %v4507_v24 = vpop.f32.mrb[11].mxu1  ;;  %v402_v25 = vsel %vm401_vm13, %v395_v20, -inf  ;;  %v647_v22 = vsel %vm356_vm5, %v177_v21, 0 }
 0x557   :  { %403 = vmax.xlane.f32.xlu0 %v402_v25 }
 0x558   :  { %v405_v28 = vsel %vm401_vm13, %v398_v23, -inf }
 0x55b   :  { %406 = vmax.xlane.f32.xlu0 %v405_v28  ;;  %v518_v29 = vpop.f32.mrb[12].mxu1 }
 0x55c   :  { %v519_v30 = vadd.f32 %v518_v29, %v5336_v16  ;;  %v4518_v31 = vpop.f32.mrb[13].mxu1 }
 0x55d   :  { %v521_v32 = vpop.f32.mrb[14].mxu1 }
 0x55e   :  { %v522_v33 = vadd.f32 %v521_v32, %v5339_v19  ;;  %v4519_v34 = vpop.f32.mrb[15].mxu1  ;;  %v525_v35 = vsel %vm401_vm13, %v519_v30, -inf }
 0x55f   :  { %526 = vmax.xlane.f32.xlu0 %v525_v35 }
 0x560   :  { %v528_v36 = vsel %vm401_vm13, %v522_v33, -inf }
 0x563   :  { %529 = vmax.xlane.f32.xlu0 %v528_v36 }
 0x5e4   :  { %v404_v37 = vpop.xlane.xlu0 %403 }
 0x5e5   :  { %v408_v38 = vsub.f32 %v395_v20, %v404_v37 }
 0x5e7   :  { %v410_v39 = vmul.f32 1.442695, %v408_v38 }
 0x5e8   :  { %v407_v40 = vpop.xlane.xlu0 %406 }
 0x5e9   :  { %4991 = vpow2.f32 %v410_v39  ;;  %v409_v41 = vsub.f32 %v398_v23, %v407_v40  ;;  %v178_v23 = vld [vmem:[#allocation2 + $0x14] sm:$0xf] }
 0x5ea   :  { %v600_v24 = vsel %vm356_vm5, %v178_v23, 0 }
 0x5eb   :  { %v412_v42 = vmul.f32 1.442695, %v409_v41  ;;  %4527 = vmatpush3.bf16.msra.mxu1 %v600_v24 }
 0x5ec   :  { %v527_v43 = vpop.xlane.xlu0 %526  ;;  %4538 = vmatprep.subr.bf16.mxu1 %v5179_v10 }
 0x5ed   :  { %4993 = vpow2.f32 %v412_v42  ;;  %v531_v44 = vsub.f32 %v519_v30, %v527_v43 }
 0x5ef   :  { %v533_v45 = vmul.f32 1.442695, %v531_v44 }
 0x5f0   :  { %v530_v46 = vpop.xlane.xlu0 %529 }
 0x5f1   :  { %4995 = vpow2.f32 %v533_v45  ;;  %v532_v47 = vsub.f32 %v522_v33, %v530_v46  ;;  %v5372_v33 = vpack.c.bf16 %v336_v0, %v335_v59 }
 0x5f3   :  { %v4992_v48 = vpop.eup %4991  ;;  %v535_v49 = vmul.f32 1.442695, %v532_v47  ;;  %v696_v38 = vsel %vm356_vm5, %v5372_v33, 0 }
 0x5f4   :  { %v414_v50 = vsel %vm401_vm13, %v4992_v48, 0.0 }
 0x5f5   :  { %4997 = vpow2.f32 %v535_v49  ;;  %415 = vadd.xlane.f32.xlu0 %v414_v50 }
 0x5f7   :  { %v4994_v51 = vpop.eup %4993 }
 0x5f8   :  { %v417_v52 = vsel %vm401_vm13, %v4994_v51, 0.0 }
 0x5f9   :  { %418 = vadd.xlane.f32.xlu0 %v417_v52 }
 0x5fb   :  { %v4996_v53 = vpop.eup %4995 }
 0x5fc   :  { %v537_v54 = vsel %vm401_vm13, %v4996_v53, 0.0 }
 0x5fd   :  { %538 = vadd.xlane.f32.xlu0 %v537_v54 }
 0x5ff   :  { %v4998_v55 = vpop.eup %4997 }
 0x600   :  { %v540_v56 = vsel %vm401_vm13, %v4998_v55, 0.0 }
 0x601   :  { %541 = vadd.xlane.f32.xlu0 %v540_v56 }
 0x617   :  { %426 = vrot.lane.b32.xlu0 %v5301_v60, %s5176_s25 }
 0x61b   :  { %690 = vrot.lane.b32.xlu0 %v5301_v60, %s5185_s5 }
 0x682   :  { %v416_v57 = vpop.xlane.xlu0 %415 }
 0x683   :  { %4999 = vrcp.f32 %v416_v57 }
 0x686   :  { %v419_v58 = vpop.xlane.xlu0 %418 }
 0x687   :  { %5001 = vrcp.f32 %v419_v58 }
 0x68a   :  { %v539_v61 = vpop.xlane.xlu0 %538 }
 0x68b   :  { %5003 = vrcp.f32 %v539_v61 }
 0x68d   :  { %v5000_v63 = vpop.eup %4999 }
 0x68e   :  { %v542_v62 = vpop.xlane.xlu0 %541  ;;  %v422_v3 = vmul.f32 %v5000_v63, %v4992_v48 }
 0x68f   :  { %5005 = vrcp.f32 %v542_v62 }
 0x691   :  { %v5002_v1 = vpop.eup %5001 }
 0x692   :  { %v427_v2 = vpop.permute.xlu0 %426  ;;  %v423_v4 = vmul.f32 %v5002_v1, %v4994_v51 }
 0x693   :  { %4509 = vmatpush3.bf16.msra.mxu0 %v427_v2 }
 0x694   :  { %v424_v5 = vpack.c.bf16 %v423_v4, %v422_v3  ;;  %4520 = vmatprep.subr.bf16.mxu0 %v5179_v10 }
 0x695   :  { %v5004_v11 = vpop.eup %5003 }
 0x696   :  { %4511 = vmatmul.mubr.msk.bf16.vlgmr.msra.gmra.mrb[0].mxu0 %vm401_vm13, %v424_v5  ;;  %v545_v14 = vmul.f32 %v5004_v11, %v4996_v53  ;;  %v691_v39 = vpop.permute.xlu0 %690 }
 0x697   :  { %4521 = vmatpush3.bf16.msra.mxu0 %v549_v9  ;;  %4522 = vmatprep.mubr.msk.bf16.mxu0 %vm5180_vm4, %v5179_v10 }
 0x698   :  { %4532 = vmatprep.subr.bf16.mxu0 %v5179_v10 }
 0x699   :  { %v5006_v12 = vpop.eup %5005 }
 0x69a   :  { %v546_v18 = vmul.f32 %v5006_v12, %v4998_v55 }
 0x69c   :  { %v547_v20 = vpack.c.bf16 %v546_v18, %v545_v14  ;;  %v862_v18 = vrot.slane %v5372_v33, 4 }
 0x69e   :  { %4523 = vmatmul.mubr.msk.bf16.vlgmr.msra.gmra.mrb[4].mxu0 %vm401_vm13, %v547_v20  ;;  %v867_v23 = vsel %vm356_vm5, %v862_v18, 0 }
 0x69f   :  { %4534 = vmatprep.mubr.msk.bf16.mxu0 %vm5180_vm4, %v5179_v10  ;;  %4533 = vmatpush3.bf16.msra.mxu0 %v647_v22 }
 0x6a0   :  { %4544 = vmatprep.subr.bf16.mxu0 %v5179_v10 }
 0x769   :  { %v466_v25 = vpop.f32.mrb[0].mxu0 }
 0x76a   :  { %v4512_v28 = vpop.f32.mrb[1].mxu0 }
 0x76b   :  { %v469_v29 = vpop.f32.mrb[2].mxu0 }
 0x76c   :  { %v473_v30 = vpack.c.bf16 %v469_v29, %v466_v25  ;;  %v4513_v31 = vpop.f32.mrb[3].mxu0  ;;  %v179_v25 = vld [vmem:[#allocation2 + $0x18] sm:$0xf] }
 0x76d   :  { %v814_v28 = vsel %vm356_vm5, %v179_v25, 0 }
 0x76e   :  { %4535 = vmatmul.mubr.msk.bf16.vlgmr.msra.gmra.mrb[8].mxu0 %vm352_vm6, %v473_v30 }
 0x76f   :  { %4546 = vmatprep.mubr.msk.bf16.mxu0 %vm5180_vm4, %v5179_v10 }
 0x771   :  { %v588_v32 = vpop.f32.mrb[4].mxu0 }
 0x772   :  { %v4524_v34 = vpop.f32.mrb[5].mxu0 }
 0x773   :  { %v591_v35 = vpop.f32.mrb[6].mxu0 }
 0x774   :  { %v595_v36 = vpack.c.bf16 %v591_v35, %v588_v32  ;;  %v4525_v37 = vpop.f32.mrb[7].mxu0 }
 0x776   :  { %4529 = vmatmul.mubr.msk.bf16.vlgmr.msra.gmra.mrb[16].mxu1 %vm352_vm6, %v595_v36 }
 0x777   :  { %4539 = vmatpush3.bf16.msra.mxu1 %v696_v38  ;;  %4540 = vmatprep.mubr.msk.bf16.mxu1 %vm5180_vm4, %v5179_v10 }
 0x778   :  { %4550 = vmatprep.subr.bf16.mxu1 %v5179_v10 }
 0x77e   :  { %4541 = vmatmul.mubr.msk.bf16.vlgmr.msra.gmra.mrb[20].mxu1 %vm352_vm6, %v691_v39 }
 0x77f   :  { %4552 = vmatprep.mubr.msk.bf16.mxu1 %vm5180_vm4, %v5179_v10  ;;  %4551 = vmatpush3.bf16.msra.mxu1 %v814_v28 }
 0x780   :  { %4562 = vmatprep.subr.bf16.mxu1 %v5179_v10 }
 0x841   :  { %v683_v40 = vpop.f32.mrb[8].mxu0 }
 0x842   :  { %v4536_v41 = vpop.f32.mrb[9].mxu0 }
 0x843   :  { %v686_v42 = vpop.f32.mrb[10].mxu0 }
 0x844   :  { %v4537_v43 = vpop.f32.mrb[11].mxu0 }
 0x849   :  { %v636_v44 = vpop.f32.mrb[16].mxu1 }
 0x84a   :  { %v5383_v45 = vadd.f32 %v683_v40, %v636_v44  ;;  %v4530_v46 = vpop.f32.mrb[17].mxu1 }
 0x84b   :  { %v639_v47 = vpop.f32.mrb[18].mxu1 }
 0x84c   :  { %v5385_v48 = vadd.f32 %v686_v42, %v639_v47  ;;  %v4531_v49 = vpop.f32.mrb[19].mxu1 }
 0x851   :  { %v732_v50 = vpop.f32.mrb[20].mxu1 }
 0x852   :  { %v733_v51 = vadd.f32 %v732_v50, %v5336_v16  ;;  %v4542_v52 = vpop.f32.mrb[21].mxu1 }
 0x853   :  { %v735_v53 = vpop.f32.mrb[22].mxu1 }
 0x854   :  { %v736_v54 = vadd.f32 %v735_v53, %v5339_v19  ;;  %v4543_v55 = vpop.f32.mrb[23].mxu1  ;;  %v739_v56 = vsel %vm401_vm13, %v733_v51, -inf }
 0x855   :  { %740 = vmax.xlane.f32.xlu0 %v739_v56 }
 0x856   :  { %v742_v57 = vsel %vm401_vm13, %v736_v54, -inf }
 0x857   :  { %743 = vmax.xlane.f32.xlu1 %v742_v57 }
 0x868   :  { %859 = vrot.lane.b32.xlu1 %v5301_v60, %s5186_s6 }
 0x8e2   :  { %v741_v58 = vpop.xlane.xlu0 %740 }
 0x8e3   :  { %v745_v59 = vsub.f32 %v733_v51, %v741_v58 }
 0x8e4   :  { %v744_v61 = vpop.xlane.xlu1 %743 }
 0x8e5   :  { %v747_v62 = vmul.f32 1.442695, %v745_v59  ;;  %v746_v63 = vsub.f32 %v736_v54, %v744_v61 }
 0x8e7   :  { %5007 = vpow2.f32 %v747_v62  ;;  %v749_v0 = vmul.f32 1.442695, %v746_v63 }
 0x8e8   :  { %v860_v24 = vpop.permute.xlu1 %859 }
 0x8e9   :  { %5009 = vpow2.f32 %v749_v0 }
 0x8f1   :  { %v5008_v1 = vpop.eup %5007 }
 0x8f2   :  { %v751_v2 = vsel %vm401_vm13, %v5008_v1, 0.0 }
 0x8f3   :  { %v5010_v3 = vpop.eup %5009  ;;  %752 = vadd.xlane.f32.xlu0 %v751_v2 }
 0x8f4   :  { %v754_v4 = vsel %vm401_vm13, %v5010_v3, 0.0 }
 0x8f7   :  { %755 = vadd.xlane.f32.xlu0 %v754_v4 }
 0x90d   :  { %762 = vrot.lane.b32.xlu0 %v5301_v60, %s5187_s7 }
 0x980   :  { %v753_v5 = vpop.xlane.xlu0 %752 }
 0x981   :  { %5011 = vrcp.f32 %v753_v5 }
 0x984   :  { %v756_v9 = vpop.xlane.xlu0 %755 }
 0x985   :  { %5013 = vrcp.f32 %v756_v9 }
 0x988   :  { %v763_v11 = vpop.permute.xlu0 %762 }
 0x989   :  { %4545 = vmatpush3.bf16.msra.mxu0 %v763_v11 }
 0x98a   :  { %4556 = vmatprep.subr.bf16.mxu0 %v5179_v10 }
 0x98b   :  { %v5012_v12 = vpop.eup %5011 }
 0x98c   :  { %v759_v20 = vmul.f32 %v5012_v12, %v5008_v1 }
 0x98f   :  { %v5014_v14 = vpop.eup %5013 }
 0x990   :  { %v760_v21 = vmul.f32 %v5014_v14, %v5010_v3 }
 0x992   :  { %v761_v22 = vpack.c.bf16 %v760_v21, %v759_v20  ;;  %v4220_v21 = vld [vmem:[%s6018_s2 + $0x1] ss:$0 sm:$0xff] }
 0x994   :  { %4547 = vmatmul.mubr.msk.bf16.vlgmr.msra.gmra.mrb[12].mxu0 %vm401_vm13, %v761_v22 }
 0x995   :  { %4557 = vmatpush3.bf16.msra.mxu0 %v867_v23  ;;  %4558 = vmatprep.mubr.msk.bf16.mxu0 %vm5180_vm4, %v5179_v10 }
 0x996   :  { %4568 = vmatprep.subr.bf16.mxu0 %v5179_v10 }
 0x99c   :  { %4559 = vmatmul.mubr.msk.bf16.vlgmr.msra.gmra.mrb[16].mxu0 %vm352_vm6, %v860_v24 }
 0x99d   :  { %4570 = vmatprep.mubr.msk.bf16.mxu0 %vm5180_vm4, %v5179_v10 }
 0xa67   :  { %v802_v29 = vpop.f32.mrb[12].mxu0 }
 0xa68   :  { %v4548_v30 = vpop.f32.mrb[13].mxu0 }
 0xa69   :  { %v805_v31 = vpop.f32.mrb[14].mxu0 }
 0xa6a   :  { %v809_v32 = vpack.c.bf16 %v805_v31, %v802_v29  ;;  %v4549_v33 = vpop.f32.mrb[15].mxu0 }
 0xa6c   :  { %4553 = vmatmul.mubr.msk.bf16.vlgmr.msra.gmra.mrb[24].mxu1 %vm352_vm6, %v809_v32 }
 0xa6d   :  { %4564 = vmatprep.mubr.msk.bf16.mxu1 %vm5180_vm4, %v5179_v10 }
 0xa6f   :  { %v903_v34 = vpop.f32.mrb[16].mxu0 }
 0xa70   :  { %v904_v35 = vadd.f32 %v903_v34, %v5336_v16  ;;  %v4560_v36 = vpop.f32.mrb[17].mxu0 }
 0xa71   :  { %v906_v37 = vpop.f32.mrb[18].mxu0 }
 0xa72   :  { %v907_v38 = vadd.f32 %v906_v37, %v5339_v19  ;;  %v4561_v39 = vpop.f32.mrb[19].mxu0  ;;  %v910_v40 = vsel %vm401_vm13, %v904_v35, -inf }
 0xa73   :  { %911 = vmax.xlane.f32.xlu0 %v910_v40 }
 0xa74   :  { %v913_v41 = vsel %vm401_vm13, %v907_v38, -inf }
 0xa75   :  { %914 = vmax.xlane.f32.xlu1 %v913_v41  ;;  %v4957_v41 = vld [vmem:[#allocation2 + $0x20] sm:$0xff]  }
 0xb00   :  { %v912_v42 = vpop.xlane.xlu0 %911 }
 0xb01   :  { %v916_v43 = vsub.f32 %v904_v35, %v912_v42  ;;  %v4958_v42 = vld [vmem:[#allocation2 + $0x28] sm:$0xff]  }
 0xb02   :  { %v915_v44 = vpop.xlane.xlu1 %914 }
 0xb03   :  { %v918_v46 = vmul.f32 1.442695, %v916_v43  ;;  %v917_v47 = vsub.f32 %v907_v38, %v915_v44  ;;  %v4959_v43 = vld [vmem:[#allocation2 + $0x30] sm:$0xff]   ;;  %v4960_v44 = vld [vmem:[#allocation2 + $0x38] sm:$0xff]  }
 0xb05   :  { %5015 = vpow2.f32 %v918_v46  ;;  %v920_v49 = vmul.f32 1.442695, %v917_v47  ;;  %v34_v46 = vld [vmem:[%s6017_s1 + $0x10] sm:$0xff]  ;;  %v35_v47 = vld [vmem:[%s6017_s1 + $0x18] sm:$0xff] }
 0xb07   :  { %5017 = vpow2.f32 %v920_v49  ;;  %v5453_v49 = vpack.c.bf16 %v35_v47, %v34_v46 }
 0xb0f   :  { %v5016_v50 = vpop.eup %5015 }
 0xb10   :  { %v922_v51 = vsel %vm401_vm13, %v5016_v50, 0.0 }
 0xb11   :  { %v5018_v52 = vpop.eup %5017  ;;  %923 = vadd.xlane.f32.xlu0 %v922_v51  ;;  %v37_v51 = vld [vmem:[%s6017_s1 + $0x28] sm:$0xff] }
 0xb12   :  { %v925_v53 = vsel %vm401_vm13, %v5018_v52, 0.0 }
 0xb15   :  { %926 = vadd.xlane.f32.xlu0 %v925_v53 }
 0xb2b   :  { %933 = vrot.lane.b32.xlu0 %v5301_v60, %s5188_s8 }
 0xb3f   :  { %v850_v54 = vpop.f32.mrb[24].mxu1 }
 0xb40   :  { %v857_v55 = vadd.f32 %v850_v54, %v5383_v45  ;;  %v4554_v56 = vpop.f32.mrb[25].mxu1  ;;  %v180_v45 = vld [vmem:[#allocation2 + $0x1c] sm:$0xf] }
 0xb41   :  { %v853_v57 = vpop.f32.mrb[26].mxu1 }
 0xb42   :  { %v858_v58 = vadd.f32 %v853_v57, %v5385_v48  ;;  %v4555_v59 = vpop.f32.mrb[27].mxu1  ;;  %v985_v48 = vsel %vm356_vm5, %v180_v45, 0 }
 0xb43   :  { %4569 = vmatpush3.bf16.msra.mxu0 %v985_v48 }
 0xb44   :  { %4582 = vmatprep.subr.bf16.mxu0 %v4959_v43 }
 0xb9e   :  { %v924_v61 = vpop.xlane.xlu0 %923 }
 0xb9f   :  { %5019 = vrcp.f32 %v924_v61 }
 0xba2   :  { %v927_v62 = vpop.xlane.xlu0 %926 }
 0xba3   :  { %5021 = vrcp.f32 %v927_v62 }
 0xba6   :  { %v934_v63 = vpop.permute.xlu0 %933 }
 0xba7   :  { %4563 = vmatpush3.bf16.msra.mxu1 %v934_v63 }
 0xba8   :  { %4574 = vmatprep.subr.bf16.mxu1 %v5179_v10 }
 0xba9   :  { %v5020_v0 = vpop.eup %5019 }
 0xbaa   :  { %v930_v2 = vmul.f32 %v5020_v0, %v5016_v50  ;;  %v36_v50 = vld [vmem:[%s6017_s1 + $0x20] sm:$0xff] }
 0xbad   :  { %v5022_v1 = vpop.eup %5021 }
 0xbae   :  { %v931_v60 = vmul.f32 %v5022_v1, %v5018_v52  ;;  %v5463_v52 = vpack.c.bf16 %v37_v51, %v36_v50  ;;  %v4225_v1 = vld [vmem:[%s6018_s2 + $0x3] ss:$0 sm:$0xff] }
 0xbb0   :  { %v932_v3 = vpack.c.bf16 %v931_v60, %v930_v2 }
 0xbb2   :  { %4565 = vmatmul.mubr.msk.bf16.vlgmr.msra.gmra.mrb[28].mxu1 %vm401_vm13, %v932_v3 }
 0xbb3   :  { %4578 = vmatprep.mubr.msk.bf16.mxu1 %vm5180_vm4, %v5179_v10  ;;  %4575 = vmatpush3.bf16.msra.mxu1 %v4957_v41 }
 0xbb4   :  { %4576 = vmatprep.subr.bf16.mxu1 %v5179_v10 }
 0xbb7   :  { %4577 = vmatpush3.bf16.msra.mxu1 %v4958_v42 }
 0xbb8   :  { %4590 = vmatprep.subr.bf16.mxu1 %v5179_v10 }
 0xc85   :  { %v973_v4 = vpop.f32.mrb[28].mxu1 }
 0xc86   :  { %v4566_v5 = vpop.f32.mrb[29].mxu1 }
 0xc87   :  { %v976_v9 = vpop.f32.mrb[30].mxu1 }
 0xc88   :  { %v980_v11 = vpack.c.bf16 %v976_v9, %v973_v4  ;;  %v4567_v12 = vpop.f32.mrb[31].mxu1  ;;  %v4221_v9 = vld [vmem:[%s6018_s2 + $0x2] ss:$0 sm:$0xff] }
 0xc8a   :  { %4571 = vmatmul.mubr.msk.bf16.vlgmr.msra.gmra.mrb[20].mxu0 %vm352_vm6, %v980_v11 }
 0xc8b   :  { %4583 = vmatpush3.bf16.msra.mxu0 %v4959_v43  ;;  %4586 = vmatprep.mubr.msk.bf16.mxu0 %vm220_vm3, %v5453_v49 }
 0xc8c   :  { %4584 = vmatprep.subr.bf16.mxu0 %v4960_v44 }
 0xc8f   :  { %4585 = vmatpush3.bf16.msra.mxu0 %v4960_v44 }
 0xc90   :  { %4596 = vmatprep.subr.bf16.mxu0 %v5179_v10 }
 0xc92   :  { %4587 = vmatmul.mubr.msk.bf16.vlgmr.msra.gmra.mrb[24].mxu0 %vm220_vm3, %v5463_v52 }
 0xc93   :  { %4600 = vmatprep.mubr.msk.bf16.mxu0 %vm5180_vm4, %v5179_v10 }
 0xd5d   :  { %v1021_v14 = vpop.f32.mrb[20].mxu0 }
 0xd5e   :  { %v1028_v18 = vadd.f32 %v1021_v14, %v857_v55  ;;  %v4572_v20 = vpop.f32.mrb[21].mxu0 }
 0xd5f   :  { %v1024_v22 = vpop.f32.mrb[22].mxu0 }
 0xd60   :  { %v1030_v23 = vadd.f32 %v1028_v18, %v5276_v26  ;;  %v1029_v24 = vadd.f32 %v1024_v22, %v858_v58  ;;  %v4573_v25 = vpop.f32.mrb[23].mxu0 }
 0xd62   :  { %v5432_v28 = vadd.f32 %v4220_v21, %v1030_v23  ;;  %v1031_v29 = vadd.f32 %v1029_v24, %v5278_v27 }
 0xd64   :  { %v5435_v30 = vadd.f32 %v4220_v21, %v1031_v29  ;;  %v1038_v31 = vsel %vm220_vm3, %v5432_v28, 0.0 }
 0xd65   :  { %1039 = vadd.xlane.f32.xlu1 %v1038_v31  ;;  %v4588_v2 = vpop.f32.mrb[24].mxu0 }
 0xd66   :  { %v1041_v32 = vsel %vm220_vm3, %v5435_v30, 0.0  ;;  %v1190_v60 = vadd.f32 %v4588_v2, %v4225_v1  ;;  %v1181_v3 = vpop.f32.mrb[25].mxu0 }
 0xd67   :  { %v4589_v45 = vpop.f32.mrb[26].mxu0  ;;  %v1182_v23 = vadd.f32 %v4225_v1, %v1181_v3 }
 0xd68   :  { %v1193_v48 = vadd.f32 %v4589_v45, %v4225_v1  ;;  %v1184_v4 = vpop.f32.mrb[27].mxu0 }
 0xd69   :  { %1042 = vadd.xlane.f32.xlu1 %v1041_v32  ;;  %v1185_v24 = vadd.f32 %v4225_v1, %v1184_v4 }
 0xd6a   :  { %v5476_v5 = vpack.c.bf16 %v1193_v48, %v1190_v60 }
 0xd6b   :  { %v5517_v50 = vpack.c.bf16 %v1185_v24, %v1182_v23 }
 0xdf2   :  { %v1040_v33 = vpop.xlane.xlu1 %1039 }
 0xdf3   :  { %v1044_v34 = vmul.f32 0.03125, %v1040_v33 }
 0xdf5   :  { %v1046_v26 = vsub.f32 %v5432_v28, %v1044_v34 }
 0xdf6   :  { %v1043_v35 = vpop.xlane.xlu1 %1042 }
 0xdf7   :  { %v1045_v36 = vmul.f32 0.03125, %v1043_v35  ;;  %v1048_v37 = vmul.f32 %v1046_v26, %v1046_v26  ;;  %v166_v35 = vshra.s32 %v5264_v17, 4 }
 0xdf9   :  { %v1047_v38 = vsub.f32 %v5435_v30, %v1045_v36  ;;  %v1050_v27 = vsel %vm220_vm3, %v1048_v37, 0.0  ;;  %vm167_vm14 = vcmp.eq.s32.totalorder %v152_v8, %v166_v35  ;;  %vm168_vm15 = vcmp.eq.s32.totalorder %v153_v13, %v166_v35 }
 0xdfa   :  { %1051 = vadd.xlane.f32.xlu1 %v1050_v27  ;;  %v5504_v36 = vsel %vm167_vm14, 0.0, %v5184_v15 }
 0xdfb   :  { %v1049_v39 = vmul.f32 %v1047_v38, %v1047_v38 }
 0xdfd   :  { %v1053_v40 = vsel %vm220_vm3, %v1049_v39, 0.0 }
 0xdfe   :  { %1054 = vadd.xlane.f32.xlu0 %v1053_v40 }
 0xe87   :  { %v1052_v53 = vpop.xlane.xlu1 %1051 }
 0xe88   :  { %v1056_v54 = vmul.f32 0.03125, %v1052_v53 }
 0xe8a   :  { %v1058_v55 = vadd.f32 1e-05, %v1056_v54 }
 0xe8b   :  { %v1055_v56 = vpop.xlane.xlu0 %1054 }
 0xe8c   :  { %v1057_v57 = vmul.f32 0.03125, %v1055_v56  ;;  %5023 = vrsqrt.f32 %v1058_v55 }
 0xe8e   :  { %v1059_v58 = vadd.f32 1e-05, %v1057_v57 }
 0xe90   :  { %5025 = vrsqrt.f32 %v1059_v58 }
 0xe96   :  { %v5024_v59 = vpop.eup %5023 }
 0xe97   :  { %v1062_v62 = vmul.f32 %v5024_v59, %v1046_v26 }
 0xe9a   :  { %v5026_v61 = vpop.eup %5025 }
 0xe9b   :  { %v1063_v63 = vmul.f32 %v5026_v61, %v1047_v38  ;;  %v5507_v38 = vsel %vm168_vm15, 0.0, %v5184_v15 }
 0xe9d   :  { %v1064_v0 = vpack.c.bf16 %v1063_v63, %v1062_v62 }
 0xe9f   :  { %4579 = vmatmul.mubr.msk.bf16.vlgmr.msra.gmra.mrb[32].mxu1 %vm220_vm3, %v1064_v0 }
 0xea0   :  { %4592 = vmatprep.mubr.msk.bf16.mxu1 %vm5180_vm4, %v5179_v10 }
 0xf72   :  { %v1118_v11 = vpop.f32.mrb[32].mxu1 }
 0xf73   :  { %v4580_v12 = vpop.f32.mrb[33].mxu1  ;;  %v1119_v18 = vadd.f32 %v4221_v9, %v1118_v11 }
 0xf74   :  { %v1121_v14 = vpop.f32.mrb[34].mxu1 }
 0xf75   :  { %v1122_v20 = vadd.f32 %v4221_v9, %v1121_v14  ;;  %v4581_v21 = vpop.f32.mrb[35].mxu1 }
 0xf77   :  { %v5481_v22 = vpack.c.bf16 %v1122_v20, %v1119_v18 }
 0xf79   :  { %1357 = vrot.lane.b32.xlu1 %v5481_v22, %s5182_s29 }
 0xfa2   :  { %1196 = vxpose.xlu1.b32.start [1/4] (short) (narrow) %v1182_v23, 32 }
 0xfa6   :  { %1197 = vxpose.xlu1.b32.cont [2/4] (short) (narrow) %v1185_v24, 32 }
 0xfaa   :  { %1198 = vxpose.xlu1.b32.cont [3/4] (short) (narrow) %v1190_v60, 32 }
 0xfae   :  { %1199 = vxpose.xlu1.b32.end [4/4] (short) (narrow) %v1193_v48, 32 }
 0xfcc   :  { %1307 = vrot.lane.b32.xlu1 %v5476_v5, %s5181_s28 }
 0xfeb   :  { %v1358_v25 = vpop.permute.xlu1 %1357 }
0x1022   :  { %v1212_v29 = vpop.trf.xlu1 }
0x1026   :  { %v1213_v31 = vpop.trf.xlu1 }
0x1027   :  { %v1228_v32 = vpack.c.bf16 %v1213_v31, %v1212_v29 }
0x1029   :  { %v1360_v33 = vrot.slane %v1228_v32, 4  ;;  %v1237_v34 = vsel %vm356_vm5, %v1228_v32, 0 }
0x102a   :  { %4591 = vmatpush3.bf16.msra.mxu1 %v1237_v34  ;;  %v5523_v58 = vpop.trf.xlu1 }
0x102b   :  { %4604 = vmatprep.subr.bf16.mxu1 %v5179_v10  ;;  %v1365_v26 = vsel %vm356_vm5, %v1360_v33, 0 }
0x102d   :  { %4593 = vmatmul.mubr.msk.bf16.vlgmr.msra.gmra.mrb[36].mxu1 %vm352_vm6, %v5481_v22 }
0x102e   :  { %4605 = vmatpush3.bf16.msra.mxu1 %v1365_v26  ;;  %4606 = vmatprep.mubr.msk.bf16.mxu1 %vm5180_vm4, %v5179_v10  ;;  %v5525_v1 = vpop.trf.xlu1 }
0x102f   :  { %4618 = vmatprep.subr.bf16.mxu1 %v5179_v10 }
0x1035   :  { %4607 = vmatmul.mubr.msk.bf16.vlgmr.msra.gmra.mrb[40].mxu1 %vm352_vm6, %v1358_v25 }
0x1036   :  { %4620 = vmatprep.mubr.msk.bf16.mxu1 %vm5180_vm4, %v5179_v10 }
0x103e   :  { %v1308_v4 = vpop.permute.xlu1 %1307 }
0x1100   :  { %v1273_v37 = vpop.f32.mrb[36].mxu1 }
0x1101   :  { %v1274_v27 = vadd.f32 %v1273_v37, %v5504_v36  ;;  %v4594_v39 = vpop.f32.mrb[37].mxu1 }
0x1102   :  { %v1276_v40 = vpop.f32.mrb[38].mxu1 }
0x1103   :  { %v1277_v41 = vadd.f32 %v1276_v40, %v5507_v38  ;;  %v4595_v17 = vpop.f32.mrb[39].mxu1  ;;  %v1280_v6 = vsel %vm220_vm3, %v1274_v27, -inf }
0x1104   :  { %1281 = vmax.xlane.f32.xlu0 %v1280_v6  ;;  %v190_v6 = vld [vmem:[#allocation2 + $0x44] sm:$0xf] }
0x1105   :  { %v1283_v7 = vsel %vm220_vm3, %v1277_v41, -inf }
0x1108   :  { %1284 = vmax.xlane.f32.xlu0 %v1283_v7  ;;  %v1401_v8 = vpop.f32.mrb[40].mxu1  ;;  %v1486_v7 = vsel %vm356_vm5, %v190_v6, 0 }
0x1109   :  { %v1402_v13 = vadd.f32 %v1401_v8, %v5504_v36  ;;  %v4608_v42 = vpop.f32.mrb[41].mxu1  ;;  %4619 = vmatpush3.bf16.msra.mxu1 %v1486_v7 }
0x110a   :  { %v1404_v43 = vpop.f32.mrb[42].mxu1  ;;  %4630 = vmatprep.subr.bf16.mxu1 %v5179_v10 }
0x110b   :  { %v1405_v15 = vadd.f32 %v1404_v43, %v5507_v38  ;;  %v4609_v44 = vpop.f32.mrb[43].mxu1  ;;  %v1408_v46 = vsel %vm220_vm3, %v1402_v13, -inf }
0x110c   :  { %1409 = vmax.xlane.f32.xlu0 %v1408_v46  ;;  %v5554_v46 = vpack.c.bf16 %v5525_v1, %v5523_v58 }
0x110d   :  { %v1411_v47 = vsel %vm220_vm3, %v1405_v15, -inf }
0x1110   :  { %1412 = vmax.xlane.f32.xlu0 %v1411_v47 }
0x1126   :  { %1305 = vrot.lane.b32.xlu0 %v5517_v50, %s5181_s28 }
0x112a   :  { %1431 = vrot.lane.b32.xlu0 %v5517_v50, %s5189_s20 }
0x1191   :  { %v1282_v51 = vpop.xlane.xlu0 %1281 }
0x1192   :  { %v1286_v53 = vsub.f32 %v1274_v27, %v1282_v51 }
0x1194   :  { %v1288_v54 = vmul.f32 1.442695, %v1286_v53 }
0x1195   :  { %v1285_v55 = vpop.xlane.xlu0 %1284 }
0x1196   :  { %5027 = vpow2.f32 %v1288_v54  ;;  %v1287_v56 = vsub.f32 %v1277_v41, %v1285_v55  ;;  %v189_v41 = vld [vmem:[#allocation2 + $0x40] sm:$0xf]  ;;  %v1582_v55 = vsel %vm356_vm5, %v5554_v46, 0 }
0x1197   :  { %v1533_v17 = vsel %vm356_vm5, %v189_v41, 0 }
0x1198   :  { %v1290_v57 = vmul.f32 1.442695, %v1287_v56 }
0x1199   :  { %v1410_v59 = vpop.xlane.xlu0 %1409 }
0x119a   :  { %5029 = vpow2.f32 %v1290_v57  ;;  %v1414_v61 = vsub.f32 %v1402_v13, %v1410_v59 }
0x119c   :  { %v1416_v62 = vmul.f32 1.442695, %v1414_v61 }
0x119d   :  { %v1413_v63 = vpop.xlane.xlu0 %1412 }
0x119e   :  { %5031 = vpow2.f32 %v1416_v62  ;;  %v1415_v0 = vsub.f32 %v1405_v15, %v1413_v63 }
0x11a0   :  { %v5028_v2 = vpop.eup %5027  ;;  %v1418_v60 = vmul.f32 1.442695, %v1415_v0 }
0x11a1   :  { %v1306_v3 = vpop.permute.xlu0 %1305  ;;  %v1292_v45 = vsel %vm220_vm3, %v5028_v2, 0.0 }
0x11a2   :  { %5033 = vpow2.f32 %v1418_v60  ;;  %1293 = vadd.xlane.f32.xlu0 %v1292_v45  ;;  %4597 = vmatpush3.bf16.msra.mxu0 %v1306_v3 }
0x11a3   :  { %4598 = vmatprep.subr.bf16.mxu0 %v5179_v10 }
0x11a4   :  { %v5030_v48 = vpop.eup %5029 }
0x11a5   :  { %v1295_v9 = vsel %vm220_vm3, %v5030_v48, 0.0  ;;  %v1432_v20 = vpop.permute.xlu0 %1431 }
0x11a6   :  { %1296 = vadd.xlane.f32.xlu0 %v1295_v9  ;;  %4599 = vmatpush3.bf16.msra.mxu0 %v1308_v4 }
0x11a7   :  { %4610 = vmatprep.subr.bf16.mxu0 %v5179_v10 }
0x11a8   :  { %v5032_v11 = vpop.eup %5031 }
0x11a9   :  { %v1420_v12 = vsel %vm220_vm3, %v5032_v11, 0.0 }
0x11aa   :  { %1421 = vadd.xlane.f32.xlu0 %v1420_v12 }
0x11ac   :  { %v5034_v14 = vpop.eup %5033 }
0x11ad   :  { %v1423_v18 = vsel %vm220_vm3, %v5034_v14, 0.0 }
0x11ae   :  { %1424 = vadd.xlane.f32.xlu0 %v1423_v18 }
0x11c4   :  { %1433 = vrot.lane.b32.xlu0 %v5476_v5, %s5189_s20 }
0x11c8   :  { %1576 = vrot.lane.b32.xlu0 %v5481_v22, %s5185_s5 }
0x122f   :  { %v1294_v21 = vpop.xlane.xlu0 %1293 }
0x1230   :  { %5035 = vrcp.f32 %v1294_v21 }
0x1233   :  { %v1297_v23 = vpop.xlane.xlu0 %1296 }
0x1234   :  { %5037 = vrcp.f32 %v1297_v23 }
0x1237   :  { %v1422_v24 = vpop.xlane.xlu0 %1421 }
0x1238   :  { %5039 = vrcp.f32 %v1422_v24 }
0x123a   :  { %v5036_v29 = vpop.eup %5035 }
0x123b   :  { %v1425_v25 = vpop.xlane.xlu0 %1424  ;;  %v1300_v32 = vmul.f32 %v5036_v29, %v5028_v2 }
0x123c   :  { %5041 = vrcp.f32 %v1425_v25 }
0x123e   :  { %v5038_v31 = vpop.eup %5037 }
0x123f   :  { %v1301_v33 = vmul.f32 %v5038_v31, %v5030_v48  ;;  %v1434_v39 = vpop.permute.xlu0 %1433 }
0x1241   :  { %v1302_v34 = vpack.c.bf16 %v1301_v33, %v1300_v32 }
0x1242   :  { %v5040_v26 = vpop.eup %5039 }
0x1243   :  { %4601 = vmatmul.mubr.msk.bf16.vlgmr.msra.gmra.mrb[28].mxu0 %vm220_vm3, %v1302_v34  ;;  %v1428_v37 = vmul.f32 %v5040_v26, %v5032_v11  ;;  %v1577_v56 = vpop.permute.xlu0 %1576 }
0x1244   :  { %4611 = vmatpush3.bf16.msra.mxu0 %v1432_v20  ;;  %4614 = vmatprep.mubr.msk.bf16.mxu0 %vm5180_vm4, %v5179_v10 }
0x1245   :  { %4612 = vmatprep.subr.bf16.mxu0 %v5179_v10 }
0x1246   :  { %v5042_v35 = vpop.eup %5041 }
0x1247   :  { %v1429_v27 = vmul.f32 %v5042_v35, %v5034_v14 }
0x1248   :  { %4613 = vmatpush3.bf16.msra.mxu0 %v1434_v39  ;;  %v1751_v39 = vrot.slane %v5554_v46, 4 }
0x1249   :  { %v1430_v40 = vpack.c.bf16 %v1429_v27, %v1428_v37  ;;  %4624 = vmatprep.subr.bf16.mxu0 %v5179_v10 }
0x124a   :  { %v1756_v6 = vsel %vm356_vm5, %v1751_v39, 0 }
0x124b   :  { %4615 = vmatmul.mubr.msk.bf16.vlgmr.msra.gmra.mrb[32].mxu0 %vm220_vm3, %v1430_v40 }
0x124c   :  { %4626 = vmatprep.mubr.msk.bf16.mxu0 %vm5180_vm4, %v5179_v10  ;;  %4625 = vmatpush3.bf16.msra.mxu0 %v1533_v17 }
0x124d   :  { %4636 = vmatprep.subr.bf16.mxu0 %v5179_v10 }
0x1316   :  { %v1348_v8 = vpop.f32.mrb[28].mxu0 }
0x1317   :  { %v4602_v13 = vpop.f32.mrb[29].mxu0 }
0x1318   :  { %v1351_v42 = vpop.f32.mrb[30].mxu0 }
0x1319   :  { %v1355_v43 = vpack.c.bf16 %v1351_v42, %v1348_v8  ;;  %v4603_v15 = vpop.f32.mrb[31].mxu0  ;;  %v191_v8 = vld [vmem:[#allocation2 + $0x48] sm:$0xf] }
0x131a   :  { %v1703_v13 = vsel %vm356_vm5, %v191_v8, 0 }
0x131b   :  { %4627 = vmatmul.mubr.msk.bf16.vlgmr.msra.gmra.mrb[36].mxu0 %vm352_vm6, %v1355_v43 }
0x131c   :  { %4640 = vmatprep.mubr.msk.bf16.mxu0 %vm5180_vm4, %v5179_v10 }
0x131e   :  { %v1474_v44 = vpop.f32.mrb[32].mxu0 }
0x131f   :  { %v4616_v47 = vpop.f32.mrb[33].mxu0 }
0x1320   :  { %v1477_v51 = vpop.f32.mrb[34].mxu0 }
0x1321   :  { %v1481_v53 = vpack.c.bf16 %v1477_v51, %v1474_v44  ;;  %v4617_v54 = vpop.f32.mrb[35].mxu0 }
0x1323   :  { %4621 = vmatmul.mubr.msk.bf16.vlgmr.msra.gmra.mrb[44].mxu1 %vm352_vm6, %v1481_v53 }
0x1324   :  { %4631 = vmatpush3.bf16.msra.mxu1 %v1582_v55  ;;  %4632 = vmatprep.mubr.msk.bf16.mxu1 %vm5180_vm4, %v5179_v10 }
0x1325   :  { %4644 = vmatprep.subr.bf16.mxu1 %v5179_v10 }
0x132b   :  { %4633 = vmatmul.mubr.msk.bf16.vlgmr.msra.gmra.mrb[48].mxu1 %vm352_vm6, %v1577_v56 }
0x132c   :  { %4646 = vmatprep.mubr.msk.bf16.mxu1 %vm5180_vm4, %v5179_v10  ;;  %4645 = vmatpush3.bf16.msra.mxu1 %v1703_v13 }
0x132d   :  { %4656 = vmatprep.subr.bf16.mxu1 %v5179_v10 }
0x13ee   :  { %v1569_v57 = vpop.f32.mrb[36].mxu0 }
0x13ef   :  { %v4628_v58 = vpop.f32.mrb[37].mxu0 }
0x13f0   :  { %v1572_v59 = vpop.f32.mrb[38].mxu0 }
0x13f1   :  { %v4629_v61 = vpop.f32.mrb[39].mxu0 }
0x13f6   :  { %v1522_v62 = vpop.f32.mrb[44].mxu1 }
0x13f7   :  { %v5565_v63 = vadd.f32 %v1569_v57, %v1522_v62  ;;  %v4622_v0 = vpop.f32.mrb[45].mxu1 }
0x13f8   :  { %v1525_v1 = vpop.f32.mrb[46].mxu1 }
0x13f9   :  { %v5567_v2 = vadd.f32 %v1572_v59, %v1525_v1  ;;  %v4623_v60 = vpop.f32.mrb[47].mxu1 }
0x13fe   :  { %v1618_v3 = vpop.f32.mrb[48].mxu1 }
0x13ff   :  { %v1619_v45 = vadd.f32 %v1618_v3, %v5504_v36  ;;  %v4634_v48 = vpop.f32.mrb[49].mxu1 }
0x1400   :  { %v1621_v4 = vpop.f32.mrb[50].mxu1 }
0x1401   :  { %v1622_v9 = vadd.f32 %v1621_v4, %v5507_v38  ;;  %v4635_v11 = vpop.f32.mrb[51].mxu1  ;;  %v1625_v12 = vsel %vm220_vm3, %v1619_v45, -inf }
0x1402   :  { %1626 = vmax.xlane.f32.xlu0 %v1625_v12 }
0x1403   :  { %v1628_v14 = vsel %vm220_vm3, %v1622_v9, -inf }
0x1404   :  { %1629 = vmax.xlane.f32.xlu1 %v1628_v14 }
0x1415   :  { %1650 = vrot.lane.b32.xlu1 %v5476_v5, %s5190_s21 }
0x1419   :  { %1748 = vrot.lane.b32.xlu1 %v5481_v22, %s5186_s6 }
0x148f   :  { %v1627_v18 = vpop.xlane.xlu0 %1626 }
0x1490   :  { %v1631_v20 = vsub.f32 %v1619_v45, %v1627_v18 }
0x1491   :  { %v1630_v21 = vpop.xlane.xlu1 %1629 }
0x1492   :  { %v1633_v23 = vmul.f32 1.442695, %v1631_v20  ;;  %v1632_v24 = vsub.f32 %v1622_v9, %v1630_v21 }
0x1494   :  { %5043 = vpow2.f32 %v1633_v23  ;;  %v1635_v25 = vmul.f32 1.442695, %v1632_v24 }
0x1495   :  { %v1651_v35 = vpop.permute.xlu1 %1650 }
0x1496   :  { %5045 = vpow2.f32 %v1635_v25 }
0x1499   :  { %v1749_v7 = vpop.permute.xlu1 %1748 }
0x149e   :  { %v5044_v29 = vpop.eup %5043 }
0x149f   :  { %v1637_v31 = vsel %vm220_vm3, %v5044_v29, 0.0 }
0x14a0   :  { %v5046_v32 = vpop.eup %5045  ;;  %1638 = vadd.xlane.f32.xlu0 %v1637_v31 }
0x14a1   :  { %v1640_v33 = vsel %vm220_vm3, %v5046_v32, 0.0 }
0x14a4   :  { %1641 = vadd.xlane.f32.xlu0 %v1640_v33 }
0x14ba   :  { %1648 = vrot.lane.b32.xlu0 %v5517_v50, %s5190_s21 }
0x152d   :  { %v1639_v22 = vpop.xlane.xlu0 %1638 }
0x152e   :  { %5047 = vrcp.f32 %v1639_v22 }
0x1531   :  { %v1642_v34 = vpop.xlane.xlu0 %1641 }
0x1532   :  { %5049 = vrcp.f32 %v1642_v34 }
0x1535   :  { %v1649_v26 = vpop.permute.xlu0 %1648 }
0x1536   :  { %4637 = vmatpush3.bf16.msra.mxu0 %v1649_v26 }
0x1537   :  { %4638 = vmatprep.subr.bf16.mxu0 %v5179_v10 }
0x1538   :  { %v5048_v37 = vpop.eup %5047 }
0x1539   :  { %v1645_v40 = vmul.f32 %v5048_v37, %v5044_v29 }
0x153a   :  { %4639 = vmatpush3.bf16.msra.mxu0 %v1651_v35 }
0x153b   :  { %4650 = vmatprep.subr.bf16.mxu0 %v5179_v10 }
0x153c   :  { %v5050_v27 = vpop.eup %5049 }
0x153d   :  { %v1646_v41 = vmul.f32 %v5050_v27, %v5046_v32 }
0x153f   :  { %v1647_v17 = vpack.c.bf16 %v1646_v41, %v1645_v40  ;;  %v4242_v40 = vld [vmem:[%s6018_s2 + $0x4] ss:$0 sm:$0xff] }
0x1541   :  { %4641 = vmatmul.mubr.msk.bf16.vlgmr.msra.gmra.mrb[40].mxu0 %vm220_vm3, %v1647_v17 }
0x1542   :  { %4651 = vmatpush3.bf16.msra.mxu0 %v1756_v6  ;;  %4652 = vmatprep.mubr.msk.bf16.mxu0 %vm5180_vm4, %v5179_v10 }
0x1543   :  { %4664 = vmatprep.subr.bf16.mxu0 %v5179_v10 }
0x1549   :  { %4653 = vmatmul.mubr.msk.bf16.vlgmr.msra.gmra.mrb[44].mxu0 %vm352_vm6, %v1749_v7 }
0x154a   :  { %4666 = vmatprep.mubr.msk.bf16.mxu0 %vm5180_vm4, %v5179_v10 }
0x1614   :  { %v1691_v42 = vpop.f32.mrb[40].mxu0 }
0x1615   :  { %v4642_v43 = vpop.f32.mrb[41].mxu0 }
0x1616   :  { %v1694_v15 = vpop.f32.mrb[42].mxu0 }
0x1617   :  { %v1698_v44 = vpack.c.bf16 %v1694_v15, %v1691_v42  ;;  %v4643_v46 = vpop.f32.mrb[43].mxu0 }
0x1619   :  { %4647 = vmatmul.mubr.msk.bf16.vlgmr.msra.gmra.mrb[52].mxu1 %vm352_vm6, %v1698_v44 }
0x161a   :  { %4660 = vmatprep.mubr.msk.bf16.mxu1 %vm5180_vm4, %v5179_v10 }
0x161c   :  { %v1792_v47 = vpop.f32.mrb[44].mxu0 }
0x161d   :  { %v1793_v51 = vadd.f32 %v1792_v47, %v5504_v36  ;;  %v4654_v53 = vpop.f32.mrb[45].mxu0 }
0x161e   :  { %v1795_v54 = vpop.f32.mrb[46].mxu0 }
0x161f   :  { %v1796_v55 = vadd.f32 %v1795_v54, %v5507_v38  ;;  %v4655_v56 = vpop.f32.mrb[47].mxu0  ;;  %v1799_v57 = vsel %vm220_vm3, %v1793_v51, -inf }
0x1620   :  { %1800 = vmax.xlane.f32.xlu0 %v1799_v57  ;;  %v4961_v57 = vld [vmem:[#allocation2 + $0x50] sm:$0xff]  }
0x1621   :  { %v1802_v58 = vsel %vm220_vm3, %v1796_v55, -inf }
0x1622   :  { %1803 = vmax.xlane.f32.xlu1 %v1802_v58  ;;  %v4962_v58 = vld [vmem:[#allocation2 + $0x58] sm:$0xff]  }
0x1633   :  { %1822 = vrot.lane.b32.xlu1 %v5517_v50, %s5191_s22 }
0x16ad   :  { %v1801_v59 = vpop.xlane.xlu0 %1800 }
0x16ae   :  { %v1805_v61 = vsub.f32 %v1793_v51, %v1801_v59 }
0x16af   :  { %v1804_v62 = vpop.xlane.xlu1 %1803 }
0x16b0   :  { %v1807_v0 = vmul.f32 1.442695, %v1805_v61  ;;  %v1806_v1 = vsub.f32 %v1796_v55, %v1804_v62 }
0x16b2   :  { %5051 = vpow2.f32 %v1807_v0  ;;  %v1809_v60 = vmul.f32 1.442695, %v1806_v1 }
0x16b3   :  { %v1823_v3 = vpop.permute.xlu1 %1822 }
0x16b4   :  { %5053 = vpow2.f32 %v1809_v60  ;;  %4657 = vmatpush3.bf16.msra.mxu1 %v1823_v3 }
0x16b5   :  { %4658 = vmatprep.subr.bf16.mxu1 %v5179_v10 }
0x16bc   :  { %v5052_v45 = vpop.eup %5051 }
0x16bd   :  { %v1811_v48 = vsel %vm220_vm3, %v5052_v45, 0.0 }
0x16be   :  { %v5054_v4 = vpop.eup %5053  ;;  %1812 = vadd.xlane.f32.xlu0 %v1811_v48 }
0x16bf   :  { %v1814_v9 = vsel %vm220_vm3, %v5054_v4, 0.0 }
0x16c2   :  { %1815 = vadd.xlane.f32.xlu0 %v1814_v9 }
0x16d8   :  { %1824 = vrot.lane.b32.xlu0 %v5476_v5, %s5191_s22 }
0x16ec   :  { %v1739_v50 = vpop.f32.mrb[52].mxu1 }
0x16ed   :  { %v1746_v11 = vadd.f32 %v1739_v50, %v5565_v63  ;;  %v4648_v12 = vpop.f32.mrb[53].mxu1  ;;  %v192_v63 = vld [vmem:[#allocation2 + $0x4c] sm:$0xf]  ;;  %v4963_v50 = vld [vmem:[#allocation2 + $0x60] sm:$0xff]  }
0x16ee   :  { %v1742_v14 = vpop.f32.mrb[54].mxu1  ;;  %v4965_v12 = vld [vmem:[#allocation2 + $0x70] sm:$0xff]  }
0x16ef   :  { %v1747_v18 = vadd.f32 %v1742_v14, %v5567_v2  ;;  %v4649_v20 = vpop.f32.mrb[55].mxu1  ;;  %v1877_v2 = vsel %vm356_vm5, %v192_v63, 0  ;;  %v4966_v14 = vld [vmem:[#allocation2 + $0x78] sm:$0xff]  }
0x16f0   :  { %4665 = vmatpush3.bf16.msra.mxu0 %v1877_v2  ;;  %v4968_v20 = vld [vmem:[#allocation2 + $0x88] sm:$0xff]  }
0x16f1   :  { %4678 = vmatprep.subr.bf16.mxu0 %v5179_v10 }
0x174b   :  { %v1813_v21 = vpop.xlane.xlu0 %1812 }
0x174c   :  { %5055 = vrcp.f32 %v1813_v21  ;;  %v4969_v21 = vld [vmem:[#allocation2 + $0x90] sm:$0xff]  }
0x174f   :  { %v1816_v23 = vpop.xlane.xlu0 %1815 }
0x1750   :  { %5057 = vrcp.f32 %v1816_v23  ;;  %v4970_v23 = vld [vmem:[#allocation2 + $0x98] sm:$0xff]  }
0x1753   :  { %v1825_v24 = vpop.permute.xlu0 %1824 }
0x1754   :  { %4659 = vmatpush3.bf16.msra.mxu1 %v1825_v24  ;;  %v4243_v24 = vld [vmem:[%s6018_s2 + $0x5] ss:$0 sm:$0xff] }
0x1755   :  { %4670 = vmatprep.subr.bf16.mxu1 %v5179_v10 }
0x1756   :  { %v5056_v25 = vpop.eup %5055 }
0x1757   :  { %v1819_v31 = vmul.f32 %v5056_v25, %v5052_v45 }
0x175a   :  { %v5058_v29 = vpop.eup %5057 }
0x175b   :  { %v1820_v5 = vmul.f32 %v5058_v29, %v5054_v4 }
0x175d   :  { %v1821_v32 = vpack.c.bf16 %v1820_v5, %v1819_v31 }
0x175f   :  { %4661 = vmatmul.mubr.msk.bf16.vlgmr.msra.gmra.mrb[56].mxu1 %vm220_vm3, %v1821_v32 }
0x1760   :  { %4674 = vmatprep.mubr.msk.bf16.mxu1 %vm5180_vm4, %v5179_v10  ;;  %4671 = vmatpush3.bf16.msra.mxu1 %v4961_v57 }
0x1761   :  { %4672 = vmatprep.subr.bf16.mxu1 %v5179_v10 }
0x1764   :  { %4673 = vmatpush3.bf16.msra.mxu1 %v4962_v58 }
0x1765   :  { %4698 = vmatprep.subr.bf16.mxu1 %v5179_v10 }
0x1832   :  { %v1865_v33 = vpop.f32.mrb[56].mxu1 }
0x1833   :  { %v4662_v22 = vpop.f32.mrb[57].mxu1 }
0x1834   :  { %v1868_v34 = vpop.f32.mrb[58].mxu1 }
0x1835   :  { %v1872_v26 = vpack.c.bf16 %v1868_v34, %v1865_v33  ;;  %v4663_v35 = vpop.f32.mrb[59].mxu1 }
0x1837   :  { %4667 = vmatmul.mubr.msk.bf16.vlgmr.msra.gmra.mrb[48].mxu0 %vm352_vm6, %v1872_v26 }
0x1838   :  { %4694 = vmatprep.mubr.msk.bf16.mxu0 %vm5180_vm4, %v5179_v10  ;;  %4679 = vmatpush3.bf16.msra.mxu0 %v4963_v50 }
0x1839   :  { %4680 = vmatprep.subr.bf16.mxu0 %v5179_v10 }
0x190a   :  { %v1913_v37 = vpop.f32.mrb[48].mxu0 }
0x190b   :  { %v1920_v27 = vadd.f32 %v1913_v37, %v1746_v11  ;;  %v4668_v39 = vpop.f32.mrb[49].mxu0  ;;  %v4964_v11 = vld [vmem:[#allocation2 + $0x68] sm:$0xff]  }
0x190c   :  { %v1916_v41 = vpop.f32.mrb[50].mxu0  ;;  %4681 = vmatpush3.bf16.msra.mxu0 %v4964_v11 }
0x190d   :  { %v1922_v17 = vadd.f32 %v1920_v27, %v5432_v28  ;;  %v1921_v6 = vadd.f32 %v1916_v41, %v1747_v18  ;;  %v4669_v7 = vpop.f32.mrb[51].mxu0  ;;  %4682 = vmatprep.subr.bf16.mxu0 %v5179_v10  ;;  %v4967_v18 = vld [vmem:[#allocation2 + $0x80] sm:$0xff]  }
0x190f   :  { %v5623_v8 = vadd.f32 %v4242_v40, %v1922_v17  ;;  %v1923_v13 = vadd.f32 %v1921_v6, %v5435_v30 }
0x1910   :  { %4683 = vmatpush3.bf16.msra.mxu0 %v4965_v12 }
0x1911   :  { %v5626_v42 = vadd.f32 %v4242_v40, %v1923_v13  ;;  %v1930_v43 = vsel %vm220_vm3, %v5623_v8, 0.0  ;;  %4684 = vmatprep.subr.bf16.mxu0 %v5179_v10 }
0x1912   :  { %1931 = vadd.xlane.f32.xlu1 %v1930_v43 }
0x1913   :  { %v1933_v15 = vsel %vm220_vm3, %v5626_v42, 0.0 }
0x1914   :  { %1934 = vadd.xlane.f32.xlu0 %v1933_v15  ;;  %4685 = vmatpush3.bf16.msra.mxu0 %v4966_v14 }
0x1915   :  { %4686 = vmatprep.subr.bf16.mxu0 %v5179_v10 }
0x1918   :  { %4687 = vmatpush3.bf16.msra.mxu0 %v4967_v18 }
0x1919   :  { %4688 = vmatprep.subr.bf16.mxu0 %v5179_v10 }
0x191c   :  { %4689 = vmatpush3.bf16.msra.mxu0 %v4968_v20 }
0x191d   :  { %4690 = vmatprep.subr.bf16.mxu0 %v5179_v10 }
0x1920   :  { %4691 = vmatpush3.bf16.msra.mxu0 %v4969_v21 }
0x1921   :  { %4692 = vmatprep.subr.bf16.mxu0 %v5179_v10 }
0x1924   :  { %4693 = vmatpush3.bf16.msra.mxu0 %v4970_v23 }
0x1925   :  { %4724 = vmatprep.subr.bf16.mxu0 %v5179_v10 }
0x199f   :  { %v1932_v44 = vpop.xlane.xlu1 %1931 }
0x19a0   :  { %v1936_v46 = vmul.f32 0.03125, %v1932_v44 }
0x19a1   :  { %v1935_v47 = vpop.xlane.xlu0 %1934 }
0x19a2   :  { %v1938_v28 = vsub.f32 %v5623_v8, %v1936_v46  ;;  %v1937_v51 = vmul.f32 0.03125, %v1935_v47  ;;  %v4255_v47 = vld [vmem:[%s6018_s2 + $0x6] ss:$0 sm:$0xff] }
0x19a4   :  { %v1939_v53 = vsub.f32 %v5626_v42, %v1937_v51  ;;  %v1940_v54 = vmul.f32 %v1938_v28, %v1938_v28 }
0x19a6   :  { %v1942_v30 = vsel %vm220_vm3, %v1940_v54, 0.0  ;;  %v1941_v55 = vmul.f32 %v1939_v53, %v1939_v53 }
0x19a7   :  { %1943 = vadd.xlane.f32.xlu1 %v1942_v30 }
0x19a8   :  { %v1945_v56 = vsel %vm220_vm3, %v1941_v55, 0.0 }
0x19a9   :  { %1946 = vadd.xlane.f32.xlu0 %v1945_v56 }
0x1a34   :  { %v1944_v59 = vpop.xlane.xlu1 %1943 }
0x1a35   :  { %v1948_v61 = vmul.f32 0.03125, %v1944_v59 }
0x1a36   :  { %v1947_v62 = vpop.xlane.xlu0 %1946 }
0x1a37   :  { %v1950_v0 = vadd.f32 1e-05, %v1948_v61  ;;  %v1949_v1 = vmul.f32 0.03125, %v1947_v62 }
0x1a39   :  { %5059 = vrsqrt.f32 %v1950_v0  ;;  %v1951_v60 = vadd.f32 1e-05, %v1949_v1 }
0x1a3b   :  { %5061 = vrsqrt.f32 %v1951_v60 }
0x1a43   :  { %v5060_v3 = vpop.eup %5059 }
0x1a44   :  { %v1954_v48 = vmul.f32 %v5060_v3, %v1938_v28 }
0x1a45   :  { %v5062_v45 = vpop.eup %5061 }
0x1a46   :  { %v1955_v4 = vmul.f32 %v5062_v45, %v1939_v53 }
0x1a48   :  { %v1956_v9 = vpack.c.bf16 %v1955_v4, %v1954_v48  ;;  %v4971_v4 = vld [vmem:[#allocation2 + $0xa0] sm:$0xff]  }
0x1a4a   :  { %4675 = vmatmul.mubr.msk.bf16.vlgmr.msra.gmra.mrb[60].mxu1 %vm220_vm3, %v1956_v9  ;;  %v4972_v9 = vld [vmem:[#allocation2 + $0xa8] sm:$0xff]  }
0x1a4b   :  { %4702 = vmatprep.mubr.msk.bf16.mxu1 %vm5180_vm4, %v5179_v10  ;;  %4699 = vmatpush3.bf16.msra.mxu1 %v4971_v4 }
0x1a4c   :  { %4700 = vmatprep.subr.bf16.mxu1 %v5179_v10 }
0x1a4f   :  { %4701 = vmatpush3.bf16.msra.mxu1 %v4972_v9 }
0x1a50   :  { %4706 = vmatprep.subr.bf16.mxu1 %v5179_v10 }
0x1b1d   :  { %v2010_v25 = vpop.f32.mrb[60].mxu1 }
0x1b1e   :  { %v2011_v29 = vadd.f32 %v4243_v24, %v2010_v25  ;;  %v4676_v31 = vpop.f32.mrb[61].mxu1 }
0x1b1f   :  { %v2013_v5 = vpop.f32.mrb[62].mxu1  ;;  %v4256_v31 = vld [vmem:[%s6018_s2 + $0x7] ss:$0 sm:$0xff] }
0x1b20   :  { %v2017_v32 = vmul.f32 %v2011_v29, %v2011_v29  ;;  %v2014_v63 = vadd.f32 %v4243_v24, %v2013_v5  ;;  %v4677_v2 = vpop.f32.mrb[63].mxu1 }
0x1b22   :  { %v2019_v33 = vmul.f32 %v2017_v32, %v2011_v29  ;;  %v2018_v22 = vmul.f32 %v2014_v63, %v2014_v63 }
0x1b24   :  { %v2021_v34 = vmul.f32 0.044715, %v2019_v33  ;;  %v2020_v26 = vmul.f32 %v2018_v22, %v2014_v63 }
0x1b26   :  { %v2023_v35 = vadd.f32 %v2021_v34, %v2011_v29  ;;  %v2022_v37 = vmul.f32 0.044715, %v2020_v26 }
0x1b28   :  { %v2025_v27 = vmul.f32 0.7978846, %v2023_v35  ;;  %v2024_v39 = vadd.f32 %v2022_v37, %v2014_v63 }
0x1b2a   :  { %5063 = vtanh.f32 %v2025_v27  ;;  %v2026_v40 = vmul.f32 0.7978846, %v2024_v39 }
0x1b2c   :  { %5065 = vtanh.f32 %v2026_v40 }
0x1b34   :  { %v5064_v41 = vpop.eup %5063 }
0x1b35   :  { %v2029_v17 = vadd.f32 1.0, %v5064_v41 }
0x1b36   :  { %v5066_v6 = vpop.eup %5065 }
0x1b37   :  { %v2031_v7 = vmul.f32 0.5, %v2029_v17  ;;  %v2030_v13 = vadd.f32 1.0, %v5066_v6 }
0x1b39   :  { %v2032_v43 = vmul.f32 0.5, %v2030_v13  ;;  %v2033_v15 = vmul.f32 %v2031_v7, %v2011_v29 }
0x1b3b   :  { %v2034_v44 = vmul.f32 %v2032_v43, %v2014_v63 }
0x1b3d   :  { %v2035_v46 = vpack.c.bf16 %v2034_v44, %v2033_v15 }
0x1b3f   :  { %4695 = vmatmul.mubr.bf16.vlgmr.msra.gmra.mrb[52].mxu0 %v2035_v46 }
0x1b40   :  { %4726 = vmatprep.mubr.msk.bf16.mxu0 %vm5180_vm4, %v5179_v10 }
0x1c12   :  { %v2118_v28 = vpop.f32.mrb[52].mxu0 }
0x1c13   :  { %v2125_v51 = vadd.f32 %v2118_v28, %v5623_v8  ;;  %v4696_v53 = vpop.f32.mrb[53].mxu0 }
0x1c14   :  { %v2121_v54 = vpop.f32.mrb[54].mxu0 }
0x1c15   :  { %v5658_v30 = vadd.f32 %v4255_v47, %v2125_v51  ;;  %v2126_v55 = vadd.f32 %v2121_v54, %v5626_v42  ;;  %v4697_v56 = vpop.f32.mrb[55].mxu0 }
0x1c17   :  { %v5661_v57 = vadd.f32 %v4255_v47, %v2126_v55  ;;  %v2180_v58 = vsel %vm220_vm3, %v5658_v30, 0.0 }
0x1c18   :  { %2181 = vadd.xlane.f32.xlu1 %v2180_v58 }
0x1c19   :  { %v2183_v59 = vsel %vm220_vm3, %v5661_v57, 0.0 }
0x1c1a   :  { %2184 = vadd.xlane.f32.xlu0 %v2183_v59 }
0x1ca5   :  { %v2182_v61 = vpop.xlane.xlu1 %2181 }
0x1ca6   :  { %v2186_v62 = vmul.f32 0.03125, %v2182_v61 }
0x1ca7   :  { %v2185_v8 = vpop.xlane.xlu0 %2184 }
0x1ca8   :  { %v2188_v0 = vsub.f32 %v5658_v30, %v2186_v62  ;;  %v2187_v1 = vmul.f32 0.03125, %v2185_v8 }
0x1caa   :  { %v2189_v60 = vsub.f32 %v5661_v57, %v2187_v1  ;;  %v2190_v42 = vmul.f32 %v2188_v0, %v2188_v0 }
0x1cac   :  { %v2192_v3 = vsel %vm220_vm3, %v2190_v42, 0.0  ;;  %v2191_v45 = vmul.f32 %v2189_v60, %v2189_v60 }
0x1cad   :  { %2193 = vadd.xlane.f32.xlu1 %v2192_v3 }
0x1cae   :  { %v2195_v48 = vsel %vm220_vm3, %v2191_v45, 0.0 }
0x1caf   :  { %2196 = vadd.xlane.f32.xlu0 %v2195_v48 }
0x1d3a   :  { %v2194_v50 = vpop.xlane.xlu1 %2193 }
0x1d3b   :  { %v2198_v11 = vmul.f32 0.03125, %v2194_v50 }
0x1d3c   :  { %v2197_v12 = vpop.xlane.xlu0 %2196 }
0x1d3d   :  { %v2200_v14 = vadd.f32 1e-05, %v2198_v11  ;;  %v2199_v18 = vmul.f32 0.03125, %v2197_v12 }
0x1d3f   :  { %5067 = vrsqrt.f32 %v2200_v14  ;;  %v2201_v20 = vadd.f32 1e-05, %v2199_v18 }
0x1d41   :  { %5069 = vrsqrt.f32 %v2201_v20 }
0x1d49   :  { %v5068_v21 = vpop.eup %5067 }
0x1d4a   :  { %v2204_v24 = vmul.f32 %v5068_v21, %v2188_v0 }
0x1d4b   :  { %v5070_v23 = vpop.eup %5069 }
0x1d4c   :  { %v2205_v25 = vmul.f32 %v5070_v23, %v2189_v60 }
0x1d4e   :  { %v2206_v29 = vpack.c.bf16 %v2205_v25, %v2204_v24 }
0x1d50   :  { %4703 = vmatmul.mubr.msk.bf16.vlgmr.msra.gmra.mrb[64].mxu1 %vm220_vm3, %v2206_v29 }
0x1d51   :  { %4708 = vmatprep.mubr.msk.bf16.mxu1 %vm5180_vm4, %v5179_v10 }
0x1e23   :  { %v2260_v5 = vpop.f32.mrb[64].mxu1 }
0x1e24   :  { %v2261_v32 = vadd.f32 %v4256_v31, %v2260_v5  ;;  %v4704_v63 = vpop.f32.mrb[65].mxu1 }
0x1e25   :  { %v2263_v2 = vpop.f32.mrb[66].mxu1 }
0x1e26   :  { %v2264_v33 = vadd.f32 %v4256_v31, %v2263_v2  ;;  %2269 = vrot.lane.b32.xlu1 %v2261_v32, %s5181_s28  ;;  %v4705_v22 = vpop.f32.mrb[67].mxu1 }
0x1e28   :  { %v5680_v34 = vpack.c.bf16 %v2264_v33, %v2261_v32  ;;  %2271 = vrot.lane.b32.xlu0 %v2264_v33, %s5181_s28 }
0x1e98   :  { %v2270_v26 = vpop.permute.xlu1 %2269 }
0x1e99   :  { %2275 = vxpose.xlu1.b32.start [1/2] (short) (narrow) %v2270_v26, 32 }
0x1e9a   :  { %v2272_v35 = vpop.permute.xlu0 %2271 }
0x1e9d   :  { %2276 = vxpose.xlu1.b32.end [2/2] (short) (narrow) %v2272_v35, 32 }
0x1f19   :  { %v2291_v37 = vpop.trf.xlu1 }
0x1f1d   :  { %v2292_v27 = vpop.trf.xlu1 }
0x1f1e   :  { %v2307_v39 = vpack.c.bf16 %v2292_v27, %v2291_v37 }
0x1f20   :  { %v2314_v40 = vsel %vm356_vm5, %v2307_v39, 0  ;;  %v2432_v3 = vrot.slane %v2307_v39, 4 }
0x1f21   :  { %4707 = vmatpush3.bf16.msra.mxu1 %v2314_v40  ;;  %v5699_v61 = vpop.trf.xlu1 }
0x1f22   :  { %4712 = vmatprep.subr.bf16.mxu1 %v5179_v10  ;;  %v2437_v9 = vsel %vm356_vm5, %v2432_v3, 0 }
0x1f24   :  { %4709 = vmatmul.mubr.msk.bf16.vlgmr.msra.gmra.mrb[68].mxu1 %vm352_vm6, %v5680_v34 }
0x1f25   :  { %4714 = vmatprep.mubr.msk.bf16.mxu1 %vm5180_vm4, %v5179_v10  ;;  %v5701_v62 = vpop.trf.xlu1 }
0x1ff7   :  { %v2350_v41 = vpop.f32.mrb[68].mxu1 }
0x1ff8   :  { %v2351_v17 = vadd.f32 %v2350_v41, %v5336_v16  ;;  %v4710_v6 = vpop.f32.mrb[69].mxu1 }
0x1ff9   :  { %v2353_v7 = vpop.f32.mrb[70].mxu1 }
0x1ffa   :  { %v2354_v13 = vadd.f32 %v2353_v7, %v5339_v19  ;;  %v4711_v43 = vpop.f32.mrb[71].mxu1  ;;  %v2357_v15 = vsel %vm401_vm13, %v2351_v17, -inf }
0x1ffb   :  { %2358 = vmax.xlane.f32.xlu0 %v2357_v15  ;;  %v2137_v43 = vld [vmem:[#allocation2 + $0xb0] sm:$0xf] }
0x1ffc   :  { %v2360_v44 = vsel %vm401_vm13, %v2354_v13, -inf }
0x1fff   :  { %2361 = vmax.xlane.f32.xlu0 %v2360_v44 }
0x2088   :  { %v2359_v46 = vpop.xlane.xlu0 %2358 }
0x2089   :  { %v2363_v47 = vsub.f32 %v2351_v17, %v2359_v46 }
0x208b   :  { %v2365_v28 = vmul.f32 1.442695, %v2363_v47  ;;  %v2602_v47 = vsel %vm356_vm5, %v2137_v43, 0  ;;  %v2139_v43 = vld [vmem:[#allocation2 + $0xb8] sm:$0xf] }
0x208c   :  { %v2362_v51 = vpop.xlane.xlu0 %2361 }
0x208d   :  { %5071 = vpow2.f32 %v2365_v28  ;;  %v2364_v53 = vsub.f32 %v2354_v13, %v2362_v51  ;;  %v2138_v28 = vld [vmem:[#allocation2 + $0xb4] sm:$0xf] }
0x208e   :  { %v2555_v51 = vsel %vm356_vm5, %v2138_v28, 0 }
0x208f   :  { %v2367_v54 = vmul.f32 1.442695, %v2364_v53 }
0x2091   :  { %5073 = vpow2.f32 %v2367_v54  ;;  %v5735_v54 = vpack.c.bf16 %v5701_v62, %v5699_v61 }
0x2097   :  { %v5072_v55 = vpop.eup %5071 }
0x2098   :  { %v2369_v56 = vsel %vm401_vm13, %v5072_v55, 0.0 }
0x2099   :  { %2370 = vadd.xlane.f32.xlu0 %v2369_v56 }
0x209b   :  { %v5074_v58 = vpop.eup %5073 }
0x209c   :  { %v2372_v59 = vsel %vm401_vm13, %v5074_v58, 0.0 }
0x209d   :  { %2373 = vadd.xlane.f32.xlu1 %v2372_v59 }
0x20af   :  { %2381 = vrot.lane.b32.xlu0 %v5680_v34, %s5176_s25 }
0x20b3   :  { %2429 = vrot.lane.b32.xlu0 %v5680_v34, %s5182_s29 }
0x2126   :  { %v2371_v8 = vpop.xlane.xlu0 %2370 }
0x2127   :  { %5075 = vrcp.f32 %v2371_v8  ;;  %v2651_v8 = vsel %vm356_vm5, %v5735_v54, 0 }
0x212a   :  { %v2374_v0 = vpop.xlane.xlu1 %2373  ;;  %v2382_v1 = vpop.permute.xlu0 %2381 }
0x212b   :  { %5077 = vrcp.f32 %v2374_v0  ;;  %4713 = vmatpush3.bf16.msra.mxu1 %v2382_v1 }
0x212c   :  { %4718 = vmatprep.subr.bf16.mxu1 %v5179_v10 }
0x212e   :  { %v2430_v50 = vpop.permute.xlu0 %2429 }
0x2131   :  { %v5076_v60 = vpop.eup %5075 }
0x2132   :  { %v2377_v45 = vmul.f32 %v5076_v60, %v5072_v55 }
0x2135   :  { %v5078_v42 = vpop.eup %5077 }
0x2136   :  { %v2378_v48 = vmul.f32 %v5078_v42, %v5074_v58 }
0x2138   :  { %v2379_v4 = vpack.c.bf16 %v2378_v48, %v2377_v45 }
0x213a   :  { %4715 = vmatmul.mubr.msk.bf16.vlgmr.msra.gmra.mrb[72].mxu1 %vm401_vm13, %v2379_v4 }
0x213b   :  { %4719 = vmatpush3.bf16.msra.mxu1 %v2437_v9  ;;  %4720 = vmatprep.mubr.msk.bf16.mxu1 %vm5180_vm4, %v5179_v10 }
0x213c   :  { %4730 = vmatprep.subr.bf16.mxu1 %v5179_v10 }
0x2142   :  { %4721 = vmatmul.mubr.msk.bf16.vlgmr.msra.gmra.mrb[76].mxu1 %vm352_vm6, %v2430_v50 }
0x2143   :  { %4732 = vmatprep.mubr.msk.bf16.mxu1 %vm5180_vm4, %v5179_v10  ;;  %4731 = vmatpush3.bf16.msra.mxu1 %v2555_v51 }
0x2144   :  { %4742 = vmatprep.subr.bf16.mxu1 %v5179_v10 }
0x220d   :  { %v2421_v11 = vpop.f32.mrb[72].mxu1 }
0x220e   :  { %v4716_v12 = vpop.f32.mrb[73].mxu1 }
0x220f   :  { %v2424_v14 = vpop.f32.mrb[74].mxu1 }
0x2210   :  { %v2428_v18 = vpack.c.bf16 %v2424_v14, %v2421_v11  ;;  %v4717_v20 = vpop.f32.mrb[75].mxu1 }
0x2215   :  { %v2473_v21 = vpop.f32.mrb[76].mxu1 }
0x2216   :  { %v2474_v23 = vadd.f32 %v2473_v21, %v5336_v16  ;;  %v4722_v24 = vpop.f32.mrb[77].mxu1 }
0x2217   :  { %v2476_v25 = vpop.f32.mrb[78].mxu1 }
0x2218   :  { %v2477_v29 = vadd.f32 %v2476_v25, %v5339_v19  ;;  %v4723_v31 = vpop.f32.mrb[79].mxu1  ;;  %v2480_v5 = vsel %vm401_vm13, %v2474_v23, -inf }
0x2219   :  { %2481 = vmax.xlane.f32.xlu0 %v2480_v5 }
0x221a   :  { %v2483_v32 = vsel %vm401_vm13, %v2477_v29, -inf }
0x221b   :  { %2484 = vmax.xlane.f32.xlu1 %v2483_v32 }
0x222f   :  { %2503 = vrot.lane.b32.xlu0 %v5680_v34, %s5183_s30 }
0x22a6   :  { %v2482_v63 = vpop.xlane.xlu0 %2481 }
0x22a7   :  { %v2486_v2 = vsub.f32 %v2474_v23, %v2482_v63 }
0x22a8   :  { %v2485_v33 = vpop.xlane.xlu1 %2484 }
0x22a9   :  { %v2488_v22 = vmul.f32 1.442695, %v2486_v2  ;;  %v2487_v26 = vsub.f32 %v2477_v29, %v2485_v33 }
0x22aa   :  { %v2504_v35 = vpop.permute.xlu0 %2503 }
0x22ab   :  { %5079 = vpow2.f32 %v2488_v22  ;;  %v2490_v37 = vmul.f32 1.442695, %v2487_v26  ;;  %4725 = vmatpush3.bf16.msra.mxu0 %v2504_v35 }
0x22ac   :  { %4736 = vmatprep.subr.bf16.mxu0 %v5179_v10 }
0x22ad   :  { %5081 = vpow2.f32 %v2490_v37 }
0x22b5   :  { %v5080_v27 = vpop.eup %5079 }
0x22b6   :  { %v2492_v39 = vsel %vm401_vm13, %v5080_v27, 0.0 }
0x22b7   :  { %v5082_v40 = vpop.eup %5081  ;;  %2493 = vadd.xlane.f32.xlu1 %v2492_v39 }
0x22b8   :  { %v2495_v41 = vsel %vm401_vm13, %v5082_v40, 0.0 }
0x22bb   :  { %2496 = vadd.xlane.f32.xlu1 %v2495_v41 }
0x22cc   :  { %2645 = vrot.lane.b32.xlu1 %v5680_v34, %s5185_s5 }
0x2344   :  { %v2494_v17 = vpop.xlane.xlu1 %2493 }
0x2345   :  { %5083 = vrcp.f32 %v2494_v17 }
0x2348   :  { %v2497_v6 = vpop.xlane.xlu1 %2496 }
0x2349   :  { %5085 = vrcp.f32 %v2497_v6 }
0x234c   :  { %v2646_v62 = vpop.permute.xlu1 %2645 }
0x234f   :  { %v5084_v7 = vpop.eup %5083 }
0x2350   :  { %v2500_v15 = vmul.f32 %v5084_v7, %v5080_v27 }
0x2353   :  { %v5086_v13 = vpop.eup %5085 }
0x2354   :  { %v2501_v44 = vmul.f32 %v5086_v13, %v5082_v40  ;;  %v2817_v40 = vrot.slane %v5735_v54, 4 }
0x2356   :  { %v2502_v46 = vpack.c.bf16 %v2501_v44, %v2500_v15  ;;  %v2822_v7 = vsel %vm356_vm5, %v2817_v40, 0  ;;  %v2769_v15 = vsel %vm356_vm5, %v2139_v43, 0 }
0x2358   :  { %4727 = vmatmul.mubr.msk.bf16.vlgmr.msra.gmra.mrb[56].mxu0 %vm401_vm13, %v2502_v46 }
0x2359   :  { %4737 = vmatpush3.bf16.msra.mxu0 %v2602_v47  ;;  %4738 = vmatprep.mubr.msk.bf16.mxu0 %vm5180_vm4, %v5179_v10 }
0x235a   :  { %4748 = vmatprep.subr.bf16.mxu0 %v5179_v10 }
0x2360   :  { %4739 = vmatmul.mubr.msk.bf16.vlgmr.msra.gmra.mrb[60].mxu0 %vm352_vm6, %v2428_v18 }
0x2361   :  { %4750 = vmatprep.mubr.msk.bf16.mxu0 %vm5180_vm4, %v5179_v10 }
0x242b   :  { %v2543_v53 = vpop.f32.mrb[56].mxu0 }
0x242c   :  { %v4728_v55 = vpop.f32.mrb[57].mxu0 }
0x242d   :  { %v2546_v56 = vpop.f32.mrb[58].mxu0 }
0x242e   :  { %v2550_v58 = vpack.c.bf16 %v2546_v56, %v2543_v53  ;;  %v4729_v59 = vpop.f32.mrb[59].mxu0 }
0x2430   :  { %4733 = vmatmul.mubr.msk.bf16.vlgmr.msra.gmra.mrb[80].mxu1 %vm352_vm6, %v2550_v58 }
0x2431   :  { %4743 = vmatpush3.bf16.msra.mxu1 %v2651_v8  ;;  %4744 = vmatprep.mubr.msk.bf16.mxu1 %vm5180_vm4, %v5179_v10 }
0x2432   :  { %4754 = vmatprep.subr.bf16.mxu1 %v5179_v10 }
0x2433   :  { %v2638_v0 = vpop.f32.mrb[60].mxu0 }
0x2434   :  { %v4740_v1 = vpop.f32.mrb[61].mxu0 }
0x2435   :  { %v2641_v60 = vpop.f32.mrb[62].mxu0 }
0x2436   :  { %v4741_v61 = vpop.f32.mrb[63].mxu0 }
0x2438   :  { %4745 = vmatmul.mubr.msk.bf16.vlgmr.msra.gmra.mrb[84].mxu1 %vm352_vm6, %v2646_v62 }
0x2439   :  { %4756 = vmatprep.mubr.msk.bf16.mxu1 %vm5180_vm4, %v5179_v10  ;;  %4755 = vmatpush3.bf16.msra.mxu1 %v2769_v15  ;;  %v4973_v15 = vld [vmem:[#allocation2 + $0xd0] sm:$0xff]  }
0x243a   :  { %4766 = vmatprep.subr.bf16.mxu1 %v5179_v10 }
0x2503   :  { %v2591_v42 = vpop.f32.mrb[80].mxu1 }
0x2504   :  { %v5746_v3 = vadd.f32 %v2638_v0, %v2591_v42  ;;  %v4734_v45 = vpop.f32.mrb[81].mxu1 }
0x2505   :  { %v2594_v48 = vpop.f32.mrb[82].mxu1 }
0x2506   :  { %v5748_v4 = vadd.f32 %v2641_v60, %v2594_v48  ;;  %v4735_v9 = vpop.f32.mrb[83].mxu1 }
0x250b   :  { %v2687_v50 = vpop.f32.mrb[84].mxu1 }
0x250c   :  { %v2688_v11 = vadd.f32 %v2687_v50, %v5336_v16  ;;  %v4746_v12 = vpop.f32.mrb[85].mxu1 }
0x250d   :  { %v2690_v14 = vpop.f32.mrb[86].mxu1 }
0x250e   :  { %v2691_v18 = vadd.f32 %v2690_v14, %v5339_v19  ;;  %v4747_v20 = vpop.f32.mrb[87].mxu1  ;;  %v2694_v21 = vsel %vm401_vm13, %v2688_v11, -inf }
0x250f   :  { %2695 = vmax.xlane.f32.xlu1 %v2694_v21 }
0x2510   :  { %v2697_v23 = vsel %vm401_vm13, %v2691_v18, -inf }
0x2511   :  { %2698 = vmax.xlane.f32.xlu0 %v2697_v23 }
0x259c   :  { %v2696_v24 = vpop.xlane.xlu1 %2695 }
0x259d   :  { %v2700_v25 = vsub.f32 %v2688_v11, %v2696_v24 }
0x259e   :  { %v2699_v29 = vpop.xlane.xlu0 %2698 }
0x259f   :  { %v2702_v31 = vmul.f32 1.442695, %v2700_v25  ;;  %v2701_v5 = vsub.f32 %v2691_v18, %v2699_v29 }
0x25a1   :  { %5087 = vpow2.f32 %v2702_v31  ;;  %v2704_v32 = vmul.f32 1.442695, %v2701_v5 }
0x25a3   :  { %5089 = vpow2.f32 %v2704_v32 }
0x25ab   :  { %v5088_v63 = vpop.eup %5087 }
0x25ac   :  { %v2706_v2 = vsel %vm401_vm13, %v5088_v63, 0.0 }
0x25ad   :  { %v5090_v33 = vpop.eup %5089  ;;  %2707 = vadd.xlane.f32.xlu0 %v2706_v2 }
0x25ae   :  { %v2709_v22 = vsel %vm401_vm13, %v5090_v33, 0.0 }
0x25af   :  { %2710 = vadd.xlane.f32.xlu1 %v2709_v22 }
0x25c0   :  { %2814 = vrot.lane.b32.xlu1 %v5680_v34, %s5186_s6 }
0x25c3   :  { %2717 = vrot.lane.b32.xlu0 %v5680_v34, %s5187_s7 }
0x263a   :  { %v2708_v26 = vpop.xlane.xlu0 %2707 }
0x263b   :  { %5091 = vrcp.f32 %v2708_v26 }
0x263c   :  { %v2711_v35 = vpop.xlane.xlu1 %2710 }
0x263d   :  { %5093 = vrcp.f32 %v2711_v35 }
0x263e   :  { %v2718_v37 = vpop.permute.xlu0 %2717 }
0x263f   :  { %4749 = vmatpush3.bf16.msra.mxu0 %v2718_v37 }
0x2640   :  { %4760 = vmatprep.subr.bf16.mxu0 %v5179_v10  ;;  %v2815_v13 = vpop.permute.xlu1 %2814 }
0x2645   :  { %v5092_v27 = vpop.eup %5091 }
0x2646   :  { %v2714_v41 = vmul.f32 %v5092_v27, %v5088_v63  ;;  %v4272_v27 = vld [vmem:[%s6018_s2 + $0x8] ss:$0 sm:$0xff] }
0x2647   :  { %v5094_v39 = vpop.eup %5093 }
0x2648   :  { %v2715_v17 = vmul.f32 %v5094_v39, %v5090_v33 }
0x264a   :  { %v2716_v6 = vpack.c.bf16 %v2715_v17, %v2714_v41 }
0x264c   :  { %4751 = vmatmul.mubr.msk.bf16.vlgmr.msra.gmra.mrb[64].mxu0 %vm401_vm13, %v2716_v6 }
0x264d   :  { %4761 = vmatpush3.bf16.msra.mxu0 %v2822_v7  ;;  %4762 = vmatprep.mubr.msk.bf16.mxu0 %vm5180_vm4, %v5179_v10 }
0x264e   :  { %4772 = vmatprep.subr.bf16.mxu0 %v5179_v10 }
0x2654   :  { %4763 = vmatmul.mubr.msk.bf16.vlgmr.msra.gmra.mrb[68].mxu0 %vm352_vm6, %v2815_v13 }
0x2655   :  { %4774 = vmatprep.mubr.msk.bf16.mxu0 %vm5180_vm4, %v5179_v10 }
0x271f   :  { %v2757_v44 = vpop.f32.mrb[64].mxu0 }
0x2720   :  { %v4752_v46 = vpop.f32.mrb[65].mxu0 }
0x2721   :  { %v2760_v47 = vpop.f32.mrb[66].mxu0 }
0x2722   :  { %v2764_v28 = vpack.c.bf16 %v2760_v47, %v2757_v44  ;;  %v4753_v51 = vpop.f32.mrb[67].mxu0  ;;  %v4974_v44 = vld [vmem:[#allocation2 + $0xd8] sm:$0xff]  }
0x2724   :  { %4757 = vmatmul.mubr.msk.bf16.vlgmr.msra.gmra.mrb[88].mxu1 %vm352_vm6, %v2764_v28 }
0x2725   :  { %4768 = vmatprep.mubr.msk.bf16.mxu1 %vm5180_vm4, %v5179_v10 }
0x2727   :  { %v2858_v53 = vpop.f32.mrb[68].mxu0 }
0x2728   :  { %v2859_v54 = vadd.f32 %v2858_v53, %v5336_v16  ;;  %v4764_v55 = vpop.f32.mrb[69].mxu0 }
0x2729   :  { %v2861_v56 = vpop.f32.mrb[70].mxu0 }
0x272a   :  { %v2862_v58 = vadd.f32 %v2861_v56, %v5339_v19  ;;  %v4765_v59 = vpop.f32.mrb[71].mxu0  ;;  %v2865_v8 = vsel %vm401_vm13, %v2859_v54, -inf }
0x272b   :  { %2866 = vmax.xlane.f32.xlu1 %v2865_v8  ;;  %v4277_v59 = vld [vmem:[%s6018_s2 + $0xa] ss:$0 sm:$0xff] }
0x272c   :  { %v2868_v0 = vsel %vm401_vm13, %v2862_v58, -inf }
0x272d   :  { %2869 = vmax.xlane.f32.xlu0 %v2868_v0 }
0x27b8   :  { %v2867_v1 = vpop.xlane.xlu1 %2866 }
0x27b9   :  { %v2871_v60 = vsub.f32 %v2859_v54, %v2867_v1 }
0x27ba   :  { %v2870_v61 = vpop.xlane.xlu0 %2869 }
0x27bb   :  { %v2873_v62 = vmul.f32 1.442695, %v2871_v60  ;;  %v2872_v42 = vsub.f32 %v2862_v58, %v2870_v61  ;;  %v4976_v58 = vld [vmem:[#allocation2 + $0xc8] sm:$0xff]  }
0x27bd   :  { %5095 = vpow2.f32 %v2873_v62  ;;  %v2875_v45 = vmul.f32 1.442695, %v2872_v42 }
0x27bf   :  { %5097 = vpow2.f32 %v2875_v45 }
0x27c7   :  { %v5096_v16 = vpop.eup %5095 }
0x27c8   :  { %v2877_v48 = vsel %vm401_vm13, %v5096_v16, 0.0 }
0x27c9   :  { %v5098_v9 = vpop.eup %5097  ;;  %2878 = vadd.xlane.f32.xlu0 %v2877_v48 }
0x27ca   :  { %v2880_v19 = vsel %vm401_vm13, %v5098_v9, 0.0 }
0x27cb   :  { %2881 = vadd.xlane.f32.xlu1 %v2880_v19 }
0x27df   :  { %2888 = vrot.lane.b32.xlu0 %v5680_v34, %s5188_s8 }
0x27f7   :  { %v2805_v50 = vpop.f32.mrb[88].mxu1 }
0x27f8   :  { %v2812_v11 = vadd.f32 %v2805_v50, %v5746_v3  ;;  %v4758_v12 = vpop.f32.mrb[89].mxu1  ;;  %v2140_v3 = vld [vmem:[#allocation2 + $0xbc] sm:$0xf] }
0x27f9   :  { %v2808_v14 = vpop.f32.mrb[90].mxu1 }
0x27fa   :  { %v2813_v18 = vadd.f32 %v2808_v14, %v5748_v4  ;;  %v4759_v20 = vpop.f32.mrb[91].mxu1  ;;  %v2940_v4 = vsel %vm356_vm5, %v2140_v3, 0 }
0x27fb   :  { %4773 = vmatpush3.bf16.msra.mxu0 %v2940_v4 }
0x27fc   :  { %4786 = vmatprep.subr.bf16.mxu0 %v4973_v15 }
0x2856   :  { %v2879_v21 = vpop.xlane.xlu0 %2878 }
0x2857   :  { %5099 = vrcp.f32 %v2879_v21 }
0x2858   :  { %v2882_v23 = vpop.xlane.xlu1 %2881 }
0x2859   :  { %5101 = vrcp.f32 %v2882_v23 }
0x285a   :  { %v2889_v24 = vpop.permute.xlu0 %2888 }
0x285b   :  { %4767 = vmatpush3.bf16.msra.mxu1 %v2889_v24 }
0x285c   :  { %4778 = vmatprep.subr.bf16.mxu1 %v5179_v10 }
0x2861   :  { %v5100_v25 = vpop.eup %5099 }
0x2862   :  { %v2885_v31 = vmul.f32 %v5100_v25, %v5096_v16 }
0x2863   :  { %v5102_v29 = vpop.eup %5101 }
0x2864   :  { %v2886_v34 = vmul.f32 %v5102_v29, %v5098_v9 }
0x2866   :  { %v2887_v5 = vpack.c.bf16 %v2886_v34, %v2885_v31 }
0x2868   :  { %4769 = vmatmul.mubr.msk.bf16.vlgmr.msra.gmra.mrb[92].mxu1 %vm401_vm13, %v2887_v5  ;;  %v4273_v5 = vld [vmem:[%s6018_s2 + $0x9] ss:$0 sm:$0xff] }
0x2869   :  { %4782 = vmatprep.mubr.msk.bf16.mxu1 %vm5180_vm4, %v5179_v10 }
0x293b   :  { %v2928_v32 = vpop.f32.mrb[92].mxu1 }
0x293c   :  { %v4770_v63 = vpop.f32.mrb[93].mxu1 }
0x293d   :  { %v2931_v2 = vpop.f32.mrb[94].mxu1 }
0x293e   :  { %v2935_v33 = vpack.c.bf16 %v2931_v2, %v2928_v32  ;;  %v4771_v22 = vpop.f32.mrb[95].mxu1 }
0x2940   :  { %4775 = vmatmul.mubr.msk.bf16.vlgmr.msra.gmra.mrb[72].mxu0 %vm352_vm6, %v2935_v33 }
0x2941   :  { %4790 = vmatprep.mubr.msk.bf16.mxu0 %vm220_vm3, %v5453_v49  ;;  %4787 = vmatpush3.bf16.msra.mxu0 %v4973_v15 }
0x2942   :  { %4788 = vmatprep.subr.bf16.mxu0 %v4974_v44 }
0x2945   :  { %4789 = vmatpush3.bf16.msra.mxu0 %v4974_v44 }
0x2946   :  { %4800 = vmatprep.subr.bf16.mxu0 %v5179_v10 }
0x2948   :  { %4791 = vmatmul.mubr.msk.bf16.vlgmr.msra.gmra.mrb[76].mxu0 %vm220_vm3, %v5463_v52  ;;  %v4975_v52 = vld [vmem:[#allocation2 + $0xc0] sm:$0xff]  }
0x2949   :  { %4804 = vmatprep.mubr.msk.bf16.mxu0 %vm5180_vm4, %v5179_v10  ;;  %4779 = vmatpush3.bf16.msra.mxu1 %v4975_v52 }
0x294a   :  { %4780 = vmatprep.subr.bf16.mxu1 %v5179_v10 }
0x294d   :  { %4781 = vmatpush3.bf16.msra.mxu1 %v4976_v58 }
0x294e   :  { %4794 = vmatprep.subr.bf16.mxu1 %v5179_v10 }
0x2a13   :  { %v2976_v26 = vpop.f32.mrb[72].mxu0 }
0x2a14   :  { %v2983_v35 = vadd.f32 %v2976_v26, %v2812_v11  ;;  %v4776_v37 = vpop.f32.mrb[73].mxu0 }
0x2a15   :  { %v2979_v39 = vpop.f32.mrb[74].mxu0 }
0x2a16   :  { %v2985_v40 = vadd.f32 %v2983_v35, %v5658_v30  ;;  %v2984_v41 = vadd.f32 %v2979_v39, %v2813_v18  ;;  %v4777_v17 = vpop.f32.mrb[75].mxu0 }
0x2a18   :  { %v5797_v6 = vadd.f32 %v4272_v27, %v2985_v40  ;;  %v2986_v7 = vadd.f32 %v2984_v41, %v5661_v57 }
0x2a1a   :  { %v5800_v13 = vadd.f32 %v4272_v27, %v2986_v7  ;;  %v2993_v49 = vsel %vm220_vm3, %v5797_v6, 0.0 }
0x2a1b   :  { %2994 = vadd.xlane.f32.xlu1 %v2993_v49  ;;  %v4792_v8 = vpop.f32.mrb[76].mxu0 }
0x2a1c   :  { %v2996_v43 = vsel %vm220_vm3, %v5800_v13, 0.0  ;;  %v3130_v0 = vpop.f32.mrb[77].mxu0  ;;  %v3139_v61 = vadd.f32 %v4792_v8, %v4277_v59 }
0x2a1d   :  { %v3131_v1 = vadd.f32 %v4277_v59, %v3130_v0  ;;  %v4793_v60 = vpop.f32.mrb[78].mxu0 }
0x2a1e   :  { %v3142_v62 = vadd.f32 %v4793_v60, %v4277_v59  ;;  %v3133_v42 = vpop.f32.mrb[79].mxu0 }
0x2a1f   :  { %2997 = vadd.xlane.f32.xlu1 %v2996_v43  ;;  %3145 = vxpose.xlu0.b32.start [1/4] (short) (narrow) %v3131_v1, 32  ;;  %v3134_v45 = vadd.f32 %v4277_v59, %v3133_v42 }
0x2a20   :  { %v5820_v16 = vpack.c.bf16 %v3142_v62, %v3139_v61 }
0x2a21   :  { %v5822_v48 = vpack.c.bf16 %v3134_v45, %v3131_v1 }
0x2a23   :  { %3146 = vxpose.xlu0.b32.cont [2/4] (short) (narrow) %v3134_v45, 32 }
0x2a27   :  { %3147 = vxpose.xlu0.b32.cont [3/4] (short) (narrow) %v3139_v61, 32 }
0x2a2b   :  { %3148 = vxpose.xlu0.b32.end [4/4] (short) (narrow) %v3142_v62, 32 }
0x2a9f   :  { %v3161_v25 = vpop.trf.xlu0 }
0x2aa3   :  { %v3162_v29 = vpop.trf.xlu0 }
0x2aa4   :  { %v3177_v31 = vpack.c.bf16 %v3162_v29, %v3161_v25 }
0x2aa6   :  { %v3186_v34 = vsel %vm356_vm5, %v3177_v31, 0  ;;  %v3309_v4 = vrot.slane %v3177_v31, 4 }
0x2aa8   :  { %v2995_v30 = vpop.xlane.xlu1 %2994  ;;  %v3314_v35 = vsel %vm356_vm5, %v3309_v4, 0 }
0x2aa9   :  { %v2999_v57 = vmul.f32 0.03125, %v2995_v30 }
0x2aab   :  { %v3001_v46 = vsub.f32 %v5797_v6, %v2999_v57 }
0x2aac   :  { %v2998_v47 = vpop.xlane.xlu1 %2997 }
0x2aad   :  { %v3000_v28 = vmul.f32 0.03125, %v2998_v47  ;;  %v3003_v51 = vmul.f32 %v3001_v46, %v3001_v46 }
0x2aaf   :  { %v3002_v53 = vsub.f32 %v5800_v13, %v3000_v28  ;;  %v3005_v54 = vsel %vm220_vm3, %v3003_v51, 0.0 }
0x2ab0   :  { %3006 = vadd.xlane.f32.xlu1 %v3005_v54 }
0x2ab1   :  { %v3004_v55 = vmul.f32 %v3002_v53, %v3002_v53 }
0x2ab3   :  { %v3008_v56 = vsel %vm220_vm3, %v3004_v55, 0.0 }
0x2ab4   :  { %3009 = vadd.xlane.f32.xlu1 %v3008_v56 }
0x2b3d   :  { %v3007_v9 = vpop.xlane.xlu1 %3006 }
0x2b3e   :  { %v3011_v19 = vmul.f32 0.03125, %v3007_v9 }
0x2b40   :  { %v3013_v50 = vadd.f32 1e-05, %v3011_v19 }
0x2b41   :  { %v3010_v11 = vpop.xlane.xlu1 %3009 }
0x2b42   :  { %v3012_v12 = vmul.f32 0.03125, %v3010_v11  ;;  %5103 = vrsqrt.f32 %v3013_v50 }
0x2b44   :  { %v3014_v14 = vadd.f32 1e-05, %v3012_v12 }
0x2b46   :  { %5105 = vrsqrt.f32 %v3014_v14 }
0x2b4c   :  { %v5104_v18 = vpop.eup %5103 }
0x2b4d   :  { %v3017_v21 = vmul.f32 %v5104_v18, %v3001_v46 }
0x2b50   :  { %v5106_v20 = vpop.eup %5105 }
0x2b51   :  { %v3018_v23 = vmul.f32 %v5106_v20, %v3002_v53  ;;  %v5859_v53 = vpop.trf.xlu0 }
0x2b53   :  { %v3019_v24 = vpack.c.bf16 %v3018_v23, %v3017_v21 }
0x2b55   :  { %4783 = vmatmul.mubr.msk.bf16.vlgmr.msra.gmra.mrb[96].mxu1 %vm220_vm3, %v3019_v24  ;;  %v5861_v54 = vpop.trf.xlu0 }
0x2b56   :  { %4796 = vmatprep.mubr.msk.bf16.mxu1 %vm5180_vm4, %v5179_v10  ;;  %4795 = vmatpush3.bf16.msra.mxu1 %v3186_v34 }
0x2b57   :  { %4808 = vmatprep.subr.bf16.mxu1 %v5179_v10 }
0x2c28   :  { %v3073_v3 = vpop.f32.mrb[96].mxu1 }
0x2c29   :  { %v4784_v32 = vpop.f32.mrb[97].mxu1  ;;  %v3074_v2 = vadd.f32 %v4273_v5, %v3073_v3 }
0x2c2a   :  { %v3076_v63 = vpop.f32.mrb[98].mxu1 }
0x2c2b   :  { %v3077_v33 = vadd.f32 %v4273_v5, %v3076_v63  ;;  %v4785_v22 = vpop.f32.mrb[99].mxu1 }
0x2c2c   :  { %v2149_v22 = vld [vmem:[#allocation2 + $0xe0] sm:$0xf] }
0x2c2d   :  { %v5832_v26 = vpack.c.bf16 %v3077_v33, %v3074_v2 }
0x2c2f   :  { %3306 = vrot.lane.b32.xlu1 %v5832_v26, %s5182_s29  ;;  %4797 = vmatmul.mubr.msk.bf16.vlgmr.msra.gmra.mrb[100].mxu1 %vm352_vm6, %v5832_v26 }
0x2c30   :  { %4809 = vmatpush3.bf16.msra.mxu1 %v3314_v35  ;;  %4810 = vmatprep.mubr.msk.bf16.mxu1 %vm5180_vm4, %v5179_v10 }
0x2c31   :  { %4822 = vmatprep.subr.bf16.mxu1 %v5179_v10 }
0x2ca1   :  { %v3307_v37 = vpop.permute.xlu1 %3306 }
0x2ca2   :  { %4811 = vmatmul.mubr.msk.bf16.vlgmr.msra.gmra.mrb[104].mxu1 %vm352_vm6, %v3307_v37 }
0x2ca3   :  { %4824 = vmatprep.mubr.msk.bf16.mxu1 %vm5180_vm4, %v5179_v10 }
0x2d02   :  { %v3222_v27 = vpop.f32.mrb[100].mxu1 }
0x2d03   :  { %v3223_v39 = vadd.f32 %v3222_v27, %v5504_v36  ;;  %v4798_v40 = vpop.f32.mrb[101].mxu1 }
0x2d04   :  { %v3225_v41 = vpop.f32.mrb[102].mxu1  ;;  %v2150_v40 = vld [vmem:[#allocation2 + $0xe4] sm:$0xf] }
0x2d05   :  { %v3226_v17 = vadd.f32 %v3225_v41, %v5507_v38  ;;  %v4799_v7 = vpop.f32.mrb[103].mxu1  ;;  %v3229_v49 = vsel %vm220_vm3, %v3223_v39, -inf  ;;  %v3435_v41 = vsel %vm356_vm5, %v2150_v40, 0 }
0x2d06   :  { %3230 = vmax.xlane.f32.xlu1 %v3229_v49  ;;  %4823 = vmatpush3.bf16.msra.mxu1 %v3435_v41 }
0x2d07   :  { %v3232_v43 = vsel %vm220_vm3, %v3226_v17, -inf  ;;  %4834 = vmatprep.subr.bf16.mxu1 %v5179_v10 }
0x2d08   :  { %3233 = vmax.xlane.f32.xlu0 %v3232_v43 }
0x2d1e   :  { %3256 = vrot.lane.b32.xlu0 %v5820_v16, %s5181_s28 }
0x2d75   :  { %v3350_v15 = vpop.f32.mrb[104].mxu1 }
0x2d76   :  { %v3351_v44 = vadd.f32 %v3350_v15, %v5504_v36  ;;  %v4812_v30 = vpop.f32.mrb[105].mxu1 }
0x2d77   :  { %v3353_v57 = vpop.f32.mrb[106].mxu1  ;;  %v5890_v30 = vpack.c.bf16 %v5861_v54, %v5859_v53 }
0x2d78   :  { %v3354_v46 = vadd.f32 %v3353_v57, %v5507_v38  ;;  %v4813_v47 = vpop.f32.mrb[107].mxu1  ;;  %v3357_v28 = vsel %vm220_vm3, %v3351_v44, -inf }
0x2d79   :  { %3358 = vmax.xlane.f32.xlu1 %v3357_v28 }
0x2d7a   :  { %v3360_v51 = vsel %vm220_vm3, %v3354_v46, -inf }
0x2d7d   :  { %3361 = vmax.xlane.f32.xlu1 %v3360_v51  ;;  %v3531_v51 = vsel %vm356_vm5, %v5890_v30, 0 }
0x2d8e   :  { %3254 = vrot.lane.b32.xlu1 %v5822_v48, %s5181_s28 }
0x2d92   :  { %3380 = vrot.lane.b32.xlu1 %v5822_v48, %s5189_s20 }
0x2d93   :  { %v3231_v55 = vpop.xlane.xlu1 %3230 }
0x2d94   :  { %v3235_v56 = vsub.f32 %v3223_v39, %v3231_v55  ;;  %v3482_v39 = vsel %vm356_vm5, %v2149_v22, 0 }
0x2d95   :  { %v3234_v52 = vpop.xlane.xlu0 %3233 }
0x2d96   :  { %v3237_v58 = vmul.f32 1.442695, %v3235_v56  ;;  %v3236_v59 = vsub.f32 %v3226_v17, %v3234_v52 }
0x2d98   :  { %5107 = vpow2.f32 %v3237_v58  ;;  %v3239_v8 = vmul.f32 1.442695, %v3236_v59 }
0x2d99   :  { %v3257_v12 = vpop.permute.xlu0 %3256 }
0x2d9a   :  { %5109 = vpow2.f32 %v3239_v8 }
0x2da2   :  { %v5108_v0 = vpop.eup %5107 }
0x2da3   :  { %v3241_v1 = vsel %vm220_vm3, %v5108_v0, 0.0 }
0x2da4   :  { %v5110_v60 = vpop.eup %5109 }
0x2da5   :  { %v3244_v61 = vsel %vm220_vm3, %v5110_v60, 0.0 }
0x2db6   :  { %3242 = vadd.xlane.f32.xlu1 %v3241_v1 }
0x2dba   :  { %3245 = vadd.xlane.f32.xlu1 %v3244_v61 }
0x2e06   :  { %v3359_v62 = vpop.xlane.xlu1 %3358 }
0x2e07   :  { %v3363_v42 = vsub.f32 %v3351_v44, %v3359_v62 }
0x2e09   :  { %v3365_v45 = vmul.f32 1.442695, %v3363_v42 }
0x2e0a   :  { %v3362_v9 = vpop.xlane.xlu1 %3361 }
0x2e0b   :  { %5111 = vpow2.f32 %v3365_v45  ;;  %v3364_v19 = vsub.f32 %v3354_v46, %v3362_v9 }
0x2e0d   :  { %v3367_v50 = vmul.f32 1.442695, %v3364_v19 }
0x2e0e   :  { %v3255_v11 = vpop.permute.xlu1 %3254 }
0x2e0f   :  { %5113 = vpow2.f32 %v3367_v50  ;;  %4801 = vmatpush3.bf16.msra.mxu0 %v3255_v11 }
0x2e10   :  { %4802 = vmatprep.subr.bf16.mxu0 %v5179_v10 }
0x2e12   :  { %v3381_v23 = vpop.permute.xlu1 %3380 }
0x2e13   :  { %4803 = vmatpush3.bf16.msra.mxu0 %v3257_v12 }
0x2e14   :  { %4814 = vmatprep.subr.bf16.mxu0 %v5179_v10 }
0x2e15   :  { %v5112_v14 = vpop.eup %5111 }
0x2e16   :  { %v3369_v18 = vsel %vm220_vm3, %v5112_v14, 0.0 }
0x2e17   :  { %3370 = vadd.xlane.f32.xlu1 %v3369_v18 }
0x2e19   :  { %v5114_v20 = vpop.eup %5113 }
0x2e1a   :  { %v3372_v21 = vsel %vm220_vm3, %v5114_v20, 0.0 }
0x2e1b   :  { %3373 = vadd.xlane.f32.xlu1 %v3372_v21 }
0x2e2c   :  { %3382 = vrot.lane.b32.xlu1 %v5820_v16, %s5189_s20 }
0x2e30   :  { %3525 = vrot.lane.b32.xlu1 %v5832_v26, %s5185_s5 }
0x2e43   :  { %v3243_v24 = vpop.xlane.xlu1 %3242 }
0x2e44   :  { %5115 = vrcp.f32 %v3243_v24 }
0x2e47   :  { %v3246_v25 = vpop.xlane.xlu1 %3245 }
0x2e48   :  { %5117 = vrcp.f32 %v3246_v25 }
0x2e4e   :  { %v5116_v29 = vpop.eup %5115 }
0x2e4f   :  { %v3249_v34 = vmul.f32 %v5116_v29, %v5108_v0 }
0x2e52   :  { %v5118_v31 = vpop.eup %5117 }
0x2e53   :  { %v3250_v5 = vmul.f32 %v5118_v31, %v5110_v60 }
0x2e55   :  { %v3251_v3 = vpack.c.bf16 %v3250_v5, %v3249_v34 }
0x2e57   :  { %4805 = vmatmul.mubr.msk.bf16.vlgmr.msra.gmra.mrb[80].mxu0 %vm220_vm3, %v3251_v3 }
0x2e58   :  { %4815 = vmatpush3.bf16.msra.mxu0 %v3381_v23  ;;  %4818 = vmatprep.mubr.msk.bf16.mxu0 %vm5180_vm4, %v5179_v10 }
0x2e59   :  { %4816 = vmatprep.subr.bf16.mxu0 %v5179_v10 }
0x2ea4   :  { %v3371_v4 = vpop.xlane.xlu1 %3370 }
0x2ea5   :  { %5119 = vrcp.f32 %v3371_v4 }
0x2ea8   :  { %v3374_v32 = vpop.xlane.xlu1 %3373 }
0x2ea9   :  { %5121 = vrcp.f32 %v3374_v32 }
0x2eac   :  { %v3383_v63 = vpop.permute.xlu1 %3382 }
0x2ead   :  { %4817 = vmatpush3.bf16.msra.mxu0 %v3383_v63 }
0x2eae   :  { %4828 = vmatprep.subr.bf16.mxu0 %v5179_v10 }
0x2eaf   :  { %v5120_v2 = vpop.eup %5119 }
0x2eb0   :  { %v3377_v35 = vmul.f32 %v5120_v2, %v5112_v14  ;;  %v3526_v55 = vpop.permute.xlu1 %3525  ;;  %v3700_v2 = vrot.slane %v5890_v30, 4 }
0x2eb3   :  { %v5122_v33 = vpop.eup %5121 }
0x2eb4   :  { %v3378_v37 = vmul.f32 %v5122_v33, %v5114_v20 }
0x2eb6   :  { %v3379_v27 = vpack.c.bf16 %v3378_v37, %v3377_v35  ;;  %v3705_v35 = vsel %vm356_vm5, %v3700_v2, 0 }
0x2eb8   :  { %4819 = vmatmul.mubr.msk.bf16.vlgmr.msra.gmra.mrb[84].mxu0 %vm220_vm3, %v3379_v27  ;;  %v2151_v27 = vld [vmem:[#allocation2 + $0xe8] sm:$0xf] }
0x2eb9   :  { %4829 = vmatpush3.bf16.msra.mxu0 %v3482_v39  ;;  %4830 = vmatprep.mubr.msk.bf16.mxu0 %vm5180_vm4, %v5179_v10  ;;  %v3652_v39 = vsel %vm356_vm5, %v2151_v27, 0 }
0x2eba   :  { %4840 = vmatprep.subr.bf16.mxu0 %v5179_v10 }
0x2f2a   :  { %v3297_v17 = vpop.f32.mrb[80].mxu0 }
0x2f2b   :  { %v4806_v7 = vpop.f32.mrb[81].mxu0 }
0x2f2c   :  { %v3300_v49 = vpop.f32.mrb[82].mxu0 }
0x2f2d   :  { %v3304_v43 = vpack.c.bf16 %v3300_v49, %v3297_v17  ;;  %v4807_v15 = vpop.f32.mrb[83].mxu0 }
0x2f2f   :  { %4831 = vmatmul.mubr.msk.bf16.vlgmr.msra.gmra.mrb[88].mxu0 %vm352_vm6, %v3304_v43 }
0x2f30   :  { %4844 = vmatprep.mubr.msk.bf16.mxu0 %vm5180_vm4, %v5179_v10 }
0x2f8b   :  { %v3423_v44 = vpop.f32.mrb[84].mxu0 }
0x2f8c   :  { %v4820_v57 = vpop.f32.mrb[85].mxu0 }
0x2f8d   :  { %v3426_v46 = vpop.f32.mrb[86].mxu0 }
0x2f8e   :  { %v3430_v47 = vpack.c.bf16 %v3426_v46, %v3423_v44  ;;  %v4821_v28 = vpop.f32.mrb[87].mxu0 }
0x2f90   :  { %4825 = vmatmul.mubr.msk.bf16.vlgmr.msra.gmra.mrb[108].mxu1 %vm352_vm6, %v3430_v47 }
0x2f91   :  { %4835 = vmatpush3.bf16.msra.mxu1 %v3531_v51  ;;  %4836 = vmatprep.mubr.msk.bf16.mxu1 %vm5180_vm4, %v5179_v10 }
0x2f92   :  { %4848 = vmatprep.subr.bf16.mxu1 %v5179_v10 }
0x2f98   :  { %4837 = vmatmul.mubr.msk.bf16.vlgmr.msra.gmra.mrb[112].mxu1 %vm352_vm6, %v3526_v55 }
0x2f99   :  { %4850 = vmatprep.mubr.msk.bf16.mxu1 %vm5180_vm4, %v5179_v10  ;;  %4849 = vmatpush3.bf16.msra.mxu1 %v3652_v39 }
0x2f9a   :  { %4860 = vmatprep.subr.bf16.mxu1 %v5179_v10 }
0x3002   :  { %v3518_v53 = vpop.f32.mrb[88].mxu0 }
0x3003   :  { %v4832_v54 = vpop.f32.mrb[89].mxu0 }
0x3004   :  { %v3521_v56 = vpop.f32.mrb[90].mxu0 }
0x3005   :  { %v4833_v52 = vpop.f32.mrb[91].mxu0 }
0x3063   :  { %v3471_v58 = vpop.f32.mrb[108].mxu1 }
0x3064   :  { %v5901_v59 = vadd.f32 %v3518_v53, %v3471_v58  ;;  %v4826_v8 = vpop.f32.mrb[109].mxu1 }
0x3065   :  { %v3474_v0 = vpop.f32.mrb[110].mxu1 }
0x3066   :  { %v5903_v1 = vadd.f32 %v3521_v56, %v3474_v0  ;;  %v4827_v60 = vpop.f32.mrb[111].mxu1 }
0x306b   :  { %v3567_v61 = vpop.f32.mrb[112].mxu1 }
0x306c   :  { %v3568_v62 = vadd.f32 %v3567_v61, %v5504_v36  ;;  %v4838_v42 = vpop.f32.mrb[113].mxu1 }
0x306d   :  { %v3570_v45 = vpop.f32.mrb[114].mxu1 }
0x306e   :  { %v3571_v9 = vadd.f32 %v3570_v45, %v5507_v38  ;;  %v4839_v19 = vpop.f32.mrb[115].mxu1  ;;  %v3574_v50 = vsel %vm220_vm3, %v3568_v62, -inf }
0x306f   :  { %3575 = vmax.xlane.f32.xlu1 %v3574_v50 }
0x3070   :  { %v3577_v11 = vsel %vm220_vm3, %v3571_v9, -inf }
0x3071   :  { %3578 = vmax.xlane.f32.xlu0 %v3577_v11 }
0x30fc   :  { %v3576_v12 = vpop.xlane.xlu1 %3575 }
0x30fd   :  { %v3580_v14 = vsub.f32 %v3568_v62, %v3576_v12 }
0x30fe   :  { %v3579_v18 = vpop.xlane.xlu0 %3578 }
0x30ff   :  { %v3582_v20 = vmul.f32 1.442695, %v3580_v14  ;;  %v3581_v21 = vsub.f32 %v3571_v9, %v3579_v18 }
0x3101   :  { %5123 = vpow2.f32 %v3582_v20  ;;  %v3584_v23 = vmul.f32 1.442695, %v3581_v21 }
0x3103   :  { %5125 = vpow2.f32 %v3584_v23 }
0x310b   :  { %v5124_v24 = vpop.eup %5123 }
0x310c   :  { %v3586_v25 = vsel %vm220_vm3, %v5124_v24, 0.0 }
0x310d   :  { %v5126_v29 = vpop.eup %5125  ;;  %3587 = vadd.xlane.f32.xlu1 %v3586_v25 }
0x310e   :  { %v3589_v31 = vsel %vm220_vm3, %v5126_v29, 0.0 }
0x310f   :  { %3590 = vadd.xlane.f32.xlu0 %v3589_v31 }
0x311e   :  { %3597 = vrot.lane.b32.xlu1 %v5822_v48, %s5190_s21 }
0x3122   :  { %3697 = vrot.lane.b32.xlu1 %v5832_v26, %s5186_s6 }
0x3125   :  { %3599 = vrot.lane.b32.xlu0 %v5820_v16, %s5190_s21 }
0x319a   :  { %v3588_v34 = vpop.xlane.xlu1 %3587 }
0x319b   :  { %5127 = vrcp.f32 %v3588_v34 }
0x319c   :  { %v3591_v5 = vpop.xlane.xlu0 %3590 }
0x319d   :  { %5129 = vrcp.f32 %v3591_v5  ;;  %v4294_v5 = vld [vmem:[%s6018_s2 + $0xb] ss:$0 sm:$0xff] }
0x319e   :  { %v3598_v3 = vpop.permute.xlu1 %3597 }
0x319f   :  { %4841 = vmatpush3.bf16.msra.mxu0 %v3598_v3 }
0x31a0   :  { %4842 = vmatprep.subr.bf16.mxu0 %v5179_v10  ;;  %v3600_v4 = vpop.permute.xlu0 %3599 }
0x31a2   :  { %v3698_v37 = vpop.permute.xlu1 %3697 }
0x31a3   :  { %4843 = vmatpush3.bf16.msra.mxu0 %v3600_v4 }
0x31a4   :  { %4854 = vmatprep.subr.bf16.mxu0 %v5179_v10 }
0x31a5   :  { %v5128_v32 = vpop.eup %5127 }
0x31a6   :  { %v3594_v26 = vmul.f32 %v5128_v32, %v5124_v24 }
0x31a7   :  { %v5130_v63 = vpop.eup %5129 }
0x31a8   :  { %v3595_v33 = vmul.f32 %v5130_v63, %v5126_v29 }
0x31aa   :  { %v3596_v22 = vpack.c.bf16 %v3595_v33, %v3594_v26 }
0x31ac   :  { %4845 = vmatmul.mubr.msk.bf16.vlgmr.msra.gmra.mrb[92].mxu0 %vm220_vm3, %v3596_v22 }
0x31ad   :  { %4855 = vmatpush3.bf16.msra.mxu0 %v3705_v35  ;;  %4856 = vmatprep.mubr.msk.bf16.mxu0 %vm5180_vm4, %v5179_v10 }
0x31ae   :  { %4868 = vmatprep.subr.bf16.mxu0 %v5179_v10 }
0x31b4   :  { %4857 = vmatmul.mubr.msk.bf16.vlgmr.msra.gmra.mrb[96].mxu0 %vm352_vm6, %v3698_v37 }
0x31b5   :  { %4870 = vmatprep.mubr.msk.bf16.mxu0 %vm5180_vm4, %v5179_v10 }
0x327f   :  { %v3640_v40 = vpop.f32.mrb[92].mxu0 }
0x3280   :  { %v4846_v41 = vpop.f32.mrb[93].mxu0 }
0x3281   :  { %v3643_v17 = vpop.f32.mrb[94].mxu0 }
0x3282   :  { %v3647_v7 = vpack.c.bf16 %v3643_v17, %v3640_v40  ;;  %v4847_v49 = vpop.f32.mrb[95].mxu0 }
0x3284   :  { %4851 = vmatmul.mubr.msk.bf16.vlgmr.msra.gmra.mrb[116].mxu1 %vm352_vm6, %v3647_v7 }
0x3285   :  { %4864 = vmatprep.mubr.msk.bf16.mxu1 %vm5180_vm4, %v5179_v10 }
0x3287   :  { %v3741_v43 = vpop.f32.mrb[96].mxu0 }
0x3288   :  { %v3742_v15 = vadd.f32 %v3741_v43, %v5504_v36  ;;  %v4858_v44 = vpop.f32.mrb[97].mxu0  ;;  %v4977_v43 = vld [vmem:[#allocation2 + $0xf0] sm:$0xff]  }
0x3289   :  { %v3744_v30 = vpop.f32.mrb[98].mxu0 }
0x328a   :  { %v3745_v57 = vadd.f32 %v3744_v30, %v5507_v38  ;;  %v4859_v46 = vpop.f32.mrb[99].mxu0  ;;  %v3748_v47 = vsel %vm220_vm3, %v3742_v15, -inf }
0x328b   :  { %3749 = vmax.xlane.f32.xlu1 %v3748_v47 }
0x328c   :  { %v3751_v28 = vsel %vm220_vm3, %v3745_v57, -inf }
0x328d   :  { %3752 = vmax.xlane.f32.xlu0 %v3751_v28 }
0x3318   :  { %v3750_v51 = vpop.xlane.xlu1 %3749 }
0x3319   :  { %v3754_v55 = vsub.f32 %v3742_v15, %v3750_v51  ;;  %v4978_v15 = vld [vmem:[#allocation2 + $0xf8] sm:$0xff]  }
0x331a   :  { %v3753_v53 = vpop.xlane.xlu0 %3752 }
0x331b   :  { %v3756_v54 = vmul.f32 1.442695, %v3754_v55  ;;  %v3755_v56 = vsub.f32 %v3745_v57, %v3753_v53 }
0x331d   :  { %5131 = vpow2.f32 %v3756_v54  ;;  %v3758_v52 = vmul.f32 1.442695, %v3755_v56 }
0x331f   :  { %5133 = vpow2.f32 %v3758_v52  ;;  %v4979_v52 = vld [vmem:[#allocation2 + $0x100] sm:$0xff]  }
0x3327   :  { %v5132_v36 = vpop.eup %5131 }
0x3328   :  { %v3760_v58 = vsel %vm220_vm3, %v5132_v36, 0.0 }
0x3329   :  { %v5134_v8 = vpop.eup %5133  ;;  %3761 = vadd.xlane.f32.xlu0 %v3760_v58  ;;  %v4981_v58 = vld [vmem:[#allocation2 + $0x110] sm:$0xff]  }
0x332a   :  { %v3763_v38 = vsel %vm220_vm3, %v5134_v8, 0.0 }
0x332b   :  { %3764 = vadd.xlane.f32.xlu1 %v3763_v38  ;;  %v4983_v38 = vld [vmem:[#allocation2 + $0x120] sm:$0xff]  }
0x333c   :  { %3773 = vrot.lane.b32.xlu1 %v5820_v16, %s5191_s22 }
0x333f   :  { %3771 = vrot.lane.b32.xlu0 %v5822_v48, %s5191_s22 }
0x3357   :  { %v3688_v0 = vpop.f32.mrb[116].mxu1 }
0x3358   :  { %v3695_v60 = vadd.f32 %v3688_v0, %v5901_v59  ;;  %v4852_v61 = vpop.f32.mrb[117].mxu1  ;;  %v4984_v0 = vld [vmem:[#allocation2 + $0x128] sm:$0xff]  }
0x3359   :  { %v3691_v62 = vpop.f32.mrb[118].mxu1  ;;  %v4986_v61 = vld [vmem:[#allocation2 + $0x138] sm:$0xff]  }
0x335a   :  { %v3696_v42 = vadd.f32 %v3691_v62, %v5903_v1  ;;  %v4853_v45 = vpop.f32.mrb[119].mxu1  ;;  %v2152_v1 = vld [vmem:[#allocation2 + $0xec] sm:$0xf] }
0x335b   :  { %v3826_v18 = vsel %vm356_vm5, %v2152_v1, 0  ;;  %v4295_v62 = vld [vmem:[%s6018_s2 + $0xc] ss:$0 sm:$0xff] }
0x335c   :  { %4869 = vmatpush3.bf16.msra.mxu0 %v3826_v18 }
0x335d   :  { %4882 = vmatprep.subr.bf16.mxu0 %v5179_v10 }
0x33b6   :  { %v3762_v9 = vpop.xlane.xlu0 %3761 }
0x33b7   :  { %5135 = vrcp.f32 %v3762_v9 }
0x33b8   :  { %v3765_v19 = vpop.xlane.xlu1 %3764 }
0x33b9   :  { %5137 = vrcp.f32 %v3765_v19 }
0x33ba   :  { %v3772_v50 = vpop.permute.xlu0 %3771 }
0x33bb   :  { %4861 = vmatpush3.bf16.msra.mxu1 %v3772_v50 }
0x33bc   :  { %4862 = vmatprep.subr.bf16.mxu1 %v5179_v10  ;;  %v3774_v16 = vpop.permute.xlu1 %3773 }
0x33bf   :  { %4863 = vmatpush3.bf16.msra.mxu1 %v3774_v16 }
0x33c0   :  { %4874 = vmatprep.subr.bf16.mxu1 %v5179_v10 }
0x33c1   :  { %v5136_v48 = vpop.eup %5135 }
0x33c2   :  { %v3768_v59 = vmul.f32 %v5136_v48, %v5132_v36  ;;  %v4980_v36 = vld [vmem:[#allocation2 + $0x108] sm:$0xff]  }
0x33c3   :  { %v5138_v11 = vpop.eup %5137 }
0x33c4   :  { %v3769_v12 = vmul.f32 %v5138_v11, %v5134_v8  ;;  %v4982_v8 = vld [vmem:[#allocation2 + $0x118] sm:$0xff]  }
0x33c6   :  { %v3770_v14 = vpack.c.bf16 %v3769_v12, %v3768_v59 }
0x33c8   :  { %4865 = vmatmul.mubr.msk.bf16.vlgmr.msra.gmra.mrb[120].mxu1 %vm220_vm3, %v3770_v14 }
0x33c9   :  { %4878 = vmatprep.mubr.msk.bf16.mxu1 %vm5180_vm4, %v5179_v10  ;;  %4875 = vmatpush3.bf16.msra.mxu1 %v4977_v43 }
0x33ca   :  { %4876 = vmatprep.subr.bf16.mxu1 %v5179_v10 }
0x33cd   :  { %4877 = vmatpush3.bf16.msra.mxu1 %v4978_v15 }
0x349b   :  { %v3814_v20 = vpop.f32.mrb[120].mxu1 }
0x349c   :  { %v4866_v21 = vpop.f32.mrb[121].mxu1 }
0x349d   :  { %v3817_v23 = vpop.f32.mrb[122].mxu1 }
0x349e   :  { %v3821_v24 = vpack.c.bf16 %v3817_v23, %v3814_v20  ;;  %v4867_v25 = vpop.f32.mrb[123].mxu1 }
0x34a0   :  { %4871 = vmatmul.mubr.msk.bf16.vlgmr.msra.gmra.mrb[100].mxu0 %vm352_vm6, %v3821_v24 }
0x34a1   :  { %4898 = vmatprep.mubr.msk.bf16.mxu0 %vm5180_vm4, %v5179_v10  ;;  %4883 = vmatpush3.bf16.msra.mxu0 %v4979_v52 }
0x34a2   :  { %4884 = vmatprep.subr.bf16.mxu0 %v5179_v10 }
0x34a5   :  { %4885 = vmatpush3.bf16.msra.mxu0 %v4980_v36 }
0x34a6   :  { %4886 = vmatprep.subr.bf16.mxu0 %v5179_v10 }
0x34a9   :  { %4887 = vmatpush3.bf16.msra.mxu0 %v4981_v58 }
0x34aa   :  { %4888 = vmatprep.subr.bf16.mxu0 %v5179_v10 }
0x34ad   :  { %4889 = vmatpush3.bf16.msra.mxu0 %v4982_v8 }
0x34ae   :  { %4890 = vmatprep.subr.bf16.mxu0 %v5179_v10 }
0x34b1   :  { %4891 = vmatpush3.bf16.msra.mxu0 %v4983_v38 }
0x34b2   :  { %4892 = vmatprep.subr.bf16.mxu0 %v5179_v10 }
0x34b5   :  { %4893 = vmatpush3.bf16.msra.mxu0 %v4984_v0 }
0x34b6   :  { %4894 = vmatprep.subr.bf16.mxu0 %v5179_v10 }
0x3573   :  { %v3862_v29 = vpop.f32.mrb[100].mxu0 }
0x3574   :  { %v3869_v31 = vadd.f32 %v3862_v29, %v3695_v60  ;;  %v4872_v34 = vpop.f32.mrb[101].mxu0  ;;  %v4985_v60 = vld [vmem:[#allocation2 + $0x130] sm:$0xff]  }
0x3575   :  { %v3865_v3 = vpop.f32.mrb[102].mxu0  ;;  %4895 = vmatpush3.bf16.msra.mxu0 %v4985_v60 }
0x3576   :  { %v3871_v4 = vadd.f32 %v3869_v31, %v5797_v6  ;;  %v3870_v32 = vadd.f32 %v3865_v3, %v3696_v42  ;;  %v4873_v63 = vpop.f32.mrb[103].mxu0  ;;  %4896 = vmatprep.subr.bf16.mxu0 %v5179_v10 }
0x3578   :  { %v5959_v2 = vadd.f32 %v4294_v5, %v3871_v4  ;;  %v3872_v26 = vadd.f32 %v3870_v32, %v5800_v13  ;;  %v4307_v32 = vld [vmem:[%s6018_s2 + $0xd] ss:$0 sm:$0xff] }
0x3579   :  { %4897 = vmatpush3.bf16.msra.mxu0 %v4986_v61  ;;  %v4308_v61 = vld [vmem:[%s6018_s2 + $0xe] ss:$0 sm:$0xff] }
0x357a   :  { %v5962_v33 = vadd.f32 %v4294_v5, %v3872_v26  ;;  %v3879_v22 = vsel %vm220_vm3, %v5959_v2, 0.0 }
0x357b   :  { %3880 = vadd.xlane.f32.xlu1 %v3879_v22 }
0x357c   :  { %v3882_v35 = vsel %vm220_vm3, %v5962_v33, 0.0 }
0x357d   :  { %3883 = vadd.xlane.f32.xlu0 %v3882_v35 }
0x3608   :  { %v3881_v37 = vpop.xlane.xlu1 %3880 }
0x3609   :  { %v3885_v27 = vmul.f32 0.03125, %v3881_v37 }
0x360a   :  { %v3884_v39 = vpop.xlane.xlu0 %3883 }
0x360b   :  { %v3887_v6 = vsub.f32 %v5959_v2, %v3885_v27  ;;  %v3886_v40 = vmul.f32 0.03125, %v3884_v39 }
0x360d   :  { %v3888_v41 = vsub.f32 %v5962_v33, %v3886_v40  ;;  %v3889_v17 = vmul.f32 %v3887_v6, %v3887_v6 }
0x360f   :  { %v3891_v13 = vsel %vm220_vm3, %v3889_v17, 0.0  ;;  %v3890_v7 = vmul.f32 %v3888_v41, %v3888_v41 }
0x3610   :  { %3892 = vadd.xlane.f32.xlu0 %v3891_v13 }
0x3611   :  { %v3894_v49 = vsel %vm220_vm3, %v3890_v7, 0.0 }
0x3612   :  { %3895 = vadd.xlane.f32.xlu1 %v3894_v49 }
0x369d   :  { %v3893_v44 = vpop.xlane.xlu0 %3892 }
0x369e   :  { %v3897_v30 = vmul.f32 0.03125, %v3893_v44 }
0x369f   :  { %v3896_v57 = vpop.xlane.xlu1 %3895 }
0x36a0   :  { %v3899_v46 = vadd.f32 1e-05, %v3897_v30  ;;  %v3898_v47 = vmul.f32 0.03125, %v3896_v57  ;;  %v46_v57 = vld [vmem:[%s6018_s2 + $0x50] sm:$0xff] }
0x36a2   :  { %5139 = vrsqrt.f32 %v3899_v46  ;;  %v3900_v28 = vadd.f32 1e-05, %v3898_v47  ;;  %v47_v46 = vld [vmem:[%s6018_s2 + $0x58] sm:$0xff] }
0x36a3   :  { %v4929_v47 = vpack.c.bf16 %v47_v46, %v46_v57 }
0x36a4   :  { %5141 = vrsqrt.f32 %v3900_v28  ;;  %v48_v28 = vld [vmem:[%s6018_s2 + $0x60] sm:$0xff] }
0x36a5   :  { %4930 = vmatprep.subr.bf16.mxu0 %v4929_v47 }
0x36ac   :  { %v5140_v51 = vpop.eup %5139 }
0x36ad   :  { %v3903_v53 = vmul.f32 %v5140_v51, %v3887_v6  ;;  %v49_v51 = vld [vmem:[%s6018_s2 + $0x68] sm:$0xff] }
0x36ae   :  { %v5142_v55 = vpop.eup %5141 }
0x36af   :  { %v3904_v54 = vmul.f32 %v5142_v55, %v3888_v41  ;;  %v4933_v55 = vpack.c.bf16 %v49_v51, %v48_v28 }
0x36b1   :  { %v3905_v56 = vpack.c.bf16 %v3904_v54, %v3903_v53 }
0x36b3   :  { %4879 = vmatmul.mubr.msk.bf16.vlgmr.msra.gmra.mrb[124].mxu1 %vm220_vm3, %v3905_v56 }
0x3786   :  { %v3959_v42 = vpop.f32.mrb[124].mxu1 }
0x3787   :  { %v3960_v45 = vadd.f32 %v4295_v62, %v3959_v42  ;;  %v4880_v9 = vpop.f32.mrb[125].mxu1 }
0x3788   :  { %v3962_v19 = vpop.f32.mrb[126].mxu1 }
0x3789   :  { %v3966_v50 = vmul.f32 %v3960_v45, %v3960_v45  ;;  %v3963_v16 = vadd.f32 %v4295_v62, %v3962_v19  ;;  %v4881_v48 = vpop.f32.mrb[127].mxu1 }
0x378b   :  { %v3968_v11 = vmul.f32 %v3966_v50, %v3960_v45  ;;  %v3967_v59 = vmul.f32 %v3963_v16, %v3963_v16 }
0x378d   :  { %v3970_v12 = vmul.f32 0.044715, %v3968_v11  ;;  %v3969_v14 = vmul.f32 %v3967_v59, %v3963_v16 }
0x378f   :  { %v3972_v1 = vadd.f32 %v3970_v12, %v3960_v45  ;;  %v3971_v18 = vmul.f32 0.044715, %v3969_v14 }
0x3791   :  { %v3974_v10 = vmul.f32 0.7978846, %v3972_v1  ;;  %v3973_v20 = vadd.f32 %v3971_v18, %v3963_v16 }
0x3793   :  { %5143 = vtanh.f32 %v3974_v10  ;;  %v3975_v21 = vmul.f32 0.7978846, %v3973_v20 }
0x3795   :  { %5145 = vtanh.f32 %v3975_v21 }
0x379d   :  { %v5144_v23 = vpop.eup %5143 }
0x379e   :  { %v3978_v24 = vadd.f32 1.0, %v5144_v23 }
0x379f   :  { %v5146_v25 = vpop.eup %5145 }
0x37a0   :  { %v3980_v29 = vmul.f32 0.5, %v3978_v24  ;;  %v3979_v31 = vadd.f32 1.0, %v5146_v25 }
0x37a2   :  { %v3981_v34 = vmul.f32 0.5, %v3979_v31  ;;  %v3982_v5 = vmul.f32 %v3980_v29, %v3960_v45 }
0x37a4   :  { %v3983_v3 = vmul.f32 %v3981_v34, %v3963_v16 }
0x37a6   :  { %v3984_v4 = vpack.c.bf16 %v3983_v3, %v3982_v5 }
0x37a8   :  { %4899 = vmatmul.mubr.bf16.vlgmr.msra.gmra.mrb[104].mxu0 %v3984_v4 }
0x37a9   :  { %4932 = vmatpush3.bf16.msra.mxu0 %v4929_v47 }
0x37aa   :  { %4934 = vmatprep.subr.bf16.mxu0 %v4933_v55 }
0x37ad   :  { %4936 = vmatpush3.bf16.msra.mxu0 %v4933_v55 }
0x387b   :  { %v4067_v63 = vpop.f32.mrb[104].mxu0 }
0x387c   :  { %v4074_v26 = vadd.f32 %v4067_v63, %v5959_v2  ;;  %v4900_v22 = vpop.f32.mrb[105].mxu0 }
0x387d   :  { %v4070_v35 = vpop.f32.mrb[106].mxu0 }
0x387e   :  { %v4080_v37 = vadd.f32 %v4307_v32, %v4074_v26  ;;  %v4075_v27 = vadd.f32 %v4070_v35, %v5962_v33  ;;  %v4901_v39 = vpop.f32.mrb[107].mxu0 }
0x3880   :  { %v4081_v6 = vadd.f32 %v4307_v32, %v4075_v27  ;;  %v4082_v40 = vsel %vm220_vm3, %v4080_v37, 0.0 }
0x3881   :  { %4083 = vadd.xlane.f32.xlu0 %v4082_v40 }
0x3882   :  { %v4085_v41 = vsel %vm220_vm3, %v4081_v6, 0.0 }
0x3883   :  { %4086 = vadd.xlane.f32.xlu1 %v4085_v41 }
0x390e   :  { %v4084_v17 = vpop.xlane.xlu0 %4083 }
0x390f   :  { %v4088_v13 = vmul.f32 0.03125, %v4084_v17 }
0x3910   :  { %v4087_v7 = vpop.xlane.xlu1 %4086 }
0x3911   :  { %v4090_v49 = vsub.f32 %v4080_v37, %v4088_v13  ;;  %v4089_v43 = vmul.f32 0.03125, %v4087_v7 }
0x3913   :  { %v4091_v15 = vsub.f32 %v4081_v6, %v4089_v43  ;;  %v4092_v2 = vmul.f32 %v4090_v49, %v4090_v49 }
0x3915   :  { %v4094_v44 = vsel %vm220_vm3, %v4092_v2, 0.0  ;;  %v4093_v30 = vmul.f32 %v4091_v15, %v4091_v15 }
0x3916   :  { %4095 = vadd.xlane.f32.xlu0 %v4094_v44 }
0x3917   :  { %v4097_v33 = vsel %vm220_vm3, %v4093_v30, 0.0 }
0x3918   :  { %4098 = vadd.xlane.f32.xlu1 %v4097_v33 }
0x39a3   :  { %v4096_v53 = vpop.xlane.xlu0 %4095 }
0x39a4   :  { %v4100_v54 = vmul.f32 0.03125, %v4096_v53 }
0x39a5   :  { %v4099_v56 = vpop.xlane.xlu1 %4098 }
0x39a6   :  { %v4102_v52 = vadd.f32 1e-05, %v4100_v54  ;;  %v4101_v36 = vmul.f32 0.03125, %v4099_v56 }
0x39a8   :  { %5147 = vrsqrt.f32 %v4102_v52  ;;  %v4103_v58 = vadd.f32 1e-05, %v4101_v36 }
0x39aa   :  { %5149 = vrsqrt.f32 %v4103_v58 }
0x39b2   :  { %v5148_v8 = vpop.eup %5147 }
0x39b3   :  { %v4106_v38 = vmul.f32 %v5148_v8, %v4090_v49 }
0x39b4   :  { %v5150_v0 = vpop.eup %5149 }
0x39b5   :  { %v4107_v60 = vmul.f32 %v5150_v0, %v4091_v15  ;;  %4910 = vmatprep.mubr.msk.f32.mxu0 %vm220_vm3, %v4106_v38 }
0x39b7   :  { %4911 = vmatmul.mubr.msk.f32.vlgmr.msra.gmra.mrb[108].mxu0 %vm220_vm3, %v4107_v60 }
0x3a8a   :  { %v4912_v62 = vpop.f32.mrb[108].mxu0 }
0x3a8b   :  { %v4190_v42 = vadd.f32 %v4912_v62, %v4308_v61  ;;  %v4184_v45 = vpop.f32.mrb[109].mxu0 }
0x3a8c   :  { %v4185_v9 = vadd.f32 %v4308_v61, %v4184_v45 }
0x3a8d   :  { %4194 = vst [vmem:[%s6020_s4 + $0x8] sm:$0xff] %v4190_v42 }
0x3a8e   :  { %4193 = vst [vmem:[%s6020_s4] sm:$0xff] %v4185_v9 }
0x3a8f   :  { %4199 = vsyncpa [#allocation3], 1 }

</bundles_post_ra>
